<compile_context>
chip_gen: v7x
topology: tpu7x:2x2x1
jax: 0.10.0
libtpu: 0.0.40
codegen_flags: <defaults>
</compile_context>

<pallas_src>
import functools

import jax
import jax.numpy as jnp
from jax.experimental import pallas as pl
from jax.experimental.pallas import tpu as pltpu


# (fan_in, fan_out) of every Linear in MLPReg3Dode, in forward order.
_LAYER_DIMS = [
    (38, 76), (76, 152), (152, 304), (304, 304), (304, 608),
    (608, 608), (608, 304), (304, 152), (152, 1),
]

_N_LAYERS = len(_LAYER_DIMS)


def _pad128(n: int) -> int:
    return ((n + 127) // 128) * 128


def _pad8(n: int) -> int:
    return ((n + 7) // 8) * 8


# ----------------------------------------------------------------------------
# Fused kernel: whole MLP in one body.  Refs: x, (w0,b0, ..., w8,b8), out.
# ----------------------------------------------------------------------------
def _mlp_fused_kernel(x_ref, *refs, n_layers: int):
    o_ref = refs[-1]
    wb_refs = refs[:-1]
    h = x_ref[...]  # (B_pad, 128) f32
    for i in range(n_layers):  # statically unrolled
        w = wb_refs[2 * i][...]        # (K_pad, N_pad)
        b = wb_refs[2 * i + 1][...]    # (1, N_pad)
        h = jnp.dot(h, w, preferred_element_type=jnp.float32) + b
        if i < n_layers - 1:           # no ReLU after the final regressor
            h = jnp.maximum(h, 0.0)
    o_ref[...] = h.astype(o_ref.dtype)


# ----------------------------------------------------------------------------
# Parameter init (mimics torch.nn.Linear default: U(-1/sqrt(fan_in), +...)),
# stored as (in_features, out_features) and zero-padded to lane multiples.
# ----------------------------------------------------------------------------
def init_params(key):
    params = []
    for (fan_in, fan_out) in _LAYER_DIMS:
        key, kw, kb = jax.random.split(key, 3)
        bound = 1.0 / float(fan_in) ** 0.5
        w = jax.random.uniform(kw, (fan_in, fan_out), jnp.float32, -bound, bound)
        b = jax.random.uniform(kb, (fan_out,), jnp.float32, -bound, bound)
        params.append((w, b))
    return params


def pad_params(params):
    """Zero-pad weights/biases so padded lanes stay zero through the net."""
    padded = []
    for (w, b) in params:
        k, n = w.shape
        kp, np_ = _pad128(k), _pad128(n)
        w_p = jnp.zeros((kp, np_), jnp.float32).at[:k, :n].set(w)
        b_p = jnp.zeros((1, np_), jnp.float32).at[0, :n].set(b)
        padded.append((w_p, b_p))
    return padded


# ----------------------------------------------------------------------------
# Wrapper: pad x, run the single fused pallas_call, slice the real output.
# ----------------------------------------------------------------------------
@functools.partial(jax.jit, static_argnames=())
def mlp_reg3dode_forward(x, padded_params):
    batch, feat = x.shape
    assert feat == _LAYER_DIMS[0][0]
    b_pad = _pad8(batch)
    in_pad = _pad128(_LAYER_DIMS[0][0])
    out_pad = _pad128(_LAYER_DIMS[-1][1])

    x_p = jnp.zeros((b_pad, in_pad), jnp.float32).at[:batch, :feat].set(x)

    flat_inputs = [x_p]
    in_specs = [pl.BlockSpec((b_pad, in_pad), lambda: (0, 0))]
    flops = 0
    bytes_accessed = x_p.size * 4 + b_pad * out_pad * 4
    for (w_p, b_p) in padded_params:
        flat_inputs.extend([w_p, b_p])
        in_specs.append(pl.BlockSpec(w_p.shape, lambda: (0, 0)))
        in_specs.append(pl.BlockSpec(b_p.shape, lambda: (0, 0)))
        flops += 2 * b_pad * w_p.shape[0] * w_p.shape[1]
        bytes_accessed += (w_p.size + b_p.size) * 4

    kernel = functools.partial(_mlp_fused_kernel, n_layers=_N_LAYERS)

    out = pl.pallas_call(
        kernel,
        out_shape=jax.ShapeDtypeStruct((b_pad, out_pad), jnp.float32),
        in_specs=in_specs,
        out_specs=pl.BlockSpec((b_pad, out_pad), lambda: (0, 0)),
        compiler_params=pltpu.CompilerParams(
            vmem_limit_bytes=48 * 1024 * 1024,  # weights ~5.3 MiB f32; safe on v5e/v6e/v7x
        ),
        cost_estimate=pl.CostEstimate(
            flops=flops, transcendentals=0, bytes_accessed=bytes_accessed),
    )(*flat_inputs)

    # TODO(synk): nn.Dropout(p=DO) is identity in eval/inference mode; training-mode
    # dropout masking is not implemented in this forward kernel.
    return out[:batch, :1]


# Pure-JAX reference (unpadded) for correctness checking.
def _reference_forward(x, params):
    h = x
    for i, (w, b) in enumerate(params):
        h = h @ w + b
        if i < len(params) - 1:
            h = jnp.maximum(h, 0.0)
    return h


if __name__ == "__main__":
    key = jax.random.PRNGKey(0)
    key_x, key_p = jax.random.split(key)

    batch = 8
    x = jax.random.normal(key_x, (batch, 38), dtype=jnp.float32)

    params = init_params(key_p)
    padded_params = pad_params(params)

    out = mlp_reg3dode_forward(x, padded_params)
    out = jax.block_until_ready(out)

    assert out.shape == (batch, 1), out.shape
    assert bool(jnp.all(jnp.isfinite(out)))

    ref = _reference_forward(x, params)
    assert bool(jnp.allclose(out, ref, atol=1e-4, rtol=1e-4)), (
        float(jnp.max(jnp.abs(out - ref))))

    print("KERNEL_OK")
</pallas_src>

<mosaic_0001>
module attributes {stable_mosaic.version = 11 : i64} {
  func.func @_mlp_fused_kernel(%arg0: memref<8x128xf32, #tpu.memory_space<vmem>>, %arg1: memref<128x128xf32, #tpu.memory_space<vmem>>, %arg2: memref<1x128xf32, #tpu.memory_space<vmem>>, %arg3: memref<128x256xf32, #tpu.memory_space<vmem>>, %arg4: memref<1x256xf32, #tpu.memory_space<vmem>>, %arg5: memref<256x384xf32, #tpu.memory_space<vmem>>, %arg6: memref<1x384xf32, #tpu.memory_space<vmem>>, %arg7: memref<384x384xf32, #tpu.memory_space<vmem>>, %arg8: memref<1x384xf32, #tpu.memory_space<vmem>>, %arg9: memref<384x640xf32, #tpu.memory_space<vmem>>, %arg10: memref<1x640xf32, #tpu.memory_space<vmem>>, %arg11: memref<640x640xf32, #tpu.memory_space<vmem>>, %arg12: memref<1x640xf32, #tpu.memory_space<vmem>>, %arg13: memref<640x384xf32, #tpu.memory_space<vmem>>, %arg14: memref<1x384xf32, #tpu.memory_space<vmem>>, %arg15: memref<384x256xf32, #tpu.memory_space<vmem>>, %arg16: memref<1x256xf32, #tpu.memory_space<vmem>>, %arg17: memref<256x128xf32, #tpu.memory_space<vmem>>, %arg18: memref<1x128xf32, #tpu.memory_space<vmem>>, %arg19: memref<8x128xf32, #tpu.memory_space<vmem>>) attributes {dimension_semantics = [], scalar_prefetch = 0 : i64, scratch_operands = 0 : i64, tpu.core_type = #tpu.core_type<tc>} {
    %c0 = arith.constant 0 : index
    %c0_0 = arith.constant 0 : index
    %0 = vector.load %arg0[%c0, %c0_0] : memref<8x128xf32, #tpu.memory_space<vmem>>, vector<8x128xf32>
    %c0_1 = arith.constant 0 : index
    %c0_2 = arith.constant 0 : index
    %1 = vector.load %arg1[%c0_1, %c0_2] : memref<128x128xf32, #tpu.memory_space<vmem>>, vector<128x128xf32>
    %c0_3 = arith.constant 0 : index
    %c0_4 = arith.constant 0 : index
    %2 = vector.load %arg2[%c0_3, %c0_4] : memref<1x128xf32, #tpu.memory_space<vmem>>, vector<1x128xf32>
    %cst = arith.constant dense<0.000000e+00> : vector<8x128xf32>
    %3 = tpu.matmul %0, %1, %cst {dimension_numbers = #tpu.dot_dimension_numbers<[1], [0], [0], [1], [0, 0, 1, 1], [], []>} : vector<8x128xf32>, vector<128x128xf32>, vector<8x128xf32> -> vector<8x128xf32>
    %4 = vector.broadcast %2 : vector<1x128xf32> to vector<8x128xf32>
    %5 = arith.addf %3, %4 : vector<8x128xf32>
    %cst_5 = arith.constant 0.000000e+00 : f32
    %6 = vector.broadcast %cst_5 : f32 to vector<8x128xf32>
    %7 = arith.maximumf %5, %6 : vector<8x128xf32>
    %c0_6 = arith.constant 0 : index
    %c0_7 = arith.constant 0 : index
    %8 = vector.load %arg3[%c0_6, %c0_7] : memref<128x256xf32, #tpu.memory_space<vmem>>, vector<128x256xf32>
    %c0_8 = arith.constant 0 : index
    %c0_9 = arith.constant 0 : index
    %9 = vector.load %arg4[%c0_8, %c0_9] : memref<1x256xf32, #tpu.memory_space<vmem>>, vector<1x256xf32>
    %cst_10 = arith.constant dense<0.000000e+00> : vector<8x256xf32>
    %10 = tpu.matmul %7, %8, %cst_10 {dimension_numbers = #tpu.dot_dimension_numbers<[1], [0], [0], [1], [0, 0, 1, 1], [], []>} : vector<8x128xf32>, vector<128x256xf32>, vector<8x256xf32> -> vector<8x256xf32>
    %11 = vector.broadcast %9 : vector<1x256xf32> to vector<8x256xf32>
    %12 = arith.addf %10, %11 : vector<8x256xf32>
    %cst_11 = arith.constant 0.000000e+00 : f32
    %13 = vector.broadcast %cst_11 : f32 to vector<8x256xf32>
    %14 = arith.maximumf %12, %13 : vector<8x256xf32>
    %c0_12 = arith.constant 0 : index
    %c0_13 = arith.constant 0 : index
    %15 = vector.load %arg5[%c0_12, %c0_13] : memref<256x384xf32, #tpu.memory_space<vmem>>, vector<256x384xf32>
    %c0_14 = arith.constant 0 : index
    %c0_15 = arith.constant 0 : index
    %16 = vector.load %arg6[%c0_14, %c0_15] : memref<1x384xf32, #tpu.memory_space<vmem>>, vector<1x384xf32>
    %cst_16 = arith.constant dense<0.000000e+00> : vector<8x384xf32>
    %17 = tpu.matmul %14, %15, %cst_16 {dimension_numbers = #tpu.dot_dimension_numbers<[1], [0], [0], [1], [0, 0, 1, 1], [], []>} : vector<8x256xf32>, vector<256x384xf32>, vector<8x384xf32> -> vector<8x384xf32>
    %18 = vector.broadcast %16 : vector<1x384xf32> to vector<8x384xf32>
    %19 = arith.addf %17, %18 : vector<8x384xf32>
    %cst_17 = arith.constant 0.000000e+00 : f32
    %20 = vector.broadcast %cst_17 : f32 to vector<8x384xf32>
    %21 = arith.maximumf %19, %20 : vector<8x384xf32>
    %c0_18 = arith.constant 0 : index
    %c0_19 = arith.constant 0 : index
    %22 = vector.load %arg7[%c0_18, %c0_19] : memref<384x384xf32, #tpu.memory_space<vmem>>, vector<384x384xf32>
    %c0_20 = arith.constant 0 : index
    %c0_21 = arith.constant 0 : index
    %23 = vector.load %arg8[%c0_20, %c0_21] : memref<1x384xf32, #tpu.memory_space<vmem>>, vector<1x384xf32>
    %cst_22 = arith.constant dense<0.000000e+00> : vector<8x384xf32>
    %24 = tpu.matmul %21, %22, %cst_22 {dimension_numbers = #tpu.dot_dimension_numbers<[1], [0], [0], [1], [0, 0, 1, 1], [], []>} : vector<8x384xf32>, vector<384x384xf32>, vector<8x384xf32> -> vector<8x384xf32>
    %25 = vector.broadcast %23 : vector<1x384xf32> to vector<8x384xf32>
    %26 = arith.addf %24, %25 : vector<8x384xf32>
    %cst_23 = arith.constant 0.000000e+00 : f32
    %27 = vector.broadcast %cst_23 : f32 to vector<8x384xf32>
    %28 = arith.maximumf %26, %27 : vector<8x384xf32>
    %c0_24 = arith.constant 0 : index
    %c0_25 = arith.constant 0 : index
    %29 = vector.load %arg9[%c0_24, %c0_25] : memref<384x640xf32, #tpu.memory_space<vmem>>, vector<384x640xf32>
    %c0_26 = arith.constant 0 : index
    %c0_27 = arith.constant 0 : index
    %30 = vector.load %arg10[%c0_26, %c0_27] : memref<1x640xf32, #tpu.memory_space<vmem>>, vector<1x640xf32>
    %cst_28 = arith.constant dense<0.000000e+00> : vector<8x640xf32>
    %31 = tpu.matmul %28, %29, %cst_28 {dimension_numbers = #tpu.dot_dimension_numbers<[1], [0], [0], [1], [0, 0, 1, 1], [], []>} : vector<8x384xf32>, vector<384x640xf32>, vector<8x640xf32> -> vector<8x640xf32>
    %32 = vector.broadcast %30 : vector<1x640xf32> to vector<8x640xf32>
    %33 = arith.addf %31, %32 : vector<8x640xf32>
    %cst_29 = arith.constant 0.000000e+00 : f32
    %34 = vector.broadcast %cst_29 : f32 to vector<8x640xf32>
    %35 = arith.maximumf %33, %34 : vector<8x640xf32>
    %c0_30 = arith.constant 0 : index
    %c0_31 = arith.constant 0 : index
    %36 = vector.load %arg11[%c0_30, %c0_31] : memref<640x640xf32, #tpu.memory_space<vmem>>, vector<640x640xf32>
    %c0_32 = arith.constant 0 : index
    %c0_33 = arith.constant 0 : index
    %37 = vector.load %arg12[%c0_32, %c0_33] : memref<1x640xf32, #tpu.memory_space<vmem>>, vector<1x640xf32>
    %cst_34 = arith.constant dense<0.000000e+00> : vector<8x640xf32>
    %38 = tpu.matmul %35, %36, %cst_34 {dimension_numbers = #tpu.dot_dimension_numbers<[1], [0], [0], [1], [0, 0, 1, 1], [], []>} : vector<8x640xf32>, vector<640x640xf32>, vector<8x640xf32> -> vector<8x640xf32>
    %39 = vector.broadcast %37 : vector<1x640xf32> to vector<8x640xf32>
    %40 = arith.addf %38, %39 : vector<8x640xf32>
    %cst_35 = arith.constant 0.000000e+00 : f32
    %41 = vector.broadcast %cst_35 : f32 to vector<8x640xf32>
    %42 = arith.maximumf %40, %41 : vector<8x640xf32>
    %c0_36 = arith.constant 0 : index
    %c0_37 = arith.constant 0 : index
    %43 = vector.load %arg13[%c0_36, %c0_37] : memref<640x384xf32, #tpu.memory_space<vmem>>, vector<640x384xf32>
    %c0_38 = arith.constant 0 : index
    %c0_39 = arith.constant 0 : index
    %44 = vector.load %arg14[%c0_38, %c0_39] : memref<1x384xf32, #tpu.memory_space<vmem>>, vector<1x384xf32>
    %cst_40 = arith.constant dense<0.000000e+00> : vector<8x384xf32>
    %45 = tpu.matmul %42, %43, %cst_40 {dimension_numbers = #tpu.dot_dimension_numbers<[1], [0], [0], [1], [0, 0, 1, 1], [], []>} : vector<8x640xf32>, vector<640x384xf32>, vector<8x384xf32> -> vector<8x384xf32>
    %46 = vector.broadcast %44 : vector<1x384xf32> to vector<8x384xf32>
    %47 = arith.addf %45, %46 : vector<8x384xf32>
    %cst_41 = arith.constant 0.000000e+00 : f32
    %48 = vector.broadcast %cst_41 : f32 to vector<8x384xf32>
    %49 = arith.maximumf %47, %48 : vector<8x384xf32>
    %c0_42 = arith.constant 0 : index
    %c0_43 = arith.constant 0 : index
    %50 = vector.load %arg15[%c0_42, %c0_43] : memref<384x256xf32, #tpu.memory_space<vmem>>, vector<384x256xf32>
    %c0_44 = arith.constant 0 : index
    %c0_45 = arith.constant 0 : index
    %51 = vector.load %arg16[%c0_44, %c0_45] : memref<1x256xf32, #tpu.memory_space<vmem>>, vector<1x256xf32>
    %cst_46 = arith.constant dense<0.000000e+00> : vector<8x256xf32>
    %52 = tpu.matmul %49, %50, %cst_46 {dimension_numbers = #tpu.dot_dimension_numbers<[1], [0], [0], [1], [0, 0, 1, 1], [], []>} : vector<8x384xf32>, vector<384x256xf32>, vector<8x256xf32> -> vector<8x256xf32>
    %53 = vector.broadcast %51 : vector<1x256xf32> to vector<8x256xf32>
    %54 = arith.addf %52, %53 : vector<8x256xf32>
    %cst_47 = arith.constant 0.000000e+00 : f32
    %55 = vector.broadcast %cst_47 : f32 to vector<8x256xf32>
    %56 = arith.maximumf %54, %55 : vector<8x256xf32>
    %c0_48 = arith.constant 0 : index
    %c0_49 = arith.constant 0 : index
    %57 = vector.load %arg17[%c0_48, %c0_49] : memref<256x128xf32, #tpu.memory_space<vmem>>, vector<256x128xf32>
    %c0_50 = arith.constant 0 : index
    %c0_51 = arith.constant 0 : index
    %58 = vector.load %arg18[%c0_50, %c0_51] : memref<1x128xf32, #tpu.memory_space<vmem>>, vector<1x128xf32>
    %cst_52 = arith.constant dense<0.000000e+00> : vector<8x128xf32>
    %59 = tpu.matmul %56, %57, %cst_52 {dimension_numbers = #tpu.dot_dimension_numbers<[1], [0], [0], [1], [0, 0, 1, 1], [], []>} : vector<8x256xf32>, vector<256x128xf32>, vector<8x128xf32> -> vector<8x128xf32>
    %60 = vector.broadcast %58 : vector<1x128xf32> to vector<8x128xf32>
    %61 = arith.addf %59, %60 : vector<8x128xf32>
    %c0_53 = arith.constant 0 : index
    %c0_54 = arith.constant 0 : index
    %62 = vector.load %arg19[%c0_53, %c0_54] : memref<8x128xf32, #tpu.memory_space<vmem>>, vector<8x128xf32>
    tpu.vector_store %arg19[%c0_53, %c0_54], %61 {strides = array<i32>} : memref<8x128xf32, #tpu.memory_space<vmem>>, vector<8x128xf32>,
    return
  }
}

</mosaic_0001>

<bundles_post_ra>
// kernel: mlp_reg3dode_forward.1
= control target key start
LH: loop header
LB: loop body
LE: loop exit
PB: predicated region body
PF: predicated region fallthrough
CT: control target
= control target key end

     0   :  { %s6943_s0 = inlined_call_operand.vmem [shape: f32[8,128], index: 0, kind: input, shape index: {}]   ;;  %s6944_s1 = inlined_call_operand.hbm [shape: f32[128,128], index: 1, kind: input, shape index: {}]   ;;  %s6945_s2 = inlined_call_operand.hbm [shape: f32[1,128], index: 2, kind: input, shape index: {}]   ;;  %s6946_s3 = inlined_call_operand.hbm [shape: f32[128,256], index: 3, kind: input, shape index: {}]   ;;  %s6947_s4 = inlined_call_operand.hbm [shape: f32[1,256], index: 4, kind: input, shape index: {}]   ;;  %s6948_s5 = inlined_call_operand.hbm [shape: f32[256,384], index: 5, kind: input, shape index: {}]   ;;  %s6949_s6 = inlined_call_operand.hbm [shape: f32[1,384], index: 6, kind: input, shape index: {}]   ;;  %s6950_s7 = inlined_call_operand.hbm [shape: f32[384,384], index: 7, kind: input, shape index: {}]   ;;  %s6951_s8 = inlined_call_operand.hbm [shape: f32[1,384], index: 8, kind: input, shape index: {}]   ;;  %s6952_s9 = inlined_call_operand.hbm [shape: f32[384,640], index: 9, kind: input, shape index: {}]   ;;  %s6953_s10 = inlined_call_operand.hbm [shape: f32[1,640], index: 10, kind: input, shape index: {}]   ;;  %s6954_s11 = inlined_call_operand.hbm [shape: f32[640,640], index: 11, kind: input, shape index: {}]   ;;  %s6955_s12 = inlined_call_operand.hbm [shape: f32[1,640], index: 12, kind: input, shape index: {}]   ;;  %s6956_s13 = inlined_call_operand.hbm [shape: f32[640,384], index: 13, kind: input, shape index: {}]   ;;  %s6957_s14 = inlined_call_operand.hbm [shape: f32[1,384], index: 14, kind: input, shape index: {}]   ;;  %s6958_s15 = inlined_call_operand.hbm [shape: f32[384,256], index: 15, kind: input, shape index: {}]   ;;  %s6959_s16 = inlined_call_operand.hbm [shape: f32[1,256], index: 16, kind: input, shape index: {}]   ;;  %s6960_s17 = inlined_call_operand.hbm [shape: f32[256,128], index: 17, kind: input, shape index: {}]   ;;  %s6961_s18 = inlined_call_operand.hbm [shape: f32[1,128], index: 18, kind: input, shape index: {}]   ;;  %s6962_s19 = inlined_call_operand.vmem [shape: f32[8,128], index: 19, kind: output, shape index: {}]  }
   0x1   :  { %6966 = sst [smem:[#allocation40_spill]] %s6943_s0 }
   0x2   :  { %6967 = sst [smem:[#allocation41_spill]] %s6944_s1 }
   0x3   :  { %6968 = sst [smem:[#allocation42_spill]] %s6945_s2 }
   0x4   :  { %6969 = sst [smem:[#allocation43_spill]] %s6946_s3 }
   0x5   :  { %24 = vsyncpa [#allocation3], 0 }
   0x6   :  { %25 = vsyncpa [#allocation5], 0 }
   0x7   :  { %26 = vsyncpa [#allocation8], 0 }
   0x8   :  { %27 = vsyncpa [#allocation11], 0 }
   0x9   :  { %28 = vsyncpa [#allocation14], 0 }
   0xa   :  { %29 = vsyncpa [#allocation17], 0 }
   0xb   :  { %30 = vsyncpa [#allocation20], 0 }
   0xc   :  { %31 = vsyncpa [#allocation23], 0 }
   0xd   :  { %32 = vsyncpa [#allocation26], 0 }
   0xe   :  { %33 = vsyncpa [#allocation29], 0  ;;  %s6383_s0 = smov [#allocation4]   ;;  %s6384_s20 = smov [#allocation7]  }
   0xf   :  { %s54_s30 = sshll.u32 %s6383_s0, 4  ;;  %s76_s21 = sshll.u32 %s6384_s20, 4  ;;  %s55_s30 = int_to_ptr.vmem [resolvable:$true] %s54_s30  ;;  %s77_s21 = int_to_ptr.vmem [resolvable:$true] %s76_s21 }
  0x10   :  { %s6970_s2 = sld [smem:[#allocation42_spill]] }
  0x16   :  { %s5967_s23 = scalar_lea.hbm %s6970_s2, 16 }
  0x17   :  { %p5968_p0 = scmp.ne.s32.totalorder %s6970_s2, %s5967_s23  ;;  %p5971_p1 = scmp.lt.u32.totalorder %s5967_s23, %s6970_s2 }
  0x19   :  { %p5973_p2 = pnand %p5971_p1, %p5968_p0 }
  0x1b   :  { %5976 = shalt.err (!%p5973_p2)
}
  0x1c   :  { %s5977_s27 = scalar_lea.vmem %s55_s30, 16  ;;  %s5981_s28 = scalar_lea.vmem %s55_s30, 32 }
  0x1d   :  { %p5978_p3 = scmp.ne.s32.totalorder %s55_s30, %s5977_s27  ;;  %p5982_p4 = scmp.lt.s32.totalorder %s55_s30, %s55_s30 }
  0x1e   :  { %p5983_p5 = scmp.lt.s32.totalorder %s5981_s28, %s5977_s27 }
  0x20   :  { %p5984_p6 = por %p5983_p5, %p5982_p4 }
  0x22   :  { %p5985_p7 = pnand %p5984_p6, %p5978_p3 }
  0x24   :  { %5988 = shalt.err (!%p5985_p7)
}
  0x25   :  { %57 = dma.hbm_to_vmem [thread:$0]  %s6970_s2, 16, %s55_s30, [#allocation5]  }
  0x26   :  { %s5989_s22 = scalar_lea.hbm %s6947_s4, 32 }
  0x27   :  { %p5990_p8 = scmp.ne.s32.totalorder %s6947_s4, %s5989_s22  ;;  %p5993_p9 = scmp.lt.u32.totalorder %s5989_s22, %s6947_s4 }
  0x29   :  { %p5995_p10 = pnand %p5993_p9, %p5990_p8 }
  0x2b   :  { %5998 = shalt.err (!%p5995_p10)
}
  0x2c   :  { %s5999_s26 = scalar_lea.vmem %s77_s21, 32  ;;  %p6004_p12 = scmp.lt.s32.totalorder %s77_s21, %s77_s21 }
  0x2d   :  { %p6000_p11 = scmp.ne.s32.totalorder %s77_s21, %s5999_s26  ;;  %p6005_p13 = scmp.lt.s32.totalorder %s5999_s26, %s5999_s26 }
  0x2f   :  { %p6006_p0 = por %p6005_p13, %p6004_p12 }
  0x31   :  { %p6007_p1 = pnand %p6006_p0, %p6000_p11 }
  0x33   :  { %6010 = shalt.err (!%p6007_p1)
}
  0x34   :  { %79 = dma.hbm_to_vmem [thread:$0]  %s6947_s4, 32, %s77_s21, [#allocation8]  }
  0x35   :  { %s6385_s27 = smov [#allocation10]   ;;  %s6386_s29 = smov [#allocation13]  }
  0x36   :  { %s98_s28 = sshll.u32 %s6385_s27, 4  ;;  %s120_s0 = sshll.u32 %s6386_s29, 4  ;;  %s99_s28 = int_to_ptr.vmem [resolvable:$true] %s98_s28  ;;  %s121_s0 = int_to_ptr.vmem [resolvable:$true] %s120_s0 }
  0x37   :  { %s6011_s22 = scalar_lea.hbm %s6949_s6, 48 }
  0x38   :  { %p6012_p2 = scmp.ne.s32.totalorder %s6949_s6, %s6011_s22  ;;  %p6015_p3 = scmp.lt.u32.totalorder %s6011_s22, %s6949_s6 }
  0x3a   :  { %p6017_p4 = pnand %p6015_p3, %p6012_p2 }
  0x3c   :  { %6020 = shalt.err (!%p6017_p4)
}
  0x3d   :  { %s6021_s4 = scalar_lea.vmem %s99_s28, 48  ;;  %s6025_s21 = scalar_lea.vmem %s99_s28, 64 }
  0x3e   :  { %p6022_p5 = scmp.ne.s32.totalorder %s99_s28, %s6021_s4  ;;  %p6026_p6 = scmp.lt.s32.totalorder %s99_s28, %s99_s28 }
  0x3f   :  { %p6027_p7 = scmp.lt.s32.totalorder %s6025_s21, %s6021_s4 }
  0x41   :  { %p6028_p8 = por %p6027_p7, %p6026_p6 }
  0x43   :  { %p6029_p9 = pnand %p6028_p8, %p6022_p5 }
  0x45   :  { %6032 = shalt.err (!%p6029_p9)
}
  0x46   :  { %101 = dma.hbm_to_vmem [thread:$0]  %s6949_s6, 48, %s99_s28, [#allocation11]  }
  0x47   :  { %s6033_s29 = scalar_lea.hbm %s6951_s8, 48 }
  0x48   :  { %p6034_p10 = scmp.ne.s32.totalorder %s6951_s8, %s6033_s29  ;;  %p6037_p11 = scmp.lt.u32.totalorder %s6033_s29, %s6951_s8 }
  0x4a   :  { %p6039_p12 = pnand %p6037_p11, %p6034_p10 }
  0x4c   :  { %6042 = shalt.err (!%p6039_p12)
}
  0x4d   :  { %s6043_s23 = scalar_lea.vmem %s121_s0, 48  ;;  %s6047_s25 = scalar_lea.vmem %s121_s0, 64 }
  0x4e   :  { %p6044_p13 = scmp.ne.s32.totalorder %s121_s0, %s6043_s23  ;;  %p6048_p0 = scmp.lt.s32.totalorder %s121_s0, %s121_s0 }
  0x4f   :  { %p6049_p1 = scmp.lt.s32.totalorder %s6047_s25, %s6043_s23 }
  0x51   :  { %p6050_p2 = por %p6049_p1, %p6048_p0 }
  0x53   :  { %p6051_p3 = pnand %p6050_p2, %p6044_p13 }
  0x55   :  { %6054 = shalt.err (!%p6051_p3)
}
  0x56   :  { %123 = dma.hbm_to_vmem [thread:$0]  %s6951_s8, 48, %s121_s0, [#allocation14]  }
  0x57   :  { %s6387_s3 = smov [#allocation16]   ;;  %s6388_s21 = smov [#allocation19]  }
  0x58   :  { %s142_s4 = sshll.u32 %s6387_s3, 4  ;;  %s164_s26 = sshll.u32 %s6388_s21, 4  ;;  %s143_s4 = int_to_ptr.vmem [resolvable:$true] %s142_s4  ;;  %s165_s26 = int_to_ptr.vmem [resolvable:$true] %s164_s26 }
  0x59   :  { %s6055_s27 = scalar_lea.hbm %s6953_s10, 80 }
  0x5a   :  { %p6056_p4 = scmp.ne.s32.totalorder %s6953_s10, %s6055_s27  ;;  %p6059_p5 = scmp.lt.u32.totalorder %s6055_s27, %s6953_s10 }
  0x5c   :  { %p6061_p6 = pnand %p6059_p5, %p6056_p4 }
  0x5e   :  { %6064 = shalt.err (!%p6061_p6)
}
  0x5f   :  { %s6065_s8 = scalar_lea.vmem %s143_s4, 80  ;;  %s6069_s0 = scalar_lea.vmem %s143_s4, 96 }
  0x60   :  { %p6066_p7 = scmp.ne.s32.totalorder %s143_s4, %s6065_s8  ;;  %p6070_p8 = scmp.lt.s32.totalorder %s143_s4, %s143_s4 }
  0x61   :  { %p6071_p9 = scmp.lt.s32.totalorder %s6069_s0, %s6065_s8 }
  0x63   :  { %p6072_p10 = por %p6071_p9, %p6070_p8 }
  0x65   :  { %p6073_p11 = pnand %p6072_p10, %p6066_p7 }
  0x67   :  { %6076 = shalt.err (!%p6073_p11)
}
  0x68   :  { %145 = dma.hbm_to_vmem [thread:$0]  %s6953_s10, 80, %s143_s4, [#allocation17]  }
  0x69   :  { %s6077_s28 = scalar_lea.hbm %s6955_s12, 80 }
  0x6a   :  { %p6078_p12 = scmp.ne.s32.totalorder %s6955_s12, %s6077_s28  ;;  %p6081_p13 = scmp.lt.u32.totalorder %s6077_s28, %s6955_s12 }
  0x6c   :  { %p6083_p0 = pnand %p6081_p13, %p6078_p12 }
  0x6e   :  { %6086 = shalt.err (!%p6083_p0)
}
  0x6f   :  { %s6087_s27 = scalar_lea.vmem %s165_s26, 80  ;;  %s6091_s29 = scalar_lea.vmem %s165_s26, 96 }
  0x70   :  { %p6088_p1 = scmp.ne.s32.totalorder %s165_s26, %s6087_s27  ;;  %p6092_p2 = scmp.lt.s32.totalorder %s165_s26, %s165_s26 }
  0x71   :  { %p6093_p3 = scmp.lt.s32.totalorder %s6091_s29, %s6087_s27 }
  0x73   :  { %p6094_p4 = por %p6093_p3, %p6092_p2 }
  0x75   :  { %p6095_p5 = pnand %p6094_p4, %p6088_p1 }
  0x77   :  { %6098 = shalt.err (!%p6095_p5)
}
  0x78   :  { %167 = dma.hbm_to_vmem [thread:$0]  %s6955_s12, 80, %s165_s26, [#allocation20]  }
  0x79   :  { %s6389_s20 = smov [#allocation22]   ;;  %s6390_s22 = smov [#allocation25]  }
  0x7a   :  { %s186_s1 = sshll.u32 %s6389_s20, 4  ;;  %s208_s8 = sshll.u32 %s6390_s22, 4  ;;  %s187_s1 = int_to_ptr.vmem [resolvable:$true] %s186_s1  ;;  %s209_s8 = int_to_ptr.vmem [resolvable:$true] %s208_s8 }
  0x7b   :  { %s6099_s23 = scalar_lea.hbm %s6957_s14, 48 }
  0x7c   :  { %p6100_p6 = scmp.ne.s32.totalorder %s6957_s14, %s6099_s23  ;;  %p6103_p7 = scmp.lt.u32.totalorder %s6099_s23, %s6957_s14 }
  0x7e   :  { %p6105_p8 = pnand %p6103_p7, %p6100_p6 }
  0x80   :  { %6108 = shalt.err (!%p6105_p8)
}
  0x81   :  { %s6109_s12 = scalar_lea.vmem %s187_s1, 48  ;;  %s6113_s26 = scalar_lea.vmem %s187_s1, 64 }
  0x82   :  { %p6110_p9 = scmp.ne.s32.totalorder %s187_s1, %s6109_s12  ;;  %p6114_p10 = scmp.lt.s32.totalorder %s187_s1, %s187_s1 }
  0x83   :  { %p6115_p11 = scmp.lt.s32.totalorder %s6113_s26, %s6109_s12 }
  0x85   :  { %p6116_p12 = por %p6115_p11, %p6114_p10 }
  0x87   :  { %p6117_p13 = pnand %p6116_p12, %p6110_p9 }
  0x89   :  { %6120 = shalt.err (!%p6117_p13)
}
  0x8a   :  { %189 = dma.hbm_to_vmem [thread:$0]  %s6957_s14, 48, %s187_s1, [#allocation23]  }
  0x8b   :  { %s6121_s29 = scalar_lea.hbm %s6959_s16, 32 }
  0x8c   :  { %p6122_p0 = scmp.ne.s32.totalorder %s6959_s16, %s6121_s29  ;;  %p6125_p1 = scmp.lt.u32.totalorder %s6121_s29, %s6959_s16 }
  0x8e   :  { %p6127_p2 = pnand %p6125_p1, %p6122_p0 }
  0x90   :  { %6130 = shalt.err (!%p6127_p2)
}
  0x91   :  { %s6131_s0 = scalar_lea.vmem %s209_s8, 32  ;;  %p6136_p4 = scmp.lt.s32.totalorder %s209_s8, %s209_s8 }
  0x92   :  { %p6132_p3 = scmp.ne.s32.totalorder %s209_s8, %s6131_s0  ;;  %p6137_p5 = scmp.lt.s32.totalorder %s6131_s0, %s6131_s0 }
  0x94   :  { %p6138_p6 = por %p6137_p5, %p6136_p4 }
  0x96   :  { %p6139_p7 = pnand %p6138_p6, %p6132_p3 }
  0x98   :  { %6142 = shalt.err (!%p6139_p7)
}
  0x99   :  { %211 = dma.hbm_to_vmem [thread:$0]  %s6959_s16, 32, %s209_s8, [#allocation26]  }
  0x9a   :  { %s6391_s24 = smov [#allocation2]   ;;  %s6971_s28 = sld [smem:[#allocation41_spill]] }
  0x9b   :  { %s41_s23 = sshll.u32 %s6391_s24, 4  ;;  %s42_s23 = int_to_ptr.vmem [resolvable:$true] %s41_s23 }
  0xa0   :  { %s6143_s3 = scalar_lea.hbm %s6971_s28, 2048 }
  0xa1   :  { %p6144_p8 = scmp.ne.s32.totalorder %s6971_s28, %s6143_s3  ;;  %p6147_p9 = scmp.lt.u32.totalorder %s6143_s3, %s6971_s28 }
  0xa3   :  { %p6149_p10 = pnand %p6147_p9, %p6144_p8 }
  0xa5   :  { %6152 = shalt.err (!%p6149_p10)
}
  0xa6   :  { %s6153_s2 = scalar_lea.vmem %s42_s23, 2048  ;;  %p6158_p12 = scmp.lt.s32.totalorder %s42_s23, %s42_s23 }
  0xa7   :  { %p6154_p11 = scmp.ne.s32.totalorder %s42_s23, %s6153_s2  ;;  %p6159_p13 = scmp.lt.s32.totalorder %s6153_s2, %s6153_s2 }
  0xa9   :  { %p6160_p0 = por %p6159_p13, %p6158_p12 }
  0xab   :  { %p6161_p1 = pnand %p6160_p0, %p6154_p11 }
  0xad   :  { %6164 = shalt.err (!%p6161_p1)
}
  0xae   :  { %s6392_s16 = smov 128   ;;  %s6393_s8 = smov 8  }
  0xaf   :  { %47 = dma.hbm_to_vmem [thread:$0]  %s6971_s28, 2048, %s42_s23, [#allocation3], %s6392_s16, %s6392_s16, %s6393_s8  }
  0xb0   :  { %s6394_s10 = smov [#allocation6]   ;;  %s6972_s0 = sld [smem:[#allocation43_spill]] }
  0xb1   :  { %s63_s4 = sshll.u32 %s6394_s10, 4  ;;  %s64_s4 = int_to_ptr.vmem [resolvable:$true] %s63_s4 }
  0xb6   :  { %s6165_s14 = scalar_lea.hbm %s6972_s0, 4096 }
  0xb7   :  { %p6166_p2 = scmp.ne.s32.totalorder %s6972_s0, %s6165_s14  ;;  %p6169_p3 = scmp.lt.u32.totalorder %s6165_s14, %s6972_s0 }
  0xb9   :  { %p6171_p4 = pnand %p6169_p3, %p6166_p2 }
  0xbb   :  { %6174 = shalt.err (!%p6171_p4)
}
  0xbc   :  { %s6175_s3 = scalar_lea.vmem %s64_s4, 4096  ;;  %p6180_p6 = scmp.lt.s32.totalorder %s64_s4, %s64_s4 }
  0xbd   :  { %p6176_p5 = scmp.ne.s32.totalorder %s64_s4, %s6175_s3  ;;  %p6181_p7 = scmp.lt.s32.totalorder %s6175_s3, %s6175_s3 }
  0xbf   :  { %p6182_p8 = por %p6181_p7, %p6180_p6 }
  0xc1   :  { %p6183_p9 = pnand %p6182_p8, %p6176_p5 }
  0xc3   :  { %6186 = shalt.err (!%p6183_p9)
}
  0xc4   :  { %s6395_s23 = smov 256   ;;  %s6396_s28 = smov 16  }
  0xc5   :  { %69 = dma.hbm_to_vmem [thread:$0]  %s6972_s0, 4096, %s64_s4, [#allocation5], %s6395_s23, %s6395_s23, %s6396_s28  }
  0xc6   :  { %s6397_s21 = smov [#allocation9]   ;;  %s6187_s29 = scalar_lea.hbm %s6948_s5, 12288 }
  0xc7   :  { %s85_s30 = sshll.u32 %s6397_s21, 4  ;;  %p6188_p10 = scmp.ne.s32.totalorder %s6948_s5, %s6187_s29  ;;  %s86_s30 = int_to_ptr.vmem [resolvable:$true] %s85_s30 }
  0xc8   :  { %p6191_p11 = scmp.lt.u32.totalorder %s6187_s29, %s6948_s5 }
  0xca   :  { %p6193_p12 = pnand %p6191_p11, %p6188_p10 }
  0xcc   :  { %6196 = shalt.err (!%p6193_p12)
}
  0xcd   :  { %s6197_s1 = scalar_lea.vmem %s86_s30, 12288  ;;  %p6202_p0 = scmp.lt.s32.totalorder %s86_s30, %s86_s30 }
  0xce   :  { %p6198_p13 = scmp.ne.s32.totalorder %s86_s30, %s6197_s1  ;;  %p6203_p1 = scmp.lt.s32.totalorder %s6197_s1, %s6197_s1 }
  0xd0   :  { %p6204_p2 = por %p6203_p1, %p6202_p0 }
  0xd2   :  { %p6205_p3 = pnand %p6204_p2, %p6198_p13 }
  0xd4   :  { %6208 = shalt.err (!%p6205_p3)
}
  0xd5   :  { %s6398_s4 = smov 384   ;;  %s6399_s0 = smov 24  }
  0xd6   :  { %91 = dma.hbm_to_vmem [thread:$0]  %s6948_s5, 12288, %s86_s30, [#allocation8], %s6398_s4, %s6398_s4, %s6399_s0  }
  0xd7   :  { %s6400_s6 = smov [#allocation12]   ;;  %s6401_s12 = smov [#allocation15]  }
  0xd8   :  { %s107_s3 = sshll.u32 %s6400_s6, 4  ;;  %s129_s26 = sshll.u32 %s6401_s12, 4  ;;  %s108_s3 = int_to_ptr.vmem [resolvable:$true] %s107_s3  ;;  %s130_s26 = int_to_ptr.vmem [resolvable:$true] %s129_s26 }
  0xd9   :  { %s6209_s27 = scalar_lea.hbm %s6950_s7, 18432 }
  0xda   :  { %p6210_p4 = scmp.ne.s32.totalorder %s6950_s7, %s6209_s27  ;;  %p6213_p5 = scmp.lt.u32.totalorder %s6209_s27, %s6950_s7 }
  0xdc   :  { %p6215_p6 = pnand %p6213_p5, %p6210_p4 }
  0xde   :  { %6218 = shalt.err (!%p6215_p6)
}
  0xdf   :  { %s6219_s5 = scalar_lea.vmem %s108_s3, 18432  ;;  %p6224_p8 = scmp.lt.s32.totalorder %s108_s3, %s108_s3 }
  0xe0   :  { %p6220_p7 = scmp.ne.s32.totalorder %s108_s3, %s6219_s5  ;;  %p6225_p9 = scmp.lt.s32.totalorder %s6219_s5, %s6219_s5 }
  0xe2   :  { %p6226_p10 = por %p6225_p9, %p6224_p8 }
  0xe4   :  { %p6227_p11 = pnand %p6226_p10, %p6220_p7 }
  0xe6   :  { %6230 = shalt.err (!%p6227_p11)
}
  0xe7   :  { %113 = dma.hbm_to_vmem [thread:$0]  %s6950_s7, 18432, %s108_s3, [#allocation11], %s6398_s4, %s6398_s4, %s6399_s0  }
  0xe8   :  { %s6231_s25 = scalar_lea.hbm %s6952_s9, 30720 }
  0xe9   :  { %p6232_p12 = scmp.ne.s32.totalorder %s6952_s9, %s6231_s25  ;;  %p6235_p13 = scmp.lt.u32.totalorder %s6231_s25, %s6952_s9 }
  0xeb   :  { %p6237_p0 = pnand %p6235_p13, %p6232_p12 }
  0xed   :  { %6240 = shalt.err (!%p6237_p0)
}
  0xee   :  { %s6241_s27 = scalar_lea.vmem %s130_s26, 30720  ;;  %p6246_p2 = scmp.lt.s32.totalorder %s130_s26, %s130_s26 }
  0xef   :  { %p6242_p1 = scmp.ne.s32.totalorder %s130_s26, %s6241_s27  ;;  %p6247_p3 = scmp.lt.s32.totalorder %s6241_s27, %s6241_s27 }
  0xf1   :  { %p6248_p4 = por %p6247_p3, %p6246_p2 }
  0xf3   :  { %p6249_p5 = pnand %p6248_p4, %p6242_p1 }
  0xf5   :  { %6252 = shalt.err (!%p6249_p5)
}
  0xf6   :  { %s6402_s7 = smov 640   ;;  %s6403_s3 = smov 40  }
  0xf7   :  { %135 = dma.hbm_to_vmem [thread:$0]  %s6952_s9, 30720, %s130_s26, [#allocation14], %s6402_s7, %s6402_s7, %s6403_s3  }
  0xf8   :  { %s6404_s20 = smov [#allocation18]   ;;  %s6405_s5 = smov [#allocation21]  }
  0xf9   :  { %s151_s22 = sshll.u32 %s6404_s20, 4  ;;  %s173_s30 = sshll.u32 %s6405_s5, 4  ;;  %s152_s22 = int_to_ptr.vmem [resolvable:$true] %s151_s22  ;;  %s174_s30 = int_to_ptr.vmem [resolvable:$true] %s173_s30 }
  0xfa   :  { %s6253_s24 = scalar_lea.hbm %s6954_s11, 51200 }
  0xfb   :  { %p6254_p6 = scmp.ne.s32.totalorder %s6954_s11, %s6253_s24  ;;  %p6257_p7 = scmp.lt.u32.totalorder %s6253_s24, %s6954_s11 }
  0xfd   :  { %p6259_p8 = pnand %p6257_p7, %p6254_p6 }
  0xff   :  { %6262 = shalt.err (!%p6259_p8)
}
 0x100   :  { %s6263_s9 = scalar_lea.vmem %s152_s22, 51200  ;;  %p6268_p10 = scmp.lt.s32.totalorder %s152_s22, %s152_s22 }
 0x101   :  { %p6264_p9 = scmp.ne.s32.totalorder %s152_s22, %s6263_s9  ;;  %p6269_p11 = scmp.lt.s32.totalorder %s6263_s9, %s6263_s9 }
 0x103   :  { %p6270_p12 = por %p6269_p11, %p6268_p10 }
 0x105   :  { %p6271_p13 = pnand %p6270_p12, %p6264_p9 }
 0x107   :  { %6274 = shalt.err (!%p6271_p13)
}
 0x108   :  { %157 = dma.hbm_to_vmem [thread:$0]  %s6954_s11, 51200, %s152_s22, [#allocation17], %s6402_s7, %s6402_s7, %s6403_s3  }
 0x109   :  { %s6275_s10 = scalar_lea.hbm %s6956_s13, 30720 }
 0x10a   :  { %p6276_p0 = scmp.ne.s32.totalorder %s6956_s13, %s6275_s10  ;;  %p6279_p1 = scmp.lt.u32.totalorder %s6275_s10, %s6956_s13 }
 0x10c   :  { %p6281_p2 = pnand %p6279_p1, %p6276_p0 }
 0x10e   :  { %6284 = shalt.err (!%p6281_p2)
}
 0x10f   :  { %s6285_s24 = scalar_lea.vmem %s174_s30, 30720  ;;  %p6290_p4 = scmp.lt.s32.totalorder %s174_s30, %s174_s30 }
 0x110   :  { %p6286_p3 = scmp.ne.s32.totalorder %s174_s30, %s6285_s24  ;;  %p6291_p5 = scmp.lt.s32.totalorder %s6285_s24, %s6285_s24 }
 0x112   :  { %p6292_p6 = por %p6291_p5, %p6290_p4 }
 0x114   :  { %p6293_p7 = pnand %p6292_p6, %p6286_p3 }
 0x116   :  { %6296 = shalt.err (!%p6293_p7)
}
 0x117   :  { %179 = dma.hbm_to_vmem [thread:$0]  %s6956_s13, 30720, %s174_s30, [#allocation20], %s6398_s4, %s6398_s4, %s6399_s0  }
 0x118   :  { %s6406_s3 = smov [#allocation24]   ;;  %s6407_s25 = smov [#allocation27]  }
 0x119   :  { %s195_s22 = sshll.u32 %s6406_s3, 4  ;;  %s217_s6 = sshll.u32 %s6407_s25, 4  ;;  %s196_s22 = int_to_ptr.vmem [resolvable:$true] %s195_s22  ;;  %s218_s6 = int_to_ptr.vmem [resolvable:$true] %s217_s6 }
 0x11a   :  { %s6297_s9 = scalar_lea.hbm %s6958_s15, 12288 }
 0x11b   :  { %p6298_p8 = scmp.ne.s32.totalorder %s6958_s15, %s6297_s9  ;;  %p6301_p9 = scmp.lt.u32.totalorder %s6297_s9, %s6958_s15 }
 0x11d   :  { %p6303_p10 = pnand %p6301_p9, %p6298_p8 }
 0x11f   :  { %6306 = shalt.err (!%p6303_p10)
}
 0x120   :  { %s6307_s13 = scalar_lea.vmem %s196_s22, 12288  ;;  %p6312_p12 = scmp.lt.s32.totalorder %s196_s22, %s196_s22 }
 0x121   :  { %p6308_p11 = scmp.ne.s32.totalorder %s196_s22, %s6307_s13  ;;  %p6313_p13 = scmp.lt.s32.totalorder %s6307_s13, %s6307_s13 }
 0x123   :  { %p6314_p0 = por %p6313_p13, %p6312_p12 }
 0x125   :  { %p6315_p1 = pnand %p6314_p0, %p6308_p11 }
 0x127   :  { %6318 = shalt.err (!%p6315_p1)
}
 0x128   :  { %201 = dma.hbm_to_vmem [thread:$0]  %s6958_s15, 12288, %s196_s22, [#allocation23], %s6395_s23, %s6395_s23, %s6396_s28  }
 0x129   :  { %s6319_s20 = scalar_lea.hbm %s6960_s17, 4096 }
 0x12a   :  { %p6320_p2 = scmp.ne.s32.totalorder %s6960_s17, %s6319_s20  ;;  %p6323_p3 = scmp.lt.u32.totalorder %s6319_s20, %s6960_s17 }
 0x12c   :  { %p6325_p4 = pnand %p6323_p3, %p6320_p2 }
 0x12e   :  { %6328 = shalt.err (!%p6325_p4)
}
 0x12f   :  { %s6329_s11 = scalar_lea.vmem %s218_s6, 4096  ;;  %p6334_p6 = scmp.lt.s32.totalorder %s218_s6, %s218_s6 }
 0x130   :  { %p6330_p5 = scmp.ne.s32.totalorder %s218_s6, %s6329_s11  ;;  %p6335_p7 = scmp.lt.s32.totalorder %s6329_s11, %s6329_s11 }
 0x132   :  { %p6336_p8 = por %p6335_p7, %p6334_p6 }
 0x134   :  { %p6337_p9 = pnand %p6336_p8, %p6330_p5 }
 0x136   :  { %6340 = shalt.err (!%p6337_p9)
}
 0x137   :  { %223 = dma.hbm_to_vmem [thread:$0]  %s6960_s17, 4096, %s218_s6, [#allocation26], %s6392_s16, %s6392_s16, %s6393_s8  }
 0x138   :  { %s6408_s28 = smov [#allocation28]   ;;  %s6341_s25 = scalar_lea.hbm %s6961_s18, 16 }
 0x139   :  { %s230_s7 = sshll.u32 %s6408_s28, 4  ;;  %p6342_p10 = scmp.ne.s32.totalorder %s6961_s18, %s6341_s25  ;;  %s231_s7 = int_to_ptr.vmem [resolvable:$true] %s230_s7 }
 0x13a   :  { %p6345_p11 = scmp.lt.u32.totalorder %s6341_s25, %s6961_s18 }
 0x13c   :  { %p6347_p12 = pnand %p6345_p11, %p6342_p10 }
 0x13e   :  { %6350 = shalt.err (!%p6347_p12)
}
 0x13f   :  { %s6351_s2 = scalar_lea.vmem %s231_s7, 16  ;;  %s6355_s17 = scalar_lea.vmem %s231_s7, 32 }
 0x140   :  { %p6352_p13 = scmp.ne.s32.totalorder %s231_s7, %s6351_s2  ;;  %p6356_p0 = scmp.lt.s32.totalorder %s231_s7, %s231_s7 }
 0x141   :  { %p6357_p1 = scmp.lt.s32.totalorder %s6355_s17, %s6351_s2 }
 0x143   :  { %p6358_p2 = por %p6357_p1, %p6356_p0 }
 0x145   :  { %p6359_p3 = pnand %p6358_p2, %p6352_p13 }
 0x147   :  { %6362 = shalt.err (!%p6359_p3)
}
 0x148   :  { %233 = dma.hbm_to_vmem [thread:$0]  %s6961_s18, 16, %s231_s7, [#allocation29]  }
 0x149   :  { %6363 = dma.done.wait [#allocation3], 2048  }
 0x14a   :  { %6364 = vsyncadd [#allocation3], 4294965248 }
 0x14b   :  { %6365 = dma.done.wait [#allocation5], 4112  }
 0x14c   :  { %6366 = vsyncadd [#allocation5], 4294963184 }
 0x14d   :  { %6367 = dma.done.wait [#allocation8], 12320  }
 0x14e   :  { %6368 = vsyncadd [#allocation8], 4294954976 }
 0x14f   :  { %6369 = dma.done.wait [#allocation11], 18480  }
 0x150   :  { %6370 = vsyncadd [#allocation11], 4294948816 }
 0x151   :  { %6371 = dma.done.wait [#allocation14], 30768  }
 0x152   :  { %6372 = vsyncadd [#allocation14], 4294936528 }
 0x153   :  { %6373 = dma.done.wait [#allocation17], 51280  }
 0x154   :  { %6374 = vsyncadd [#allocation17], 4294916016 }
 0x155   :  { %6375 = dma.done.wait [#allocation20], 30800  }
 0x156   :  { %6376 = vsyncadd [#allocation20], 4294936496 }
 0x157   :  { %6377 = dma.done.wait [#allocation23], 12336  }
 0x158   :  { %6378 = vsyncadd [#allocation23], 4294954960 }
 0x159   :  { %6379 = dma.done.wait [#allocation26], 4128  }
 0x15a   :  { %6380 = vsyncadd [#allocation26], 4294963168 }
 0x15b   :  { %6381 = dma.done.wait [#allocation29], 16  }
 0x15c   :  { %6382 = vsyncadd [#allocation29], 4294967280  ;;  %v6409_v0 = vmov 0.0|0.0   ;;  %vm6410_vm0 = vmmov 0   ;;  %v6411_v1 = vmov 0.0   ;;  %v289_v2 = vld [vmem:[#allocation2] sm:$0xff] }
 0x15d   :  { %4568 = vmatprep.subr.bf16.mxu0 %v6409_v0  ;;  %4425 = vmatprep.mubr.msk.f32.mxu0 %vm6410_vm0, %v6411_v1  ;;  %v290_v3 = vld [vmem:[#allocation2 + $0x8] sm:$0xff]  ;;  %v291_v4 = vld [vmem:[#allocation2 + $0x10] sm:$0xff]  ;;  %v292_v6 = vld [vmem:[#allocation2 + $0x18] sm:$0xff]  ;;  %s6973_s27 = sld [smem:[#allocation40_spill]] }
 0x15e   :  { %491 = vmatprep.mubr.f32.mxu1 %v6411_v1  ;;  %v4569_v5 = vpack.c.bf16 %v290_v3, %v289_v2  ;;  %v4572_v7 = vpack.c.bf16 %v292_v6, %v291_v4  ;;  %v293_v8 = vld [vmem:[#allocation2 + $0x20] sm:$0xff]  ;;  %v294_v9 = vld [vmem:[#allocation2 + $0x28] sm:$0xff]  ;;  %v295_v11 = vld [vmem:[#allocation2 + $0x30] sm:$0xff] }
 0x15f   :  { %v384_v10 = vld [vmem:[#allocation6 + $0x8] sm:$0xff]  ;;  %v296_v12 = vld [vmem:[#allocation2 + $0x38] sm:$0xff]  ;;  %v383_v14 = vld [vmem:[#allocation6] sm:$0xff]  ;;  %v4575_v16 = vpack.c.bf16 %v294_v9, %v293_v8 }
 0x160   :  { %4570 = vmatpush3.bf16.msra.mxu0 %v4569_v5  ;;  %v386_v13 = vld [vmem:[#allocation6 + $0x18] sm:$0xff]  ;;  %v385_v15 = vld [vmem:[#allocation6 + $0x10] sm:$0xff]  ;;  %v388_v19 = vld [vmem:[#allocation6 + $0x28] sm:$0xff]  ;;  %v4578_v27 = vpack.c.bf16 %v296_v12, %v295_v11 }
 0x161   :  { %4571 = vmatprep.subr.bf16.mxu0 %v6409_v0  ;;  %v4592_v17 = vpack.c.bf16 %v386_v13, %v384_v10  ;;  %v4594_v18 = vpack.c.bf16 %v385_v15, %v383_v14  ;;  %v390_v20 = vld [vmem:[#allocation6 + $0x38] sm:$0xff]  ;;  %v387_v21 = vld [vmem:[#allocation6 + $0x20] sm:$0xff]  ;;  %v389_v23 = vld [vmem:[#allocation6 + $0x30] sm:$0xff] }
 0x162   :  { %v4596_v22 = vpack.c.bf16 %v390_v20, %v388_v19  ;;  %v392_v24 = vld [vmem:[#allocation6 + $0x48] sm:$0xff]  ;;  %v394_v25 = vld [vmem:[#allocation6 + $0x58] sm:$0xff]  ;;  %v4598_v26 = vpack.c.bf16 %v389_v23, %v387_v21  ;;  %v391_v30 = vld [vmem:[#allocation6 + $0x40] sm:$0xff] }
 0x163   :  { %4593 = vmatprep.subr.bf16.mxu1 %v4592_v17  ;;  %v297_v28 = vld [vmem:[#allocation2 + $0x40] sm:$0xff]  ;;  %v4600_v29 = vpack.c.bf16 %v394_v25, %v392_v24  ;;  %v393_v31 = vld [vmem:[#allocation6 + $0x50] sm:$0xff]  ;;  %v298_v32 = vld [vmem:[#allocation2 + $0x48] sm:$0xff] }
 0x164   :  { %4573 = vmatpush3.bf16.msra.mxu0 %v4572_v7  ;;  %4595 = vmatpush1.bf16.msra.mxu1 %v4594_v18  ;;  %v396_v33 = vld [vmem:[#allocation6 + $0x68] sm:$0xff]  ;;  %v398_v34 = vld [vmem:[#allocation6 + $0x78] sm:$0xff]  ;;  %v4602_v35 = vpack.c.bf16 %v393_v31, %v391_v30  ;;  %v4581_v36 = vpack.c.bf16 %v298_v32, %v297_v28  ;;  %v395_v39 = vld [vmem:[#allocation6 + $0x60] sm:$0xff] }
 0x165   :  { %4574 = vmatprep.subr.bf16.mxu0 %v6409_v0  ;;  %4597 = vmatprep.subr.bf16.mxu1 %v4596_v22  ;;  %v299_v37 = vld [vmem:[#allocation2 + $0x50] sm:$0xff]  ;;  %v4604_v38 = vpack.c.bf16 %v398_v34, %v396_v33  ;;  %v300_v41 = vld [vmem:[#allocation2 + $0x58] sm:$0xff]  ;;  %v301_v46 = vld [vmem:[#allocation2 + $0x60] sm:$0xff] }
 0x166   :  { %v397_v40 = vld [vmem:[#allocation6 + $0x70] sm:$0xff]  ;;  %v400_v42 = vld [vmem:[#allocation6 + $0x88] sm:$0xff]  ;;  %v402_v43 = vld [vmem:[#allocation6 + $0x98] sm:$0xff]  ;;  %v4584_v45 = vpack.c.bf16 %v300_v41, %v299_v37 }
 0x167   :  { %v4606_v44 = vpack.c.bf16 %v397_v40, %v395_v39  ;;  %v4608_v47 = vpack.c.bf16 %v402_v43, %v400_v42  ;;  %v399_v48 = vld [vmem:[#allocation6 + $0x80] sm:$0xff]  ;;  %v401_v49 = vld [vmem:[#allocation6 + $0x90] sm:$0xff]  ;;  %v404_v51 = vld [vmem:[#allocation6 + $0xa8] sm:$0xff] }
 0x168   :  { %4576 = vmatpush3.bf16.msra.mxu0 %v4575_v16  ;;  %4599 = vmatpush1.bf16.msra.mxu1 %v4598_v26  ;;  %v302_v50 = vld [vmem:[#allocation2 + $0x68] sm:$0xff]  ;;  %v406_v52 = vld [vmem:[#allocation6 + $0xb8] sm:$0xff]  ;;  %v4610_v53 = vpack.c.bf16 %v401_v49, %v399_v48  ;;  %v303_v55 = vld [vmem:[#allocation2 + $0x70] sm:$0xff] }
 0x169   :  { %4577 = vmatprep.subr.bf16.mxu0 %v6409_v0  ;;  %4601 = vmatprep.subr.bf16.mxu1 %v4600_v29  ;;  %v4587_v54 = vpack.c.bf16 %v302_v50, %v301_v46  ;;  %v4612_v56 = vpack.c.bf16 %v406_v52, %v404_v51  ;;  %v403_v57 = vld [vmem:[#allocation6 + $0xa0] sm:$0xff]  ;;  %v405_v58 = vld [vmem:[#allocation6 + $0xb0] sm:$0xff]  ;;  %v408_v60 = vld [vmem:[#allocation6 + $0xc8] sm:$0xff] }
 0x16a   :  { %v304_v59 = vld [vmem:[#allocation2 + $0x78] sm:$0xff]  ;;  %v4614_v62 = vpack.c.bf16 %v405_v58, %v403_v57  ;;  %v407_v3 = vld [vmem:[#allocation6 + $0xc0] sm:$0xff]  ;;  %v412_v7 = vld [vmem:[#allocation6 + $0xe8] sm:$0xff] }
 0x16b   :  { %v410_v61 = vld [vmem:[#allocation6 + $0xd8] sm:$0xff]  ;;  %v4590_v63 = vpack.c.bf16 %v304_v59, %v303_v55  ;;  %v409_v4 = vld [vmem:[#allocation6 + $0xd0] sm:$0xff]  ;;  %v411_v10 = vld [vmem:[#allocation6 + $0xe0] sm:$0xff] }
 0x16c   :  { %4579 = vmatpush3.bf16.msra.mxu0 %v4578_v27  ;;  %4603 = vmatpush1.bf16.msra.mxu1 %v4602_v35  ;;  %v4616_v2 = vpack.c.bf16 %v410_v61, %v408_v60  ;;  %v4618_v5 = vpack.c.bf16 %v409_v4, %v407_v3  ;;  %v288_v6 = vld [vmem:[%s6973_s27] sm:$0xff]  ;;  %v413_v11 = vld [vmem:[#allocation6 + $0xf0] sm:$0xff] }
 0x16d   :  { %4580 = vmatprep.subr.bf16.mxu0 %v6409_v0  ;;  %4605 = vmatprep.subr.bf16.mxu1 %v4604_v38  ;;  %v414_v8 = vld [vmem:[#allocation6 + $0xf8] sm:$0xff]  ;;  %v4622_v12 = vpack.c.bf16 %v413_v11, %v411_v10  ;;  %v501_v13 = vld [vmem:[#allocation9 + $0x8] sm:$0xff]  ;;  %v504_v14 = vld [vmem:[#allocation9 + $0x20] sm:$0xff] }
 0x16e   :  { %v4620_v9 = vpack.c.bf16 %v414_v8, %v412_v7  ;;  %v500_v15 = vld [vmem:[#allocation9] sm:$0xff]  ;;  %v4624_v16 = vpack.c.bf16 %v504_v14, %v501_v13  ;;  %v503_v17 = vld [vmem:[#allocation9 + $0x18] sm:$0xff]  ;;  %v510_v19 = vld [vmem:[#allocation9 + $0x50] sm:$0xff] }
 0x16f   :  { %v507_v18 = vld [vmem:[#allocation9 + $0x38] sm:$0xff]  ;;  %v4626_v20 = vpack.c.bf16 %v503_v17, %v500_v15  ;;  %v506_v22 = vld [vmem:[#allocation9 + $0x30] sm:$0xff]  ;;  %v509_v23 = vld [vmem:[#allocation9 + $0x48] sm:$0xff] }
 0x170   :  { %4582 = vmatpush3.bf16.msra.mxu0 %v4581_v36  ;;  %4607 = vmatpush1.bf16.msra.mxu1 %v4606_v44  ;;  %v4628_v21 = vpack.c.bf16 %v510_v19, %v507_v18  ;;  %v513_v24 = vld [vmem:[#allocation9 + $0x68] sm:$0xff]  ;;  %v516_v25 = vld [vmem:[#allocation9 + $0x80] sm:$0xff]  ;;  %v4630_v26 = vpack.c.bf16 %v509_v23, %v506_v22  ;;  %v515_v29 = vld [vmem:[#allocation9 + $0x78] sm:$0xff] }
 0x171   :  { %4583 = vmatprep.subr.bf16.mxu0 %v6409_v0  ;;  %4609 = vmatprep.subr.bf16.mxu1 %v4608_v47  ;;  %v4632_v27 = vpack.c.bf16 %v516_v25, %v513_v24  ;;  %v512_v28 = vld [vmem:[#allocation9 + $0x60] sm:$0xff]  ;;  %v519_v30 = vld [vmem:[#allocation9 + $0x98] sm:$0xff]  ;;  %v522_v31 = vld [vmem:[#allocation9 + $0xb0] sm:$0xff] }
 0x172   :  { %v4634_v32 = vpack.c.bf16 %v515_v29, %v512_v28  ;;  %v4636_v33 = vpack.c.bf16 %v522_v31, %v519_v30  ;;  %v518_v34 = vld [vmem:[#allocation9 + $0x90] sm:$0xff]  ;;  %v521_v35 = vld [vmem:[#allocation9 + $0xa8] sm:$0xff]  ;;  %v528_v37 = vld [vmem:[#allocation9 + $0xe0] sm:$0xff] }
 0x173   :  { %v525_v36 = vld [vmem:[#allocation9 + $0xc8] sm:$0xff]  ;;  %v550_v38 = vld [vmem:[#allocation9 + $0x190] sm:$0xff]  ;;  %v4638_v40 = vpack.c.bf16 %v521_v35, %v518_v34  ;;  %v524_v43 = vld [vmem:[#allocation9 + $0xc0] sm:$0xff] }
 0x174   :  { %4585 = vmatpush3.bf16.msra.mxu0 %v4584_v45  ;;  %4611 = vmatpush1.bf16.msra.mxu1 %v4610_v53  ;;  %v553_v39 = vld [vmem:[#allocation9 + $0x1a8] sm:$0xff]  ;;  %v4640_v42 = vpack.c.bf16 %v528_v37, %v525_v36  ;;  %v527_v44 = vld [vmem:[#allocation9 + $0xd8] sm:$0xff]  ;;  %v534_v46 = vld [vmem:[#allocation9 + $0x110] sm:$0xff] }
 0x175   :  { %4586 = vmatprep.subr.bf16.mxu0 %v6409_v0  ;;  %4613 = vmatprep.subr.bf16.mxu1 %v4612_v56  ;;  %v4688_v41 = vpack.c.bf16 %v553_v39, %v550_v38  ;;  %v531_v45 = vld [vmem:[#allocation9 + $0xf8] sm:$0xff]  ;;  %v4642_v47 = vpack.c.bf16 %v527_v44, %v524_v43  ;;  %v530_v49 = vld [vmem:[#allocation9 + $0xf0] sm:$0xff]  ;;  %v533_v50 = vld [vmem:[#allocation9 + $0x108] sm:$0xff] }
 0x176   :  { %v4644_v48 = vpack.c.bf16 %v534_v46, %v531_v45  ;;  %v537_v51 = vld [vmem:[#allocation9 + $0x128] sm:$0xff]  ;;  %v540_v52 = vld [vmem:[#allocation9 + $0x140] sm:$0xff]  ;;  %v4646_v53 = vpack.c.bf16 %v533_v50, %v530_v49  ;;  %v539_v56 = vld [vmem:[#allocation9 + $0x138] sm:$0xff] }
 0x177   :  { %v536_v55 = vld [vmem:[#allocation9 + $0x120] sm:$0xff]  ;;  %v543_v57 = vld [vmem:[#allocation9 + $0x158] sm:$0xff]  ;;  %v546_v58 = vld [vmem:[#allocation9 + $0x170] sm:$0xff] }
 0x178   :  { %4588 = vmatpush3.bf16.msra.mxu0 %v4587_v54  ;;  %4615 = vmatpush1.bf16.msra.mxu1 %v4614_v62  ;;  %v4648_v54 = vpack.c.bf16 %v540_v52, %v537_v51  ;;  %v4650_v59 = vpack.c.bf16 %v539_v56, %v536_v55  ;;  %v4652_v60 = vpack.c.bf16 %v546_v58, %v543_v57  ;;  %v542_v61 = vld [vmem:[#allocation9 + $0x150] sm:$0xff]  ;;  %v545_v62 = vld [vmem:[#allocation9 + $0x168] sm:$0xff]  ;;  %v555_v7 = vld [vmem:[#allocation9 + $0x1b8] sm:$0xff] }
 0x179   :  { %4589 = vmatprep.subr.bf16.mxu0 %v6409_v0  ;;  %4617 = vmatprep.subr.bf16.mxu1 %v4616_v2  ;;  %v552_v2 = vld [vmem:[#allocation9 + $0x1a0] sm:$0xff]  ;;  %v4654_v3 = vpack.c.bf16 %v545_v62, %v542_v61  ;;  %v558_v8 = vld [vmem:[#allocation9 + $0x1d0] sm:$0xff]  ;;  %v561_v13 = vld [vmem:[#allocation9 + $0x1e8] sm:$0xff] }
 0x17a   :  { %v4660_v10 = vpack.c.bf16 %v558_v8, %v555_v7  ;;  %v554_v11 = vld [vmem:[#allocation9 + $0x1b0] sm:$0xff]  ;;  %v564_v14 = vld [vmem:[#allocation9 + $0x200] sm:$0xff]  ;;  %v563_v18 = vld [vmem:[#allocation9 + $0x1f8] sm:$0xff] }
 0x17b   :  { %v560_v17 = vld [vmem:[#allocation9 + $0x1e0] sm:$0xff]  ;;  %v567_v19 = vld [vmem:[#allocation9 + $0x218] sm:$0xff]  ;;  %v566_v23 = vld [vmem:[#allocation9 + $0x210] sm:$0xff] }
 0x17c   :  { %4591 = vmatpush3.bf16.msra.mxu0 %v4590_v63  ;;  %4619 = vmatpush1.bf16.msra.mxu1 %v4618_v5  ;;  %v549_v63 = vld [vmem:[#allocation9 + $0x188] sm:$0xff]  ;;  %v548_v5 = vld [vmem:[#allocation9 + $0x180] sm:$0xff]  ;;  %v575_v30 = vld [vmem:[#allocation9 + $0x258] sm:$0xff] }
 0x17d   :  { %4621 = vmatprep.subr.bf16.mxu1 %v4620_v9  ;;  %4625 = vmatprep.subr.bf16.mxu0 %v4624_v16  ;;  %v4656_v4 = vpack.c.bf16 %v552_v2, %v549_v63  ;;  %v4664_v16 = vpack.c.bf16 %v564_v14, %v561_v13  ;;  %v569_v24 = vld [vmem:[#allocation9 + $0x228] sm:$0xff]  ;;  %v572_v29 = vld [vmem:[#allocation9 + $0x240] sm:$0xff]  ;;  %v579_v31 = vld [vmem:[#allocation9 + $0x278] sm:$0xff] }
 0x17e   :  { %v573_v25 = vld [vmem:[#allocation9 + $0x248] sm:$0xff]  ;;  %v578_v35 = vld [vmem:[#allocation9 + $0x270] sm:$0xff]  ;;  %v588_v38 = vld [vmem:[#allocation9 + $0x2c0] sm:$0xff] }
 0x17f   :  { %4426 = vmatmul.mubr.f32.vlgmr.msra.gmra.mrb[0].mxu0 %v288_v6  ;;  %v551_v6 = vld [vmem:[#allocation9 + $0x198] sm:$0xff]  ;;  %v581_v36 = vld [vmem:[#allocation9 + $0x288] sm:$0xff]  ;;  %v556_v45 = vld [vmem:[#allocation9 + $0x1c0] sm:$0xff] }
 0x180   :  { %4623 = vmatpush1.bf16.msra.mxu1 %v4622_v12  ;;  %4627 = vmatpush1.bf16.msra.mxu0 %v4626_v20  ;;  %v4658_v9 = vpack.c.bf16 %v551_v6, %v548_v5  ;;  %v557_v12 = vld [vmem:[#allocation9 + $0x1c8] sm:$0xff]  ;;  %v570_v20 = vld [vmem:[#allocation9 + $0x230] sm:$0xff]  ;;  %v4678_v39 = vpack.c.bf16 %v581_v36, %v578_v35  ;;  %v559_v46 = vld [vmem:[#allocation9 + $0x1d8] sm:$0xff] }
 0x181   :  { %4629 = vmatprep.subr.bf16.mxu0 %v4628_v21  ;;  %4689 = vmatprep.subr.bf16.mxu1 %v4688_v41  ;;  %v4662_v15 = vpack.c.bf16 %v557_v12, %v554_v11  ;;  %v4666_v21 = vpack.c.bf16 %v563_v18, %v560_v17  ;;  %v4668_v22 = vpack.c.bf16 %v570_v20, %v567_v19  ;;  %v585_v37 = vld [vmem:[#allocation9 + $0x2a8] sm:$0xff]  ;;  %v4026_v41 = vld [vmem:[#allocation4] ss:$0 sm:$0xff]  ;;  %v508_v52 = vld [vmem:[#allocation9 + $0x40] sm:$0xff] }
 0x182   :  { %v505_v43 = vld [vmem:[#allocation9 + $0x28] sm:$0xff]  ;;  %v4692_v51 = vpack.c.bf16 %v559_v46, %v556_v45  ;;  %v514_v58 = vld [vmem:[#allocation9 + $0x70] sm:$0xff]  ;;  %v571_v61 = vld [vmem:[#allocation9 + $0x238] sm:$0xff] }
 0x183   :  { %v565_v55 = vld [vmem:[#allocation9 + $0x208] sm:$0xff]  ;;  %v520_v2 = vld [vmem:[#allocation9 + $0xa0] sm:$0xff]  ;;  %v526_v8 = vld [vmem:[#allocation9 + $0xd0] sm:$0xff] }
 0x184   :  { %4631 = vmatpush1.bf16.msra.mxu0 %v4630_v26  ;;  %v576_v26 = vld [vmem:[#allocation9 + $0x260] sm:$0xff]  ;;  %v577_v5 = vld [vmem:[#allocation9 + $0x268] sm:$0xff]  ;;  %v583_v11 = vld [vmem:[#allocation9 + $0x298] sm:$0xff] }
 0x185   :  { %4633 = vmatprep.subr.bf16.mxu0 %v4632_v27  ;;  %v4670_v27 = vpack.c.bf16 %v569_v24, %v566_v23  ;;  %v4672_v28 = vpack.c.bf16 %v576_v26, %v573_v25  ;;  %v532_v14 = vld [vmem:[#allocation9 + $0x100] sm:$0xff]  ;;  %v589_v17 = vld [vmem:[#allocation9 + $0x2c8] sm:$0xff]  ;;  %v591_v26 = vld [vmem:[#allocation9 + $0x2d8] sm:$0xff] }
 0x186   :  { %v584_v20 = vld [vmem:[#allocation9 + $0x2a0] sm:$0xff]  ;;  %v541_v24 = vld [vmem:[#allocation9 + $0x148] sm:$0xff]  ;;  %v547_v36 = vld [vmem:[#allocation9 + $0x178] sm:$0xff] }
 0x187   :  { %v544_v35 = vld [vmem:[#allocation9 + $0x160] sm:$0xff] }
 0x188   :  { %4635 = vmatpush1.bf16.msra.mxu0 %v4634_v32  ;;  %v582_v32 = vld [vmem:[#allocation9 + $0x290] sm:$0xff] }
 0x189   :  { %4637 = vmatprep.subr.bf16.mxu0 %v4636_v33  ;;  %v4674_v33 = vpack.c.bf16 %v575_v30, %v572_v29  ;;  %v4676_v34 = vpack.c.bf16 %v582_v32, %v579_v31  ;;  %v595_v30 = vld [vmem:[#allocation9 + $0x2f8] sm:$0xff]  ;;  %v590_v31 = vld [vmem:[#allocation9 + $0x2d0] sm:$0xff]  ;;  %v593_v32 = vld [vmem:[#allocation9 + $0x2e8] sm:$0xff] }
 0x18c   :  { %4639 = vmatpush1.bf16.msra.mxu0 %v4638_v40  ;;  %v4680_v40 = vpack.c.bf16 %v588_v38, %v585_v37  ;;  %v4718_v37 = vpack.c.bf16 %v547_v36, %v544_v35  ;;  %v758_v38 = vld [vmem:[#allocation12 + $0x8] sm:$0xff]  ;;  %v780_v35 = vld [vmem:[#allocation12 + $0xb8] sm:$0xff]  ;;  %v785_v36 = vld [vmem:[#allocation12 + $0xe0] sm:$0xff] }
 0x18d   :  { %4641 = vmatprep.subr.bf16.mxu0 %v4640_v42  ;;  %v502_v42 = vld [vmem:[#allocation9 + $0x10] sm:$0xff] }
 0x18e   :  { %v4690_v49 = vpack.c.bf16 %v505_v43, %v502_v42  ;;  %v810_v42 = vld [vmem:[#allocation12 + $0x1a8] sm:$0xff] }
 0x190   :  { %4643 = vmatpush1.bf16.msra.mxu0 %v4642_v47 }
 0x191   :  { %4645 = vmatprep.subr.bf16.mxu0 %v4644_v48 }
 0x194   :  { %4647 = vmatpush1.bf16.msra.mxu0 %v4646_v53  ;;  %v511_v53 = vld [vmem:[#allocation9 + $0x58] sm:$0xff] }
 0x195   :  { %4649 = vmatprep.subr.bf16.mxu0 %v4648_v54  ;;  %v562_v54 = vld [vmem:[#allocation9 + $0x1f0] sm:$0xff]  ;;  %v4694_v56 = vpack.c.bf16 %v511_v53, %v508_v52  ;;  %v757_v52 = vld [vmem:[#allocation12] sm:$0xff]  ;;  %v760_v53 = vld [vmem:[#allocation12 + $0x18] sm:$0xff] }
 0x196   :  { %v4696_v57 = vpack.c.bf16 %v565_v55, %v562_v54 }
 0x198   :  { %4651 = vmatpush1.bf16.msra.mxu0 %v4650_v59  ;;  %v517_v59 = vld [vmem:[#allocation9 + $0x88] sm:$0xff] }
 0x199   :  { %4653 = vmatprep.subr.bf16.mxu0 %v4652_v60  ;;  %v568_v60 = vld [vmem:[#allocation9 + $0x220] sm:$0xff]  ;;  %v4698_v62 = vpack.c.bf16 %v517_v59, %v514_v58  ;;  %v762_v58 = vld [vmem:[#allocation12 + $0x28] sm:$0xff] }
 0x19a   :  { %v4700_v63 = vpack.c.bf16 %v571_v61, %v568_v60  ;;  %v767_v60 = vld [vmem:[#allocation12 + $0x50] sm:$0xff]  ;;  %v813_v61 = vld [vmem:[#allocation12 + $0x1c0] sm:$0xff] }
 0x19c   :  { %4655 = vmatpush1.bf16.msra.mxu0 %v4654_v3  ;;  %v523_v3 = vld [vmem:[#allocation9 + $0xb8] sm:$0xff] }
 0x19d   :  { %4657 = vmatprep.subr.bf16.mxu0 %v4656_v4  ;;  %v574_v4 = vld [vmem:[#allocation9 + $0x250] sm:$0xff]  ;;  %v4702_v6 = vpack.c.bf16 %v523_v3, %v520_v2  ;;  %v4722_v2 = vpack.c.bf16 %v760_v53, %v757_v52  ;;  %v837_v52 = vld [vmem:[#allocation12 + $0x280] sm:$0xff]  ;;  %v840_v53 = vld [vmem:[#allocation12 + $0x298] sm:$0xff] }
 0x19e   :  { %v4704_v7 = vpack.c.bf16 %v577_v5, %v574_v4  ;;  %v763_v3 = vld [vmem:[#allocation12 + $0x30] sm:$0xff]  ;;  %v766_v4 = vld [vmem:[#allocation12 + $0x48] sm:$0xff] }
 0x1a0   :  { %4659 = vmatpush1.bf16.msra.mxu0 %v4658_v9  ;;  %v529_v9 = vld [vmem:[#allocation9 + $0xe8] sm:$0xff] }
 0x1a1   :  { %4661 = vmatprep.subr.bf16.mxu0 %v4660_v10  ;;  %v580_v10 = vld [vmem:[#allocation9 + $0x280] sm:$0xff]  ;;  %v4706_v12 = vpack.c.bf16 %v529_v9, %v526_v8  ;;  %v770_v8 = vld [vmem:[#allocation12 + $0x68] sm:$0xff] }
 0x1a2   :  { %v4708_v13 = vpack.c.bf16 %v583_v11, %v580_v10  ;;  %v765_v10 = vld [vmem:[#allocation12 + $0x40] sm:$0xff]  ;;  %v768_v11 = vld [vmem:[#allocation12 + $0x58] sm:$0xff] }
 0x1a4   :  { %4663 = vmatpush1.bf16.msra.mxu0 %v4662_v15  ;;  %v535_v15 = vld [vmem:[#allocation9 + $0x118] sm:$0xff] }
 0x1a5   :  { %4665 = vmatprep.subr.bf16.mxu0 %v4664_v16  ;;  %v586_v16 = vld [vmem:[#allocation9 + $0x2b0] sm:$0xff]  ;;  %v4710_v18 = vpack.c.bf16 %v535_v15, %v532_v14  ;;  %v4726_v15 = vpack.c.bf16 %v766_v4, %v763_v3 }
 0x1a6   :  { %v4712_v19 = vpack.c.bf16 %v589_v17, %v586_v16  ;;  %v822_v14 = vld [vmem:[#allocation12 + $0x208] sm:$0xff]  ;;  %v769_v16 = vld [vmem:[#allocation12 + $0x60] sm:$0xff]  ;;  %v772_v17 = vld [vmem:[#allocation12 + $0x78] sm:$0xff] }
 0x1a7   :  { %v846_v3 = vld [vmem:[#allocation12 + $0x2c8] sm:$0xff] }
 0x1a8   :  { %4667 = vmatpush1.bf16.msra.mxu0 %v4666_v21  ;;  %v587_v21 = vld [vmem:[#allocation9 + $0x2b8] sm:$0xff] }
 0x1a9   :  { %4669 = vmatprep.subr.bf16.mxu0 %v4668_v22  ;;  %v538_v22 = vld [vmem:[#allocation9 + $0x130] sm:$0xff]  ;;  %v4682_v23 = vpack.c.bf16 %v587_v21, %v584_v20  ;;  %v776_v20 = vld [vmem:[#allocation12 + $0x98] sm:$0xff] }
 0x1aa   :  { %v4714_v25 = vpack.c.bf16 %v541_v24, %v538_v22  ;;  %v771_v22 = vld [vmem:[#allocation12 + $0x70] sm:$0xff] }
 0x1ab   :  { %v779_v24 = vld [vmem:[#allocation12 + $0xb0] sm:$0xff] }
 0x1ac   :  { %4671 = vmatpush1.bf16.msra.mxu0 %v4670_v27  ;;  %v594_v27 = vld [vmem:[#allocation9 + $0x2f0] sm:$0xff] }
 0x1ad   :  { %4673 = vmatprep.subr.bf16.mxu0 %v4672_v28  ;;  %v592_v28 = vld [vmem:[#allocation9 + $0x2e0] sm:$0xff]  ;;  %v4684_v29 = vpack.c.bf16 %v594_v27, %v591_v26  ;;  %v4730_v27 = vpack.c.bf16 %v772_v17, %v769_v16  ;;  %v799_v17 = vld [vmem:[#allocation12 + $0x150] sm:$0xff] }
 0x1ae   :  { %v828_v26 = vld [vmem:[#allocation12 + $0x238] sm:$0xff] }
 0x1b0   :  { %4675 = vmatpush1.bf16.msra.mxu0 %v4674_v33  ;;  %v4716_v33 = vpack.c.bf16 %v595_v30, %v592_v28  ;;  %v775_v28 = vld [vmem:[#allocation12 + $0x90] sm:$0xff] }
 0x1b1   :  { %4677 = vmatprep.subr.bf16.mxu0 %v4676_v34  ;;  %v4686_v34 = vpack.c.bf16 %v593_v32, %v590_v31  ;;  %v4732_v31 = vpack.c.bf16 %v779_v24, %v776_v20  ;;  %v782_v32 = vld [vmem:[#allocation12 + $0xc8] sm:$0xff]  ;;  %v809_v20 = vld [vmem:[#allocation12 + $0x1a0] sm:$0xff]  ;;  %v808_v24 = vld [vmem:[#allocation12 + $0x198] sm:$0xff] }
 0x1b4   :  { %4679 = vmatpush1.bf16.msra.mxu0 %v4678_v39  ;;  %v761_v39 = vld [vmem:[#allocation12 + $0x20] sm:$0xff] }
 0x1b5   :  { %4681 = vmatprep.subr.bf16.mxu0 %v4680_v40  ;;  %v4720_v40 = vpack.c.bf16 %v761_v39, %v758_v38  ;;  %v834_v38 = vld [vmem:[#allocation12 + $0x268] sm:$0xff] }
 0x1b8   :  { %4683 = vmatpush1.bf16.msra.mxu0 %v4682_v23  ;;  %v774_v23 = vld [vmem:[#allocation12 + $0x88] sm:$0xff] }
 0x1b9   :  { %4685 = vmatprep.subr.bf16.mxu0 %v4684_v29  ;;  %v778_v29 = vld [vmem:[#allocation12 + $0xa8] sm:$0xff]  ;;  %v4826_v30 = vpack.c.bf16 %v774_v23, %v771_v22  ;;  %v805_v23 = vld [vmem:[#allocation12 + $0x180] sm:$0xff] }
 0x1ba   :  { %v4734_v39 = vpack.c.bf16 %v778_v29, %v775_v28  ;;  %v811_v29 = vld [vmem:[#allocation12 + $0x1b0] sm:$0xff] }
 0x1bc   :  { %4687 = vmatpush1.bf16.msra.mxu0 %v4686_v34  ;;  %v777_v34 = vld [vmem:[#allocation12 + $0xa0] sm:$0xff] }
 0x252   :  { %v378_v44 = vpop.f32.mrb[0].mxu0 }
 0x253   :  { %v379_v47 = vadd.f32 %v4026_v41, %v378_v44  ;;  %v4427_v48 = vpop.f32.mrb[1].mxu0  ;;  %v807_v41 = vld [vmem:[#allocation12 + $0x190] sm:$0xff]  ;;  %v417_v44 = vlaneseq }
 0x254   :  { %v4816_v43 = vpack.c.bf16 %v810_v42, %v807_v41  ;;  %v784_v41 = vld [vmem:[#allocation12 + $0xd8] sm:$0xff]  ;;  %v4830_v42 = vpack.c.bf16 %v780_v35, %v777_v34  ;;  %v817_v35 = vld [vmem:[#allocation12 + $0x1e0] sm:$0xff] }
 0x255   :  { %v382_v50 = vmax.f32 %v379_v47, 0.0  ;;  %v6763_v45 = vshrl.u32 %v417_v44, 7  ;;  %v415_v47 = vld [vmem:[#allocation7] sm:$0x3] }
 0x256   :  { %4817 = vmatprep.subr.bf16.mxu0 %v4816_v43  ;;  %v4736_v43 = vpack.c.bf16 %v785_v36, %v782_v32  ;;  %v788_v44 = vld [vmem:[#allocation12 + $0xf8] sm:$0xff]  ;;  %v821_v32 = vld [vmem:[#allocation12 + $0x200] sm:$0xff] }
 0x257   :  { %492 = vmatmul.mubr.f32.vlgmr.msra.gmra.mrb[0].mxu1 %v382_v50  ;;  %v6766_v46 = vsub.s32 0, %v6763_v45  ;;  %v6769_v48 = vsub.s32 1, %v6763_v45  ;;  %v820_v36 = vld [vmem:[#allocation12 + $0x1f8] sm:$0xff] }
 0x258   :  { %4691 = vmatpush3.bf16.msra.mxu1 %v4690_v49 }
 0x259   :  { %4693 = vmatprep.subr.bf16.mxu1 %v4692_v51  ;;  %v420_v49 = vrot.slane %v415_v47, %v6766_v46  ;;  %v424_v50 = vrot.slane %v415_v47, %v6769_v48 }
 0x25c   :  { %4695 = vmatpush3.bf16.msra.mxu1 %v4694_v56  ;;  %v764_v56 = vld [vmem:[#allocation12 + $0x38] sm:$0xff] }
 0x25d   :  { %4697 = vmatprep.subr.bf16.mxu1 %v4696_v57  ;;  %v759_v57 = vld [vmem:[#allocation12 + $0x10] sm:$0xff] }
 0x25e   :  { %v4818_v5 = vpack.c.bf16 %v762_v58, %v759_v57 }
 0x260   :  { %4699 = vmatpush3.bf16.msra.mxu1 %v4698_v62  ;;  %v816_v62 = vld [vmem:[#allocation12 + $0x1d8] sm:$0xff] }
 0x261   :  { %4701 = vmatprep.subr.bf16.mxu1 %v4700_v63  ;;  %v4820_v9 = vpack.c.bf16 %v816_v62, %v813_v61  ;;  %v789_v61 = vld [vmem:[#allocation12 + $0x100] sm:$0xff]  ;;  %v792_v62 = vld [vmem:[#allocation12 + $0x118] sm:$0xff] }
 0x264   :  { %4703 = vmatpush3.bf16.msra.mxu1 %v4702_v6 }
 0x265   :  { %4705 = vmatprep.subr.bf16.mxu1 %v4704_v7  ;;  %v4724_v7 = vpack.c.bf16 %v767_v60, %v764_v56  ;;  %v790_v56 = vld [vmem:[#allocation12 + $0x108] sm:$0xff]  ;;  %v4836_v60 = vpack.c.bf16 %v840_v53, %v837_v52  ;;  %v836_v52 = vld [vmem:[#allocation12 + $0x278] sm:$0xff]  ;;  %v839_v53 = vld [vmem:[#allocation12 + $0x290] sm:$0xff] }
 0x268   :  { %4707 = vmatpush3.bf16.msra.mxu1 %v4706_v12  ;;  %v773_v12 = vld [vmem:[#allocation12 + $0x80] sm:$0xff] }
 0x269   :  { %4709 = vmatprep.subr.bf16.mxu1 %v4708_v13  ;;  %v819_v13 = vld [vmem:[#allocation12 + $0x1f0] sm:$0xff] }
 0x26a   :  { %v4824_v21 = vpack.c.bf16 %v822_v14, %v819_v13  ;;  %v803_v13 = vld [vmem:[#allocation12 + $0x170] sm:$0xff] }
 0x26c   :  { %4711 = vmatpush3.bf16.msra.mxu1 %v4710_v18  ;;  %v4822_v18 = vpack.c.bf16 %v768_v11, %v765_v10  ;;  %v795_v10 = vld [vmem:[#allocation12 + $0x130] sm:$0xff]  ;;  %v798_v11 = vld [vmem:[#allocation12 + $0x148] sm:$0xff] }
 0x26d   :  { %4713 = vmatprep.subr.bf16.mxu1 %v4712_v19  ;;  %v4728_v19 = vpack.c.bf16 %v773_v12, %v770_v8  ;;  %v796_v8 = vld [vmem:[#allocation12 + $0x138] sm:$0xff] }
 0x26e   :  { %v800_v12 = vld [vmem:[#allocation12 + $0x158] sm:$0xff] }
 0x26f   :  { %v4748_v16 = vpack.c.bf16 %v803_v13, %v800_v12  ;;  %v801_v12 = vld [vmem:[#allocation12 + $0x160] sm:$0xff]  ;;  %v804_v13 = vld [vmem:[#allocation12 + $0x178] sm:$0xff] }
 0x270   :  { %4715 = vmatpush3.bf16.msra.mxu1 %v4714_v25  ;;  %v825_v25 = vld [vmem:[#allocation12 + $0x220] sm:$0xff] }
 0x271   :  { %4717 = vmatprep.subr.bf16.mxu1 %v4716_v33  ;;  %v4828_v33 = vpack.c.bf16 %v828_v26, %v825_v25  ;;  %v812_v25 = vld [vmem:[#allocation12 + $0x1b8] sm:$0xff]  ;;  %v815_v26 = vld [vmem:[#allocation12 + $0x1d0] sm:$0xff] }
 0x272   :  { %v4756_v28 = vpack.c.bf16 %v815_v26, %v812_v25 }
 0x274   :  { %4719 = vmatpush3.bf16.msra.mxu1 %v4718_v37  ;;  %v831_v37 = vld [vmem:[#allocation12 + $0x250] sm:$0xff] }
 0x275   :  { %4721 = vmatprep.subr.bf16.mxu1 %v4720_v40  ;;  %v781_v40 = vld [vmem:[#allocation12 + $0xc0] sm:$0xff]  ;;  %v4832_v47 = vpack.c.bf16 %v834_v38, %v831_v37  ;;  %v824_v37 = vld [vmem:[#allocation12 + $0x218] sm:$0xff]  ;;  %v827_v38 = vld [vmem:[#allocation12 + $0x230] sm:$0xff] }
 0x32a   :  { %v493_v51 = vpop.f32.mrb[0].mxu1 }
 0x32b   :  { %v494_v54 = vadd.f32 %v493_v51, %v420_v49  ;;  %v495_v55 = vpop.f32.mrb[1].mxu1  ;;  %v783_v49 = vld [vmem:[#allocation12 + $0xd0] sm:$0xff] }
 0x32c   :  { %v496_v59 = vadd.f32 %v495_v55, %v424_v50  ;;  %v786_v50 = vld [vmem:[#allocation12 + $0xe8] sm:$0xff]  ;;  %v791_v51 = vld [vmem:[#allocation12 + $0x110] sm:$0xff] }
 0x32d   :  { %v498_v6 = vmax.f32 %v494_v54, 0.0  ;;  %v4738_v54 = vpack.c.bf16 %v784_v41, %v781_v40  ;;  %v787_v55 = vld [vmem:[#allocation12 + $0xf0] sm:$0xff]  ;;  %v4834_v57 = vpack.c.bf16 %v786_v50, %v783_v49  ;;  %v4740_v58 = vpack.c.bf16 %v791_v51, %v788_v44  ;;  %v833_v44 = vld [vmem:[#allocation12 + $0x260] sm:$0xff]  ;;  %v832_v51 = vld [vmem:[#allocation12 + $0x258] sm:$0xff] }
 0x32e   :  { %v499_v63 = vmax.f32 %v496_v59, 0.0  ;;  %v794_v59 = vld [vmem:[#allocation12 + $0x128] sm:$0xff]  ;;  %v4742_v4 = vpack.c.bf16 %v790_v56, %v787_v55  ;;  %v4764_v40 = vpack.c.bf16 %v827_v38, %v824_v37  ;;  %v823_v41 = vld [vmem:[#allocation12 + $0x210] sm:$0xff]  ;;  %v829_v50 = vld [vmem:[#allocation12 + $0x240] sm:$0xff]  ;;  %v4772_v55 = vpack.c.bf16 %v839_v53, %v836_v52 }
 0x32f   :  { %v835_v56 = vld [vmem:[#allocation12 + $0x270] sm:$0xff]  ;;  %v868_v52 = vld [vmem:[#allocation12 + $0x378] sm:$0xff] }
 0x330   :  { %677 = vmatprep.mubr.f32.mxu0 %v499_v63  ;;  %748 = vmatprep.mubr.f32.mxu1 %v499_v63  ;;  %v797_v63 = vld [vmem:[#allocation12 + $0x140] sm:$0xff]  ;;  %v859_v37 = vld [vmem:[#allocation12 + $0x330] sm:$0xff] }
 0x331   :  { %678 = vmatmul.mubr.f32.vlgmr.msra.gmra.mrb[2].mxu0 %v498_v6  ;;  %749 = vmatmul.mubr.f32.vlgmr.msra.gmra.mrb[2].mxu1 %v498_v6  ;;  %v4838_v6 = vpack.c.bf16 %v792_v62, %v789_v61  ;;  %v841_v62 = vld [vmem:[#allocation12 + $0x2a0] sm:$0xff]  ;;  %v867_v53 = vld [vmem:[#allocation12 + $0x370] sm:$0xff] }
 0x332   :  { %4723 = vmatpush1.bf16.msra.mxu1 %v4722_v2  ;;  %4819 = vmatpush3.bf16.msra.mxu0 %v4818_v5  ;;  %v843_v2 = vld [vmem:[#allocation12 + $0x2b0] sm:$0xff]  ;;  %v793_v5 = vld [vmem:[#allocation12 + $0x120] sm:$0xff] }
 0x333   :  { %4725 = vmatprep.subr.bf16.mxu1 %v4724_v7  ;;  %4821 = vmatprep.subr.bf16.mxu0 %v4820_v9  ;;  %v4744_v7 = vpack.c.bf16 %v797_v63, %v794_v59  ;;  %v4840_v9 = vpack.c.bf16 %v846_v3, %v843_v2  ;;  %v4746_v14 = vpack.c.bf16 %v796_v8, %v793_v5  ;;  %v845_v59 = vld [vmem:[#allocation12 + $0x2c0] sm:$0xff]  ;;  %v844_v63 = vld [vmem:[#allocation12 + $0x2b8] sm:$0xff]  ;;  %v847_v8 = vld [vmem:[#allocation12 + $0x2d0] sm:$0xff] }
 0x334   :  { %v4778_v2 = vpack.c.bf16 %v844_v63, %v841_v62  ;;  %v848_v3 = vld [vmem:[#allocation12 + $0x2d8] sm:$0xff]  ;;  %v849_v5 = vld [vmem:[#allocation12 + $0x2e0] sm:$0xff] }
 0x335   :  { %v873_v62 = vld [vmem:[#allocation12 + $0x3a0] sm:$0xff]  ;;  %v876_v63 = vld [vmem:[#allocation12 + $0x3b8] sm:$0xff] }
 0x336   :  { %4727 = vmatpush1.bf16.msra.mxu1 %v4726_v15  ;;  %4823 = vmatpush3.bf16.msra.mxu0 %v4822_v18  ;;  %v4842_v15 = vpack.c.bf16 %v798_v11, %v795_v10  ;;  %v802_v18 = vld [vmem:[#allocation12 + $0x168] sm:$0xff] }
 0x337   :  { %4729 = vmatprep.subr.bf16.mxu1 %v4728_v19  ;;  %4825 = vmatprep.subr.bf16.mxu0 %v4824_v21  ;;  %v806_v19 = vld [vmem:[#allocation12 + $0x188] sm:$0xff]  ;;  %v4750_v21 = vpack.c.bf16 %v802_v18, %v799_v17  ;;  %v6774_v18 = vld [vmem:[#allocation10] sm:$0x7] }
 0x338   :  { %v4752_v22 = vpack.c.bf16 %v809_v20, %v806_v19  ;;  %v601_v19 = vrot.slane %v6774_v18, %v6766_v46  ;;  %v605_v20 = vrot.slane %v6774_v18, %v6769_v48 }
 0x33a   :  { %4731 = vmatpush1.bf16.msra.mxu1 %v4730_v27  ;;  %4827 = vmatpush3.bf16.msra.mxu0 %v4826_v30  ;;  %v4754_v27 = vpack.c.bf16 %v808_v24, %v805_v23  ;;  %v814_v30 = vld [vmem:[#allocation12 + $0x1c8] sm:$0xff]  ;;  %v853_v23 = vld [vmem:[#allocation12 + $0x300] sm:$0xff] }
 0x33b   :  { %4733 = vmatprep.subr.bf16.mxu1 %v4732_v31  ;;  %4829 = vmatprep.subr.bf16.mxu0 %v4828_v33  ;;  %v818_v31 = vld [vmem:[#allocation12 + $0x1e8] sm:$0xff]  ;;  %v4758_v33 = vpack.c.bf16 %v814_v30, %v811_v29 }
 0x33c   :  { %v4760_v34 = vpack.c.bf16 %v821_v32, %v818_v31  ;;  %v858_v29 = vld [vmem:[#allocation12 + $0x328] sm:$0xff]  ;;  %v860_v32 = vld [vmem:[#allocation12 + $0x338] sm:$0xff] }
 0x33e   :  { %4735 = vmatpush1.bf16.msra.mxu1 %v4734_v39  ;;  %4831 = vmatpush3.bf16.msra.mxu0 %v4830_v42  ;;  %v4762_v39 = vpack.c.bf16 %v820_v36, %v817_v35  ;;  %v826_v42 = vld [vmem:[#allocation12 + $0x228] sm:$0xff] }
 0x33f   :  { %4737 = vmatprep.subr.bf16.mxu1 %v4736_v43  ;;  %4833 = vmatprep.subr.bf16.mxu0 %v4832_v47  ;;  %v830_v43 = vld [vmem:[#allocation12 + $0x248] sm:$0xff]  ;;  %v4766_v47 = vpack.c.bf16 %v826_v42, %v823_v41  ;;  %v861_v41 = vld [vmem:[#allocation12 + $0x340] sm:$0xff]  ;;  %v864_v42 = vld [vmem:[#allocation12 + $0x358] sm:$0xff] }
 0x340   :  { %v4768_v49 = vpack.c.bf16 %v833_v44, %v830_v43  ;;  %v866_v43 = vld [vmem:[#allocation12 + $0x368] sm:$0xff]  ;;  %v869_v44 = vld [vmem:[#allocation12 + $0x380] sm:$0xff] }
 0x342   :  { %4739 = vmatpush1.bf16.msra.mxu1 %v4738_v54  ;;  %4835 = vmatpush3.bf16.msra.mxu0 %v4834_v57  ;;  %v4770_v54 = vpack.c.bf16 %v832_v51, %v829_v50  ;;  %v838_v57 = vld [vmem:[#allocation12 + $0x288] sm:$0xff]  ;;  %v865_v50 = vld [vmem:[#allocation12 + $0x360] sm:$0xff]  ;;  %v4792_v51 = vpack.c.bf16 %v869_v44, %v866_v43  ;;  %v1209_v43 = vld [vmem:[#allocation15 + $0x30] sm:$0xff] }
 0x343   :  { %4741 = vmatprep.subr.bf16.mxu1 %v4740_v58  ;;  %4837 = vmatprep.subr.bf16.mxu0 %v4836_v60  ;;  %v842_v58 = vld [vmem:[#allocation12 + $0x2a8] sm:$0xff]  ;;  %v4774_v60 = vpack.c.bf16 %v838_v57, %v835_v56  ;;  %v875_v56 = vld [vmem:[#allocation12 + $0x3b0] sm:$0xff]  ;;  %v4794_v57 = vpack.c.bf16 %v868_v52, %v865_v50  ;;  %v1206_v44 = vld [vmem:[#allocation15 + $0x18] sm:$0xff] }
 0x344   :  { %v4776_v61 = vpack.c.bf16 %v845_v59, %v842_v58  ;;  %v871_v59 = vld [vmem:[#allocation12 + $0x390] sm:$0xff] }
 0x345   :  { %v1208_v52 = vld [vmem:[#allocation15 + $0x28] sm:$0xff] }
 0x346   :  { %4743 = vmatpush1.bf16.msra.mxu1 %v4742_v4  ;;  %4839 = vmatpush3.bf16.msra.mxu0 %v4838_v6  ;;  %v851_v4 = vld [vmem:[#allocation12 + $0x2f0] sm:$0xff] }
 0x347   :  { %4745 = vmatprep.subr.bf16.mxu1 %v4744_v7  ;;  %4841 = vmatprep.subr.bf16.mxu0 %v4840_v9  ;;  %v4780_v6 = vpack.c.bf16 %v851_v4, %v848_v3  ;;  %v852_v7 = vld [vmem:[#allocation12 + $0x2f8] sm:$0xff]  ;;  %v850_v9 = vld [vmem:[#allocation12 + $0x2e8] sm:$0xff]  ;;  %v881_v3 = vld [vmem:[#allocation12 + $0x3e0] sm:$0xff] }
 0x348   :  { %v4844_v10 = vpack.c.bf16 %v852_v7, %v849_v5  ;;  %v4782_v11 = vpack.c.bf16 %v850_v9, %v847_v8  ;;  %v4858_v5 = vpack.c.bf16 %v876_v63, %v873_v62  ;;  %v880_v8 = vld [vmem:[#allocation12 + $0x3d8] sm:$0xff]  ;;  %v879_v9 = vld [vmem:[#allocation12 + $0x3d0] sm:$0xff] }
 0x349   :  { %v1213_v63 = vld [vmem:[#allocation15 + $0x50] sm:$0xff] }
 0x34a   :  { %4747 = vmatpush1.bf16.msra.mxu1 %v4746_v14  ;;  %4843 = vmatpush3.bf16.msra.mxu0 %v4842_v15  ;;  %v4846_v14 = vpack.c.bf16 %v804_v13, %v801_v12  ;;  %v854_v15 = vld [vmem:[#allocation12 + $0x308] sm:$0xff]  ;;  %v887_v12 = vld [vmem:[#allocation12 + $0x410] sm:$0xff] }
 0x34b   :  { %4749 = vmatprep.subr.bf16.mxu1 %v4748_v16  ;;  %4845 = vmatprep.subr.bf16.mxu0 %v4844_v10  ;;  %v857_v16 = vld [vmem:[#allocation12 + $0x320] sm:$0xff]  ;;  %v882_v10 = vld [vmem:[#allocation12 + $0x3e8] sm:$0xff] }
 0x34c   :  { %v4784_v17 = vpack.c.bf16 %v857_v16, %v854_v15  ;;  %v883_v15 = vld [vmem:[#allocation12 + $0x3f0] sm:$0xff] }
 0x34e   :  { %4751 = vmatpush1.bf16.msra.mxu1 %v4750_v21  ;;  %4847 = vmatpush3.bf16.msra.mxu0 %v4846_v14  ;;  %v4861_v14 = vpack.c.bf16 %v882_v10, %v879_v9  ;;  %v1226_v9 = vld [vmem:[#allocation15 + $0xb8] sm:$0xff]  ;;  %v1231_v10 = vld [vmem:[#allocation15 + $0xe0] sm:$0xff] }
 0x34f   :  { %4753 = vmatprep.subr.bf16.mxu1 %v4752_v22  ;;  %4848 = vmatprep.subr.bf16.mxu0 %v6409_v0 }
 0x352   :  { %4755 = vmatpush1.bf16.msra.mxu1 %v4754_v27  ;;  %v856_v27 = vld [vmem:[#allocation12 + $0x318] sm:$0xff] }
 0x353   :  { %4757 = vmatprep.subr.bf16.mxu1 %v4756_v28  ;;  %v855_v28 = vld [vmem:[#allocation12 + $0x310] sm:$0xff]  ;;  %v4786_v35 = vpack.c.bf16 %v856_v27, %v853_v23 }
 0x354   :  { %v4849_v36 = vpack.c.bf16 %v858_v29, %v855_v28  ;;  %v892_v28 = vld [vmem:[#allocation12 + $0x438] sm:$0xff]  ;;  %v891_v29 = vld [vmem:[#allocation12 + $0x430] sm:$0xff] }
 0x356   :  { %4759 = vmatpush1.bf16.msra.mxu1 %v4758_v33  ;;  %v863_v33 = vld [vmem:[#allocation12 + $0x350] sm:$0xff] }
 0x357   :  { %4761 = vmatprep.subr.bf16.mxu1 %v4760_v34 }
 0x35a   :  { %4763 = vmatpush1.bf16.msra.mxu1 %v4762_v39  ;;  %v4788_v39 = vpack.c.bf16 %v863_v33, %v860_v32  ;;  %v896_v32 = vld [vmem:[#allocation12 + $0x458] sm:$0xff]  ;;  %v899_v33 = vld [vmem:[#allocation12 + $0x470] sm:$0xff] }
 0x35b   :  { %4765 = vmatprep.subr.bf16.mxu1 %v4764_v40  ;;  %v862_v40 = vld [vmem:[#allocation12 + $0x348] sm:$0xff] }
 0x35e   :  { %4767 = vmatpush1.bf16.msra.mxu1 %v4766_v47  ;;  %v4790_v47 = vpack.c.bf16 %v862_v40, %v859_v37  ;;  %v898_v37 = vld [vmem:[#allocation12 + $0x468] sm:$0xff]  ;;  %v897_v40 = vld [vmem:[#allocation12 + $0x460] sm:$0xff] }
 0x35f   :  { %4769 = vmatprep.subr.bf16.mxu1 %v4768_v49  ;;  %v4852_v49 = vpack.c.bf16 %v864_v42, %v861_v41  ;;  %v900_v41 = vld [vmem:[#allocation12 + $0x478] sm:$0xff]  ;;  %v1204_v42 = vld [vmem:[#allocation15 + $0x8] sm:$0xff] }
 0x360   :  { %v4870_v50 = vpack.c.bf16 %v900_v41, %v897_v40  ;;  %v1243_v40 = vld [vmem:[#allocation15 + $0x140] sm:$0xff]  ;;  %v1248_v41 = vld [vmem:[#allocation15 + $0x168] sm:$0xff] }
 0x362   :  { %4771 = vmatpush1.bf16.msra.mxu1 %v4770_v54  ;;  %v870_v54 = vld [vmem:[#allocation12 + $0x388] sm:$0xff] }
 0x363   :  { %4773 = vmatprep.subr.bf16.mxu1 %v4772_v55  ;;  %v872_v55 = vld [vmem:[#allocation12 + $0x398] sm:$0xff]  ;;  %v4855_v58 = vpack.c.bf16 %v870_v54, %v867_v53 }
 0x366   :  { %4775 = vmatpush1.bf16.msra.mxu1 %v4774_v60  ;;  %v4796_v60 = vpack.c.bf16 %v875_v56, %v872_v55  ;;  %v1205_v55 = vld [vmem:[#allocation15 + $0x10] sm:$0xff]  ;;  %v1210_v56 = vld [vmem:[#allocation15 + $0x38] sm:$0xff] }
 0x367   :  { %4777 = vmatprep.subr.bf16.mxu1 %v4776_v61  ;;  %v874_v61 = vld [vmem:[#allocation12 + $0x3a8] sm:$0xff]  ;;  %v4970_v62 = vpack.c.bf16 %v1210_v56, %v1205_v55  ;;  %v1258_v55 = vld [vmem:[#allocation15 + $0x1b8] sm:$0xff] }
 0x368   :  { %v4798_v4 = vpack.c.bf16 %v874_v61, %v871_v59  ;;  %v1216_v59 = vld [vmem:[#allocation15 + $0x68] sm:$0xff] }
 0x36a   :  { %4779 = vmatpush1.bf16.msra.mxu1 %v4778_v2  ;;  %v878_v2 = vld [vmem:[#allocation12 + $0x3c8] sm:$0xff] }
 0x36b   :  { %4781 = vmatprep.subr.bf16.mxu1 %v4780_v6  ;;  %v877_v6 = vld [vmem:[#allocation12 + $0x3c0] sm:$0xff]  ;;  %v4800_v7 = vpack.c.bf16 %v881_v3, %v878_v2 }
 0x36c   :  { %v4802_v13 = vpack.c.bf16 %v880_v8, %v877_v6  ;;  %v1218_v2 = vld [vmem:[#allocation15 + $0x78] sm:$0xff]  ;;  %v1220_v6 = vld [vmem:[#allocation15 + $0x88] sm:$0xff]  ;;  %v1229_v8 = vld [vmem:[#allocation15 + $0xd0] sm:$0xff] }
 0x36e   :  { %4783 = vmatpush1.bf16.msra.mxu1 %v4782_v11  ;;  %v884_v11 = vld [vmem:[#allocation12 + $0x3f8] sm:$0xff] }
 0x36f   :  { %4785 = vmatprep.subr.bf16.mxu1 %v4784_v17  ;;  %v4804_v16 = vpack.c.bf16 %v887_v12, %v884_v11  ;;  %v886_v17 = vld [vmem:[#allocation12 + $0x408] sm:$0xff]  ;;  %v4878_v11 = vpack.c.bf16 %v1218_v2, %v1213_v63 }
 0x370   :  { %v4806_v23 = vpack.c.bf16 %v886_v17, %v883_v15  ;;  %v1225_v17 = vld [vmem:[#allocation15 + $0xb0] sm:$0xff]  ;;  %v1271_v63 = vld [vmem:[#allocation15 + $0x220] sm:$0xff] }
 0x404   :  { %v679_v21 = vpop.f32.mrb[2].mxu0  ;;  %v4077_v22 = vpop.f32.mrb[2].mxu1 }
 0x405   :  { %v680_v24 = vadd.f32 %v679_v21, %v601_v19  ;;  %v681_v25 = vpop.f32.mrb[3].mxu0  ;;  %v4078_v26 = vpop.f32.mrb[3].mxu1  ;;  %v885_v19 = vld [vmem:[#allocation12 + $0x400] sm:$0xff]  ;;  %v890_v21 = vld [vmem:[#allocation12 + $0x428] sm:$0xff] }
 0x406   :  { %v682_v30 = vadd.f32 %v681_v25, %v605_v20  ;;  %v6780_v31 = vadd.f32 %v4078_v26, %v4077_v22  ;;  %v888_v20 = vld [vmem:[#allocation12 + $0x418] sm:$0xff]  ;;  %v893_v22 = vld [vmem:[#allocation12 + $0x440] sm:$0xff]  ;;  %v6790_v26 = vsub.s32 2, %v6763_v45 }
 0x407   :  { %v754_v38 = vmax.f32 %v680_v24, 0.0  ;;  %v4864_v24 = vpack.c.bf16 %v888_v20, %v885_v19  ;;  %v889_v25 = vld [vmem:[#allocation12 + $0x420] sm:$0xff]  ;;  %v4808_v27 = vpack.c.bf16 %v893_v22, %v890_v21  ;;  %v1236_v22 = vld [vmem:[#allocation15 + $0x108] sm:$0xff] }
 0x408   :  { %v755_v34 = vmax.f32 %v682_v30, 0.0  ;;  %v894_v30 = vld [vmem:[#allocation12 + $0x448] sm:$0xff]  ;;  %v1230_v19 = vld [vmem:[#allocation15 + $0xd8] sm:$0xff] }
 0x409   :  { %v1234_v20 = vld [vmem:[#allocation15 + $0xf8] sm:$0xff]  ;;  %v1239_v21 = vld [vmem:[#allocation15 + $0x120] sm:$0xff] }
 0x40a   :  { %982 = vmatprep.mubr.f32.mxu1 %v755_v34  ;;  %1124 = vmatprep.mubr.f32.mxu0 %v755_v34  ;;  %v4810_v34 = vpack.c.bf16 %v892_v28, %v889_v25  ;;  %v4978_v25 = vpack.c.bf16 %v1230_v19, %v1225_v17  ;;  %v1238_v28 = vld [vmem:[#allocation15 + $0x118] sm:$0xff] }
 0x40b   :  { %983 = vmatmul.mubr.f32.vlgmr.msra.gmra.mrb[4].mxu1 %v754_v38  ;;  %1125 = vmatmul.mubr.f32.vlgmr.msra.gmra.mrb[4].mxu0 %v754_v38  ;;  %v609_v38 = vrot.slane %v6774_v18, %v6790_v26  ;;  %v4872_v18 = vpack.c.bf16 %v1209_v43, %v1204_v42  ;;  %v1278_v17 = vld [vmem:[#allocation15 + $0x258] sm:$0xff] }
 0x40c   :  { %4787 = vmatpush1.bf16.msra.mxu1 %v4786_v35  ;;  %4850 = vmatpush3.bf16.msra.mxu0 %v4849_v36  ;;  %v4867_v35 = vpack.c.bf16 %v894_v30, %v891_v29  ;;  %v895_v36 = vld [vmem:[#allocation12 + $0x450] sm:$0xff]  ;;  %v4884_v29 = vpack.c.bf16 %v1239_v21, %v1234_v20  ;;  %v1275_v21 = vld [vmem:[#allocation15 + $0x240] sm:$0xff] }
 0x40d   :  { %4789 = vmatprep.subr.bf16.mxu1 %v4788_v39  ;;  %4851 = vmatprep.subr.bf16.mxu0 %v6409_v0  ;;  %v4812_v39 = vpack.c.bf16 %v899_v33, %v896_v32  ;;  %v751_v53 = vadd.f32 %v6780_v31, %v609_v38  ;;  %v1235_v32 = vld [vmem:[#allocation15 + $0x100] sm:$0xff]  ;;  %v1240_v33 = vld [vmem:[#allocation15 + $0x128] sm:$0xff] }
 0x40e   :  { %1053 = vmatprep.mubr.f32.mxu1 %v6411_v1  ;;  %4460 = vmatprep.mubr.msk.f32.mxu0 %vm6410_vm0, %v6411_v1 }
 0x40f   :  { %v756_v3 = vmax.f32 %v751_v53, 0.0  ;;  %v4890_v53 = vpack.c.bf16 %v1248_v41, %v1243_v40  ;;  %v1296_v40 = vld [vmem:[#allocation15 + $0x2e8] sm:$0xff]  ;;  %v1301_v41 = vld [vmem:[#allocation15 + $0x310] sm:$0xff] }
 0x410   :  { %4791 = vmatpush1.bf16.msra.mxu1 %v4790_v47  ;;  %4853 = vmatpush3.bf16.msra.mxu0 %v4852_v49  ;;  %v1211_v47 = vld [vmem:[#allocation15 + $0x40] sm:$0xff]  ;;  %v4814_v49 = vpack.c.bf16 %v898_v37, %v895_v36  ;;  %v1246_v36 = vld [vmem:[#allocation15 + $0x158] sm:$0xff] }
 0x411   :  { %4793 = vmatprep.subr.bf16.mxu1 %v4792_v51  ;;  %4854 = vmatprep.subr.bf16.mxu0 %v6409_v0  ;;  %v1203_v51 = vld [vmem:[#allocation15] sm:$0xff]  ;;  %v4968_v54 = vpack.c.bf16 %v1211_v47, %v1206_v44  ;;  %v1245_v44 = vld [vmem:[#allocation15 + $0x150] sm:$0xff]  ;;  %v1250_v47 = vld [vmem:[#allocation15 + $0x178] sm:$0xff] }
 0x412   :  { %v4874_v61 = vpack.c.bf16 %v1208_v52, %v1203_v51  ;;  %v1251_v37 = vld [vmem:[#allocation15 + $0x180] sm:$0xff]  ;;  %v1256_v51 = vld [vmem:[#allocation15 + $0x1a8] sm:$0xff]  ;;  %v1261_v52 = vld [vmem:[#allocation15 + $0x1d0] sm:$0xff] }
 0x413   :  { %v4984_v43 = vpack.c.bf16 %v1251_v37, %v1246_v36  ;;  %v1290_v36 = vld [vmem:[#allocation15 + $0x2b8] sm:$0xff] }
 0x414   :  { %4795 = vmatpush1.bf16.msra.mxu1 %v4794_v57  ;;  %4856 = vmatpush3.bf16.msra.mxu0 %v4855_v58  ;;  %v1214_v57 = vld [vmem:[#allocation15 + $0x58] sm:$0xff]  ;;  %v1219_v58 = vld [vmem:[#allocation15 + $0x80] sm:$0xff] }
 0x415   :  { %4797 = vmatprep.subr.bf16.mxu1 %v4796_v60  ;;  %4857 = vmatprep.subr.bf16.mxu0 %v6409_v0  ;;  %v1221_v60 = vld [vmem:[#allocation15 + $0x90] sm:$0xff]  ;;  %v4876_v31 = vpack.c.bf16 %v1219_v58, %v1214_v57  ;;  %v4988_v57 = vpack.c.bf16 %v1261_v52, %v1256_v51  ;;  %v1255_v58 = vld [vmem:[#allocation15 + $0x1a0] sm:$0xff]  ;;  %v1294_v37 = vld [vmem:[#allocation15 + $0x2d8] sm:$0xff] }
 0x416   :  { %v1300_v51 = vld [vmem:[#allocation15 + $0x308] sm:$0xff] }
 0x417   :  { %v1304_v52 = vld [vmem:[#allocation15 + $0x328] sm:$0xff] }
 0x418   :  { %4799 = vmatpush1.bf16.msra.mxu1 %v4798_v4  ;;  %4859 = vmatpush3.bf16.msra.mxu0 %v4858_v5  ;;  %v4972_v4 = vpack.c.bf16 %v1221_v60, %v1216_v59  ;;  %v1215_v5 = vld [vmem:[#allocation15 + $0x60] sm:$0xff]  ;;  %v1260_v59 = vld [vmem:[#allocation15 + $0x1c8] sm:$0xff] }
 0x419   :  { %4801 = vmatprep.subr.bf16.mxu1 %v4800_v7  ;;  %4860 = vmatprep.subr.bf16.mxu0 %v6409_v0  ;;  %v1224_v7 = vld [vmem:[#allocation15 + $0xa8] sm:$0xff]  ;;  %v4974_v12 = vpack.c.bf16 %v1220_v6, %v1215_v5 }
 0x41a   :  { %v4880_v15 = vpack.c.bf16 %v1229_v8, %v1224_v7  ;;  %v1264_v60 = vld [vmem:[#allocation15 + $0x1e8] sm:$0xff]  ;;  %v1265_v7 = vld [vmem:[#allocation15 + $0x1f0] sm:$0xff]  ;;  %v1270_v8 = vld [vmem:[#allocation15 + $0x218] sm:$0xff] }
 0x41b   :  { %v1268_v6 = vld [vmem:[#allocation15 + $0x208] sm:$0xff] }
 0x41c   :  { %4803 = vmatpush1.bf16.msra.mxu1 %v4802_v13  ;;  %4862 = vmatpush3.bf16.msra.mxu0 %v4861_v14  ;;  %v1223_v13 = vld [vmem:[#allocation15 + $0xa0] sm:$0xff]  ;;  %v1228_v14 = vld [vmem:[#allocation15 + $0xc8] sm:$0xff] }
 0x41d   :  { %4805 = vmatprep.subr.bf16.mxu1 %v4804_v16  ;;  %4863 = vmatprep.subr.bf16.mxu0 %v6409_v0  ;;  %v4976_v16 = vpack.c.bf16 %v1231_v10, %v1226_v9  ;;  %v4994_v10 = vpack.c.bf16 %v1270_v8, %v1265_v7  ;;  %v1318_v7 = vld [vmem:[#allocation15 + $0x398] sm:$0xff]  ;;  %v1315_v8 = vld [vmem:[#allocation15 + $0x380] sm:$0xff] }
 0x420   :  { %4807 = vmatpush1.bf16.msra.mxu1 %v4806_v23  ;;  %4865 = vmatpush3.bf16.msra.mxu0 %v4864_v24  ;;  %v1241_v23 = vld [vmem:[#allocation15 + $0x130] sm:$0xff]  ;;  %v4882_v24 = vpack.c.bf16 %v1228_v14, %v1223_v13  ;;  %v1276_v13 = vld [vmem:[#allocation15 + $0x248] sm:$0xff] }
 0x421   :  { %4809 = vmatprep.subr.bf16.mxu1 %v4808_v27  ;;  %4866 = vmatprep.subr.bf16.mxu0 %v6409_v0  ;;  %v1233_v27 = vld [vmem:[#allocation15 + $0xf0] sm:$0xff]  ;;  %v4980_v30 = vpack.c.bf16 %v1241_v23, %v1236_v22  ;;  %v1280_v22 = vld [vmem:[#allocation15 + $0x268] sm:$0xff] }
 0x422   :  { %v4886_v38 = vpack.c.bf16 %v1238_v28, %v1233_v27  ;;  %v4998_v23 = vpack.c.bf16 %v1280_v22, %v1275_v21  ;;  %v1286_v27 = vld [vmem:[#allocation15 + $0x298] sm:$0xff]  ;;  %v1325_v21 = vld [vmem:[#allocation15 + $0x3d0] sm:$0xff] }
 0x424   :  { %4811 = vmatpush1.bf16.msra.mxu1 %v4810_v34  ;;  %4868 = vmatpush3.bf16.msra.mxu0 %v4867_v35  ;;  %v1244_v34 = vld [vmem:[#allocation15 + $0x148] sm:$0xff]  ;;  %v1249_v35 = vld [vmem:[#allocation15 + $0x170] sm:$0xff] }
 0x425   :  { %4813 = vmatprep.subr.bf16.mxu1 %v4812_v39  ;;  %4869 = vmatprep.subr.bf16.mxu0 %v6409_v0  ;;  %v4982_v39 = vpack.c.bf16 %v1240_v33, %v1235_v32  ;;  %v4888_v42 = vpack.c.bf16 %v1249_v35, %v1244_v34  ;;  %v1288_v32 = vld [vmem:[#allocation15 + $0x2a8] sm:$0xff]  ;;  %v1285_v35 = vld [vmem:[#allocation15 + $0x290] sm:$0xff] }
 0x428   :  { %4815 = vmatpush1.bf16.msra.mxu1 %v4814_v49  ;;  %4871 = vmatpush3.bf16.msra.mxu0 %v4870_v50  ;;  %v1254_v49 = vld [vmem:[#allocation15 + $0x198] sm:$0xff]  ;;  %v1259_v50 = vld [vmem:[#allocation15 + $0x1c0] sm:$0xff] }
 0x429   :  { %4873 = vmatprep.subr.bf16.mxu0 %v4872_v18  ;;  %4969 = vmatprep.subr.bf16.mxu1 %v4968_v54  ;;  %v4986_v18 = vpack.c.bf16 %v1250_v47, %v1245_v44  ;;  %v1253_v54 = vld [vmem:[#allocation15 + $0x190] sm:$0xff]  ;;  %v4892_v56 = vpack.c.bf16 %v1259_v50, %v1254_v49  ;;  %v1298_v47 = vld [vmem:[#allocation15 + $0x2f8] sm:$0xff]  ;;  %v1295_v49 = vld [vmem:[#allocation15 + $0x2e0] sm:$0xff] }
 0x42a   :  { %v4894_v2 = vpack.c.bf16 %v1258_v55, %v1253_v54  ;;  %v1293_v44 = vld [vmem:[#allocation15 + $0x2d0] sm:$0xff]  ;;  %v1306_v55 = vld [vmem:[#allocation15 + $0x338] sm:$0xff] }
 0x42b   :  { %1054 = vmatmul.mubr.f32.vlgmr.msra.gmra.mrb[4].mxu1 %v756_v3  ;;  %4461 = vmatmul.mubr.f32.vlgmr.msra.gmra.mrb[6].mxu0 %v756_v3  ;;  %v4990_v3 = vpack.c.bf16 %v1260_v59, %v1255_v58  ;;  %v4910_v50 = vpack.c.bf16 %v1298_v47, %v1293_v44  ;;  %v1308_v59 = vld [vmem:[#allocation15 + $0x348] sm:$0xff]  ;;  %v1343_v47 = vld [vmem:[#allocation15 + $0x460] sm:$0xff] }
 0x42c   :  { %4875 = vmatpush1.bf16.msra.mxu0 %v4874_v61  ;;  %4971 = vmatpush1.bf16.msra.mxu1 %v4970_v62  ;;  %v1269_v61 = vld [vmem:[#allocation15 + $0x210] sm:$0xff]  ;;  %v1266_v62 = vld [vmem:[#allocation15 + $0x1f8] sm:$0xff] }
 0x42d   :  { %4877 = vmatprep.subr.bf16.mxu0 %v4876_v31  ;;  %4973 = vmatprep.subr.bf16.mxu1 %v4972_v4  ;;  %v1263_v31 = vld [vmem:[#allocation15 + $0x1e0] sm:$0xff]  ;;  %v4896_v4 = vpack.c.bf16 %v1269_v61, %v1264_v60  ;;  %v4992_v5 = vpack.c.bf16 %v1271_v63, %v1266_v62  ;;  %v1305_v60 = vld [vmem:[#allocation15 + $0x330] sm:$0xff]  ;;  %v1310_v61 = vld [vmem:[#allocation15 + $0x358] sm:$0xff] }
 0x42e   :  { %v4898_v9 = vpack.c.bf16 %v1268_v6, %v1263_v31  ;;  %v1314_v62 = vld [vmem:[#allocation15 + $0x378] sm:$0xff]  ;;  %v1319_v63 = vld [vmem:[#allocation15 + $0x3a0] sm:$0xff]  ;;  %v1321_v31 = vld [vmem:[#allocation15 + $0x3b0] sm:$0xff] }
 0x42f   :  { %v1313_v6 = vld [vmem:[#allocation15 + $0x370] sm:$0xff] }
 0x430   :  { %4879 = vmatpush1.bf16.msra.mxu0 %v4878_v11  ;;  %4975 = vmatpush1.bf16.msra.mxu1 %v4974_v12  ;;  %v1274_v11 = vld [vmem:[#allocation15 + $0x238] sm:$0xff]  ;;  %v1279_v12 = vld [vmem:[#allocation15 + $0x260] sm:$0xff] }
 0x431   :  { %4881 = vmatprep.subr.bf16.mxu0 %v4880_v15  ;;  %4977 = vmatprep.subr.bf16.mxu1 %v4976_v16  ;;  %v4900_v14 = vpack.c.bf16 %v1279_v12, %v1274_v11  ;;  %v1281_v15 = vld [vmem:[#allocation15 + $0x270] sm:$0xff]  ;;  %v1324_v11 = vld [vmem:[#allocation15 + $0x3c8] sm:$0xff] }
 0x432   :  { %v1273_v16 = vld [vmem:[#allocation15 + $0x230] sm:$0xff]  ;;  %v4996_v19 = vpack.c.bf16 %v1281_v15, %v1276_v13  ;;  %v1326_v13 = vld [vmem:[#allocation15 + $0x3d8] sm:$0xff]  ;;  %v4918_v15 = vpack.c.bf16 %v1318_v7, %v1313_v6  ;;  %v1371_v7 = vld [vmem:[#allocation15 + $0x540] sm:$0xff] }
 0x433   :  { %v4902_v20 = vpack.c.bf16 %v1278_v17, %v1273_v16  ;;  %v1329_v12 = vld [vmem:[#allocation15 + $0x3f0] sm:$0xff] }
 0x434   :  { %4883 = vmatpush1.bf16.msra.mxu0 %v4882_v24  ;;  %4979 = vmatpush1.bf16.msra.mxu1 %v4978_v25  ;;  %v1284_v24 = vld [vmem:[#allocation15 + $0x288] sm:$0xff]  ;;  %v1289_v25 = vld [vmem:[#allocation15 + $0x2b0] sm:$0xff]  ;;  %v4920_v17 = vpack.c.bf16 %v1329_v12, %v1324_v11  ;;  %v901_v12 = vld [vmem:[#allocation13] sm:$0x7] }
 0x435   :  { %4885 = vmatprep.subr.bf16.mxu0 %v4884_v29  ;;  %4981 = vmatprep.subr.bf16.mxu1 %v4980_v30  ;;  %v4904_v28 = vpack.c.bf16 %v1289_v25, %v1284_v24  ;;  %v1291_v29 = vld [vmem:[#allocation15 + $0x2c0] sm:$0xff]  ;;  %v1334_v24 = vld [vmem:[#allocation15 + $0x418] sm:$0xff] }
 0x436   :  { %v1283_v30 = vld [vmem:[#allocation15 + $0x280] sm:$0xff]  ;;  %v5000_v33 = vpack.c.bf16 %v1291_v29, %v1286_v27  ;;  %v1336_v27 = vld [vmem:[#allocation15 + $0x428] sm:$0xff] }
 0x437   :  { %v4906_v34 = vpack.c.bf16 %v1288_v32, %v1283_v30  ;;  %v1339_v25 = vld [vmem:[#allocation15 + $0x440] sm:$0xff] }
 0x438   :  { %4887 = vmatpush1.bf16.msra.mxu0 %v4886_v38  ;;  %4983 = vmatpush1.bf16.msra.mxu1 %v4982_v39  ;;  %v5002_v38 = vpack.c.bf16 %v1290_v36, %v1285_v35  ;;  %v1299_v39 = vld [vmem:[#allocation15 + $0x300] sm:$0xff]  ;;  %v4924_v32 = vpack.c.bf16 %v1339_v25, %v1334_v24 }
 0x439   :  { %4889 = vmatprep.subr.bf16.mxu0 %v4888_v42  ;;  %4985 = vmatprep.subr.bf16.mxu1 %v4984_v43  ;;  %v4908_v42 = vpack.c.bf16 %v1299_v39, %v1294_v37  ;;  %v5004_v43 = vpack.c.bf16 %v1301_v41, %v1296_v40  ;;  %v1335_v35 = vld [vmem:[#allocation15 + $0x420] sm:$0xff]  ;;  %v1340_v37 = vld [vmem:[#allocation15 + $0x448] sm:$0xff]  ;;  %v1349_v39 = vld [vmem:[#allocation15 + $0x490] sm:$0xff] }
 0x43a   :  { %v1346_v40 = vld [vmem:[#allocation15 + $0x478] sm:$0xff]  ;;  %v1351_v41 = vld [vmem:[#allocation15 + $0x4a0] sm:$0xff] }
 0x43c   :  { %4891 = vmatpush1.bf16.msra.mxu0 %v4890_v53  ;;  %4987 = vmatpush1.bf16.msra.mxu1 %v4986_v18  ;;  %v1309_v53 = vld [vmem:[#allocation15 + $0x350] sm:$0xff]  ;;  %v5006_v18 = vpack.c.bf16 %v1300_v51, %v1295_v49  ;;  %v1348_v49 = vld [vmem:[#allocation15 + $0x488] sm:$0xff] }
 0x43d   :  { %4893 = vmatprep.subr.bf16.mxu0 %v4892_v56  ;;  %4989 = vmatprep.subr.bf16.mxu1 %v4988_v57  ;;  %v4912_v54 = vpack.c.bf16 %v1309_v53, %v1304_v52  ;;  %v1311_v56 = vld [vmem:[#allocation15 + $0x360] sm:$0xff]  ;;  %v1345_v51 = vld [vmem:[#allocation15 + $0x470] sm:$0xff]  ;;  %v1350_v52 = vld [vmem:[#allocation15 + $0x498] sm:$0xff]  ;;  %v4930_v53 = vpack.c.bf16 %v1348_v49, %v1343_v47 }
 0x43e   :  { %v1303_v57 = vld [vmem:[#allocation15 + $0x320] sm:$0xff]  ;;  %v5008_v58 = vpack.c.bf16 %v1311_v56, %v1306_v55  ;;  %v1356_v56 = vld [vmem:[#allocation15 + $0x4c8] sm:$0xff]  ;;  %v1389_v49 = vld [vmem:[#allocation15 + $0x5d0] sm:$0xff] }
 0x43f   :  { %v1359_v55 = vld [vmem:[#allocation15 + $0x4e0] sm:$0xff]  ;;  %v1384_v47 = vld [vmem:[#allocation15 + $0x5a8] sm:$0xff] }
 0x440   :  { %4895 = vmatpush1.bf16.msra.mxu0 %v4894_v2  ;;  %4991 = vmatpush1.bf16.msra.mxu1 %v4990_v3  ;;  %v1316_v2 = vld [vmem:[#allocation15 + $0x388] sm:$0xff]  ;;  %v4914_v3 = vpack.c.bf16 %v1308_v59, %v1303_v57  ;;  %v1353_v59 = vld [vmem:[#allocation15 + $0x4b0] sm:$0xff] }
 0x441   :  { %4897 = vmatprep.subr.bf16.mxu0 %v4896_v4  ;;  %4993 = vmatprep.subr.bf16.mxu1 %v4992_v5  ;;  %v5010_v4 = vpack.c.bf16 %v1310_v61, %v1305_v60  ;;  %v4916_v5 = vpack.c.bf16 %v1319_v63, %v1314_v62  ;;  %v1358_v60 = vld [vmem:[#allocation15 + $0x4d8] sm:$0xff]  ;;  %v1355_v63 = vld [vmem:[#allocation15 + $0x4c0] sm:$0xff] }
 0x442   :  { %v4934_v62 = vpack.c.bf16 %v1358_v60, %v1353_v59  ;;  %v1394_v59 = vld [vmem:[#allocation15 + $0x5f8] sm:$0xff]  ;;  %v1399_v60 = vld [vmem:[#allocation15 + $0x620] sm:$0xff] }
 0x444   :  { %4899 = vmatpush1.bf16.msra.mxu0 %v4898_v9  ;;  %4995 = vmatpush1.bf16.msra.mxu1 %v4994_v10  ;;  %v5012_v9 = vpack.c.bf16 %v1321_v31, %v1316_v2  ;;  %v1320_v10 = vld [vmem:[#allocation15 + $0x3a8] sm:$0xff] }
 0x445   :  { %4901 = vmatprep.subr.bf16.mxu0 %v4900_v14  ;;  %4997 = vmatprep.subr.bf16.mxu1 %v4996_v19  ;;  %v1331_v14 = vld [vmem:[#allocation15 + $0x400] sm:$0xff]  ;;  %v5014_v16 = vpack.c.bf16 %v1320_v10, %v1315_v8  ;;  %v1360_v2 = vld [vmem:[#allocation15 + $0x4e8] sm:$0xff] }
 0x446   :  { %v1323_v19 = vld [vmem:[#allocation15 + $0x3c0] sm:$0xff]  ;;  %v5016_v22 = vpack.c.bf16 %v1331_v14, %v1326_v13  ;;  %v1364_v31 = vld [vmem:[#allocation15 + $0x508] sm:$0xff]  ;;  %v914_v13 = vrot.slane %v901_v12, %v6790_v26  ;;  %v906_v14 = vrot.slane %v901_v12, %v6766_v46 }
 0x448   :  { %4903 = vmatpush1.bf16.msra.mxu0 %v4902_v20  ;;  %4999 = vmatpush1.bf16.msra.mxu1 %v4998_v23  ;;  %v1328_v20 = vld [vmem:[#allocation15 + $0x3e8] sm:$0xff]  ;;  %v1330_v23 = vld [vmem:[#allocation15 + $0x3f8] sm:$0xff] }
 0x449   :  { %4905 = vmatprep.subr.bf16.mxu0 %v4904_v28  ;;  %5001 = vmatprep.subr.bf16.mxu1 %v5000_v33  ;;  %v1341_v28 = vld [vmem:[#allocation15 + $0x450] sm:$0xff]  ;;  %v4922_v29 = vpack.c.bf16 %v1328_v20, %v1323_v19  ;;  %v5018_v30 = vpack.c.bf16 %v1330_v23, %v1325_v21  ;;  %v1363_v20 = vld [vmem:[#allocation15 + $0x500] sm:$0xff]  ;;  %v1368_v21 = vld [vmem:[#allocation15 + $0x528] sm:$0xff] }
 0x44a   :  { %v1333_v33 = vld [vmem:[#allocation15 + $0x410] sm:$0xff]  ;;  %v5020_v36 = vpack.c.bf16 %v1341_v28, %v1336_v27  ;;  %v1370_v28 = vld [vmem:[#allocation15 + $0x538] sm:$0xff] }
 0x44b   :  { %v1365_v27 = vld [vmem:[#allocation15 + $0x510] sm:$0xff] }
 0x44c   :  { %4907 = vmatpush1.bf16.msra.mxu0 %v4906_v34  ;;  %5003 = vmatpush1.bf16.msra.mxu1 %v5002_v38  ;;  %v1338_v34 = vld [vmem:[#allocation15 + $0x438] sm:$0xff]  ;;  %v1344_v38 = vld [vmem:[#allocation15 + $0x468] sm:$0xff] }
 0x44d   :  { %4909 = vmatprep.subr.bf16.mxu0 %v4908_v42  ;;  %5005 = vmatprep.subr.bf16.mxu1 %v5004_v43  ;;  %v4926_v42 = vpack.c.bf16 %v1338_v34, %v1333_v33  ;;  %v5022_v43 = vpack.c.bf16 %v1340_v37, %v1335_v35  ;;  %v4928_v44 = vpack.c.bf16 %v1349_v39, %v1344_v38  ;;  %v1376_v33 = vld [vmem:[#allocation15 + $0x568] sm:$0xff]  ;;  %v1381_v34 = vld [vmem:[#allocation15 + $0x590] sm:$0xff]  ;;  %v1378_v39 = vld [vmem:[#allocation15 + $0x578] sm:$0xff] }
 0x44e   :  { %v5034_v37 = vpack.c.bf16 %v1370_v28, %v1365_v27  ;;  %v1373_v38 = vld [vmem:[#allocation15 + $0x550] sm:$0xff] }
 0x450   :  { %4911 = vmatpush1.bf16.msra.mxu0 %v4910_v50  ;;  %5007 = vmatpush1.bf16.msra.mxu1 %v5006_v18  ;;  %v5024_v50 = vpack.c.bf16 %v1351_v41, %v1346_v40  ;;  %v5026_v18 = vpack.c.bf16 %v1350_v52, %v1345_v51  ;;  %v1391_v51 = vld [vmem:[#allocation15 + $0x5e0] sm:$0xff]  ;;  %v4942_v52 = vpack.c.bf16 %v1378_v39, %v1373_v38  ;;  %v1429_v38 = vld [vmem:[#allocation15 + $0x710] sm:$0xff]  ;;  %v1426_v39 = vld [vmem:[#allocation15 + $0x6f8] sm:$0xff] }
 0x451   :  { %4913 = vmatprep.subr.bf16.mxu0 %v4912_v54  ;;  %5009 = vmatprep.subr.bf16.mxu1 %v5008_v58  ;;  %v1354_v54 = vld [vmem:[#allocation15 + $0x4b8] sm:$0xff]  ;;  %v1361_v58 = vld [vmem:[#allocation15 + $0x4f0] sm:$0xff] }
 0x452   :  { %v4932_v57 = vpack.c.bf16 %v1359_v55, %v1354_v54  ;;  %v5028_v61 = vpack.c.bf16 %v1361_v58, %v1356_v56  ;;  %v1388_v54 = vld [vmem:[#allocation15 + $0x5c8] sm:$0xff]  ;;  %v4944_v55 = vpack.c.bf16 %v1389_v49, %v1384_v47  ;;  %v1390_v58 = vld [vmem:[#allocation15 + $0x5d8] sm:$0xff] }
 0x453   :  { %v1428_v47 = vld [vmem:[#allocation15 + $0x708] sm:$0xff] }
 0x454   :  { %4915 = vmatpush1.bf16.msra.mxu0 %v4914_v3  ;;  %5011 = vmatpush1.bf16.msra.mxu1 %v5010_v4  ;;  %v5030_v3 = vpack.c.bf16 %v1360_v2, %v1355_v63  ;;  %v1369_v4 = vld [vmem:[#allocation15 + $0x530] sm:$0xff] }
 0x455   :  { %4917 = vmatprep.subr.bf16.mxu0 %v4916_v5  ;;  %5013 = vmatprep.subr.bf16.mxu1 %v5012_v9  ;;  %v1366_v5 = vld [vmem:[#allocation15 + $0x518] sm:$0xff]  ;;  %v4936_v6 = vpack.c.bf16 %v1369_v4, %v1364_v31  ;;  %v4948_v4 = vpack.c.bf16 %v1399_v60, %v1394_v59 }
 0x456   :  { %v5032_v8 = vpack.c.bf16 %v1371_v7, %v1366_v5  ;;  %v1398_v31 = vld [vmem:[#allocation15 + $0x618] sm:$0xff]  ;;  %v1400_v7 = vld [vmem:[#allocation15 + $0x628] sm:$0xff] }
 0x458   :  { %4919 = vmatpush1.bf16.msra.mxu0 %v4918_v15  ;;  %5015 = vmatpush1.bf16.msra.mxu1 %v5014_v16  ;;  %v910_v15 = vrot.slane %v901_v12, %v6769_v48 }
 0x459   :  { %4921 = vmatprep.subr.bf16.mxu0 %v4920_v17  ;;  %5017 = vmatprep.subr.bf16.mxu1 %v5016_v22 }
 0x45c   :  { %4923 = vmatpush1.bf16.msra.mxu0 %v4922_v29  ;;  %5019 = vmatpush1.bf16.msra.mxu1 %v5018_v30  ;;  %v1374_v29 = vld [vmem:[#allocation15 + $0x558] sm:$0xff] }
 0x45d   :  { %4925 = vmatprep.subr.bf16.mxu0 %v4924_v32  ;;  %5021 = vmatprep.subr.bf16.mxu1 %v5020_v36  ;;  %v1379_v32 = vld [vmem:[#allocation15 + $0x580] sm:$0xff]  ;;  %v4938_v36 = vpack.c.bf16 %v1368_v21, %v1363_v20  ;;  %v1410_v20 = vld [vmem:[#allocation15 + $0x678] sm:$0xff] }
 0x45e   :  { %v4940_v41 = vpack.c.bf16 %v1379_v32, %v1374_v29  ;;  %v1414_v21 = vld [vmem:[#allocation15 + $0x698] sm:$0xff]  ;;  %v1413_v29 = vld [vmem:[#allocation15 + $0x690] sm:$0xff] }
 0x460   :  { %4927 = vmatpush1.bf16.msra.mxu0 %v4926_v42  ;;  %5023 = vmatpush1.bf16.msra.mxu1 %v5022_v43  ;;  %v5036_v42 = vpack.c.bf16 %v1381_v34, %v1376_v33  ;;  %v1375_v43 = vld [vmem:[#allocation15 + $0x560] sm:$0xff] }
 0x461   :  { %4929 = vmatprep.subr.bf16.mxu0 %v4928_v44  ;;  %5025 = vmatprep.subr.bf16.mxu1 %v5024_v50  ;;  %v1380_v44 = vld [vmem:[#allocation15 + $0x588] sm:$0xff]  ;;  %v1386_v50 = vld [vmem:[#allocation15 + $0x5b8] sm:$0xff]  ;;  %v1415_v34 = vld [vmem:[#allocation15 + $0x6a0] sm:$0xff] }
 0x462   :  { %v5040_v56 = vpack.c.bf16 %v1391_v51, %v1386_v50  ;;  %v1425_v51 = vld [vmem:[#allocation15 + $0x6f0] sm:$0xff] }
 0x464   :  { %4931 = vmatpush1.bf16.msra.mxu0 %v4930_v53  ;;  %5027 = vmatpush1.bf16.msra.mxu1 %v5026_v18  ;;  %v5038_v53 = vpack.c.bf16 %v1380_v44, %v1375_v43  ;;  %v1383_v18 = vld [vmem:[#allocation15 + $0x5a0] sm:$0xff] }
 0x465   :  { %4933 = vmatprep.subr.bf16.mxu0 %v4932_v57  ;;  %5029 = vmatprep.subr.bf16.mxu1 %v5028_v61  ;;  %v1385_v57 = vld [vmem:[#allocation15 + $0x5b0] sm:$0xff]  ;;  %v1396_v61 = vld [vmem:[#allocation15 + $0x608] sm:$0xff]  ;;  %v4946_v63 = vpack.c.bf16 %v1388_v54, %v1383_v18  ;;  %v1423_v44 = vld [vmem:[#allocation15 + $0x6e0] sm:$0xff] }
 0x466   :  { %v5042_v2 = vpack.c.bf16 %v1390_v58, %v1385_v57  ;;  %v1439_v18 = vld [vmem:[#allocation15 + $0x760] sm:$0xff]  ;;  %v1436_v54 = vld [vmem:[#allocation15 + $0x748] sm:$0xff]  ;;  %v1433_v58 = vld [vmem:[#allocation15 + $0x730] sm:$0xff] }
 0x468   :  { %4935 = vmatpush1.bf16.msra.mxu0 %v4934_v62  ;;  %5031 = vmatpush1.bf16.msra.mxu1 %v5030_v3  ;;  %v1401_v62 = vld [vmem:[#allocation15 + $0x630] sm:$0xff] }
 0x469   :  { %4937 = vmatprep.subr.bf16.mxu0 %v4936_v6  ;;  %5033 = vmatprep.subr.bf16.mxu1 %v5032_v8  ;;  %v1393_v3 = vld [vmem:[#allocation15 + $0x5f0] sm:$0xff]  ;;  %v5044_v5 = vpack.c.bf16 %v1401_v62, %v1396_v61  ;;  %v1395_v6 = vld [vmem:[#allocation15 + $0x600] sm:$0xff]  ;;  %v1404_v8 = vld [vmem:[#allocation15 + $0x648] sm:$0xff] }
 0x46a   :  { %v4950_v12 = vpack.c.bf16 %v1398_v31, %v1393_v3  ;;  %v1438_v61 = vld [vmem:[#allocation15 + $0x758] sm:$0xff]  ;;  %v1435_v62 = vld [vmem:[#allocation15 + $0x740] sm:$0xff]  ;;  %v1292_v3 = vld [vmem:[#allocation15 + $0x2c8] sm:$0xff] }
 0x46b   :  { %v4966_v31 = vpack.c.bf16 %v1438_v61, %v1433_v58  ;;  %v1257_v58 = vld [vmem:[#allocation15 + $0x1b0] sm:$0xff]  ;;  %v1422_v61 = vld [vmem:[#allocation15 + $0x6d8] sm:$0xff] }
 0x4de   :  { %v4112_v9 = vpop.f32.mrb[4].mxu0 }
 0x4df   :  { %v4113_v10 = vpop.f32.mrb[5].mxu0 }
 0x4e0   :  { %v4114_v11 = vadd.f32 %v4113_v10, %v4112_v9  ;;  %v1409_v9 = vld [vmem:[#allocation15 + $0x670] sm:$0xff]  ;;  %v1406_v10 = vld [vmem:[#allocation15 + $0x658] sm:$0xff] }
 0x4e2   :  { %v1127_v16 = vadd.f32 %v4114_v11, %v914_v13  ;;  %v1411_v11 = vld [vmem:[#allocation15 + $0x680] sm:$0xff]  ;;  %v5046_v13 = vpack.c.bf16 %v1400_v7, %v1395_v6  ;;  %v1212_v7 = vld [vmem:[#allocation15 + $0x48] sm:$0xff] }
 0x4e3   :  { %v1207_v6 = vld [vmem:[#allocation15 + $0x20] sm:$0xff] }
 0x4fe   :  { %v1055_v17 = vpop.f32.mrb[4].mxu1  ;;  %v1196_v19 = vpop.f32.mrb[6].mxu0 }
 0x4ff   :  { %v5904_v22 = vadd.f32 %v1055_v17, %v906_v14  ;;  %v6801_v23 = vadd.f32 %v1196_v19, %v1127_v16  ;;  %v1057_v24 = vpop.f32.mrb[5].mxu1  ;;  %v4462_v25 = vpop.f32.mrb[7].mxu0  ;;  %v1403_v14 = vld [vmem:[#allocation15 + $0x640] sm:$0xff]  ;;  %v4952_v16 = vpack.c.bf16 %v1409_v9, %v1404_v8  ;;  %v5048_v17 = vpack.c.bf16 %v1411_v11, %v1406_v10  ;;  %v1405_v19 = vld [vmem:[#allocation15 + $0x650] sm:$0xff]  ;;  %v1372_v9 = vld [vmem:[#allocation15 + $0x548] sm:$0xff] }
 0x500   :  { %v5905_v30 = vadd.f32 %v1057_v24, %v910_v15  ;;  %v1408_v15 = vld [vmem:[#allocation15 + $0x668] sm:$0xff]  ;;  %v1421_v25 = vld [vmem:[#allocation15 + $0x6d0] sm:$0xff]  ;;  %v5050_v28 = vpack.c.bf16 %v1410_v20, %v1405_v19  ;;  %v1367_v8 = vld [vmem:[#allocation15 + $0x520] sm:$0xff] }
 0x501   :  { %v6805_v40 = vmax.f32 %v5904_v22, 0.0  ;;  %v1419_v22 = vld [vmem:[#allocation15 + $0x6c0] sm:$0xff]  ;;  %v1416_v24 = vld [vmem:[#allocation15 + $0x6a8] sm:$0xff]  ;;  %v4954_v27 = vpack.c.bf16 %v1408_v15, %v1403_v14  ;;  %v1297_v10 = vld [vmem:[#allocation15 + $0x2f0] sm:$0xff]  ;;  %v5097_v14 = vpack.c.bf16 %v1372_v9, %v1367_v8 }
 0x502   :  { %v6803_v35 = vmax.f32 %v5905_v30, 0.0  ;;  %v1418_v30 = vld [vmem:[#allocation15 + $0x6b8] sm:$0xff]  ;;  %v4956_v32 = vpack.c.bf16 %v1419_v22, %v1414_v21  ;;  %v5052_v33 = vpack.c.bf16 %v1421_v25, %v1416_v24  ;;  %v1377_v19 = vld [vmem:[#allocation15 + $0x570] sm:$0xff]  ;;  %v1307_v21 = vld [vmem:[#allocation15 + $0x340] sm:$0xff] }
 0x503   :  { %v1302_v11 = vld [vmem:[#allocation15 + $0x318] sm:$0xff]  ;;  %v1312_v22 = vld [vmem:[#allocation15 + $0x368] sm:$0xff]  ;;  %v1357_v8 = vld [vmem:[#allocation15 + $0x4d0] sm:$0xff] }
 0x504   :  { %1534 = vmatprep.mubr.f32.mxu0 %v6803_v35  ;;  %1676 = vmatprep.mubr.f32.mxu1 %v6803_v35  ;;  %v5068_v15 = vpack.c.bf16 %v1302_v11, %v1297_v10  ;;  %v1382_v20 = vld [vmem:[#allocation15 + $0x598] sm:$0xff]  ;;  %v5072_v25 = vpack.c.bf16 %v1312_v22, %v1307_v21  ;;  %v1907_v22 = vld [vmem:[#allocation18 + $0x40] sm:$0xff] }
 0x505   :  { %1535 = vmatmul.mubr.f32.vlgmr.msra.gmra.mrb[8].mxu0 %v6805_v40  ;;  %1677 = vmatmul.mubr.f32.vlgmr.msra.gmra.mrb[6].mxu1 %v6805_v40  ;;  %v5100_v24 = vpack.c.bf16 %v1382_v20, %v1377_v19  ;;  %v1362_v9 = vld [vmem:[#allocation15 + $0x4f8] sm:$0xff]  ;;  %v1900_v19 = vld [vmem:[#allocation18 + $0x8] sm:$0xff] }
 0x506   :  { %4939 = vmatpush1.bf16.msra.mxu0 %v4938_v36  ;;  %5035 = vmatpush1.bf16.msra.mxu1 %v5034_v37  ;;  %v1420_v36 = vld [vmem:[#allocation15 + $0x6c8] sm:$0xff]  ;;  %v1905_v20 = vld [vmem:[#allocation18 + $0x30] sm:$0xff]  ;;  %v1902_v21 = vld [vmem:[#allocation18 + $0x18] sm:$0xff] }
 0x507   :  { %4941 = vmatprep.subr.bf16.mxu0 %v4940_v41  ;;  %5037 = vmatprep.subr.bf16.mxu1 %v5036_v42  ;;  %v1424_v37 = vld [vmem:[#allocation15 + $0x6e8] sm:$0xff]  ;;  %v1431_v41 = vld [vmem:[#allocation15 + $0x720] sm:$0xff]  ;;  %v4958_v42 = vpack.c.bf16 %v1418_v30, %v1413_v29  ;;  %v5054_v43 = vpack.c.bf16 %v1420_v36, %v1415_v34 }
 0x508   :  { %1605 = vmatprep.mubr.f32.mxu0 %v6411_v1  ;;  %1747 = vmatprep.mubr.f32.mxu1 %v6411_v1  ;;  %v4960_v49 = vpack.c.bf16 %v1429_v38, %v1424_v37  ;;  %v5056_v50 = vpack.c.bf16 %v1431_v41, %v1426_v39  ;;  %v1387_v29 = vld [vmem:[#allocation15 + $0x5c0] sm:$0xff]  ;;  %v1392_v30 = vld [vmem:[#allocation15 + $0x5e8] sm:$0xff]  ;;  %v1237_v37 = vld [vmem:[#allocation15 + $0x110] sm:$0xff] }
 0x509   :  { %v1242_v38 = vld [vmem:[#allocation15 + $0x138] sm:$0xff]  ;;  %v1397_v39 = vld [vmem:[#allocation15 + $0x610] sm:$0xff] }
 0x50a   :  { %4943 = vmatpush1.bf16.msra.mxu0 %v4942_v52  ;;  %5039 = vmatpush1.bf16.msra.mxu1 %v5038_v53  ;;  %v1430_v52 = vld [vmem:[#allocation15 + $0x718] sm:$0xff] }
 0x50b   :  { %4945 = vmatprep.subr.bf16.mxu0 %v4944_v55  ;;  %5041 = vmatprep.subr.bf16.mxu1 %v5040_v56  ;;  %v1434_v53 = vld [vmem:[#allocation15 + $0x738] sm:$0xff]  ;;  %v1441_v55 = vld [vmem:[#allocation15 + $0x770] sm:$0xff]  ;;  %v4962_v56 = vpack.c.bf16 %v1428_v47, %v1423_v44  ;;  %v5058_v57 = vpack.c.bf16 %v1430_v52, %v1425_v51  ;;  %v5078_v44 = vpack.c.bf16 %v1242_v38, %v1237_v37  ;;  %v1252_v51 = vld [vmem:[#allocation15 + $0x188] sm:$0xff] }
 0x50c   :  { %v4964_v59 = vpack.c.bf16 %v1439_v18, %v1434_v53  ;;  %v5060_v60 = vpack.c.bf16 %v1441_v55, %v1436_v54  ;;  %v1402_v41 = vld [vmem:[#allocation15 + $0x638] sm:$0xff]  ;;  %v1407_v52 = vld [vmem:[#allocation15 + $0x660] sm:$0xff]  ;;  %v1412_v53 = vld [vmem:[#allocation15 + $0x688] sm:$0xff] }
 0x50d   :  { %v5106_v47 = vpack.c.bf16 %v1402_v41, %v1397_v39  ;;  %v1337_v18 = vld [vmem:[#allocation15 + $0x430] sm:$0xff]  ;;  %v1342_v54 = vld [vmem:[#allocation15 + $0x458] sm:$0xff] }
 0x50e   :  { %4947 = vmatpush1.bf16.msra.mxu0 %v4946_v63  ;;  %5043 = vmatpush1.bf16.msra.mxu1 %v5042_v2  ;;  %v1440_v63 = vld [vmem:[#allocation15 + $0x768] sm:$0xff]  ;;  %v1287_v2 = vld [vmem:[#allocation15 + $0x2a0] sm:$0xff]  ;;  %v1909_v41 = vld [vmem:[#allocation18 + $0x50] sm:$0xff] }
 0x50f   :  { %4949 = vmatprep.subr.bf16.mxu0 %v4948_v4  ;;  %5045 = vmatprep.subr.bf16.mxu1 %v5044_v5  ;;  %v5062_v4 = vpack.c.bf16 %v1440_v63, %v1435_v62  ;;  %v5064_v5 = vpack.c.bf16 %v1292_v3, %v1287_v2  ;;  %v1347_v62 = vld [vmem:[#allocation15 + $0x480] sm:$0xff]  ;;  %v1352_v63 = vld [vmem:[#allocation15 + $0x4a8] sm:$0xff] }
 0x512   :  { %4951 = vmatpush1.bf16.msra.mxu0 %v4950_v12  ;;  %5047 = vmatpush1.bf16.msra.mxu1 %v5046_v13  ;;  %v5066_v12 = vpack.c.bf16 %v1212_v7, %v1207_v6  ;;  %v6814_v13 = vmax.f32 %v6801_v23, 0.0  ;;  %v1427_v6 = vld [vmem:[#allocation15 + $0x700] sm:$0xff]  ;;  %v1432_v7 = vld [vmem:[#allocation15 + $0x728] sm:$0xff] }
 0x513   :  { %4953 = vmatprep.subr.bf16.mxu0 %v4952_v16  ;;  %5049 = vmatprep.subr.bf16.mxu1 %v5048_v17  ;;  %v1217_v16 = vld [vmem:[#allocation15 + $0x70] sm:$0xff]  ;;  %v1222_v17 = vld [vmem:[#allocation15 + $0x98] sm:$0xff]  ;;  %v5115_v11 = vpack.c.bf16 %v1432_v7, %v1427_v6 }
 0x514   :  { %v5070_v23 = vpack.c.bf16 %v1222_v17, %v1217_v16  ;;  %v1437_v16 = vld [vmem:[#allocation15 + $0x750] sm:$0xff]  ;;  %v1442_v17 = vld [vmem:[#allocation15 + $0x778] sm:$0xff] }
 0x515   :  { %v1936_v6 = vld [vmem:[#allocation18 + $0x128] sm:$0xff] }
 0x516   :  { %4955 = vmatpush1.bf16.msra.mxu0 %v4954_v27  ;;  %5051 = vmatpush1.bf16.msra.mxu1 %v5050_v28  ;;  %v1227_v27 = vld [vmem:[#allocation15 + $0xc0] sm:$0xff]  ;;  %v1232_v28 = vld [vmem:[#allocation15 + $0xe8] sm:$0xff] }
 0x517   :  { %4957 = vmatprep.subr.bf16.mxu0 %v4956_v32  ;;  %5053 = vmatprep.subr.bf16.mxu1 %v5052_v33  ;;  %v1317_v32 = vld [vmem:[#allocation15 + $0x390] sm:$0xff]  ;;  %v1322_v33 = vld [vmem:[#allocation15 + $0x3b8] sm:$0xff]  ;;  %v5074_v34 = vpack.c.bf16 %v1232_v28, %v1227_v27  ;;  %v1899_v27 = vld [vmem:[#allocation18] sm:$0xff] }
 0x518   :  { %v5076_v36 = vpack.c.bf16 %v1322_v33, %v1317_v32  ;;  %v1904_v28 = vld [vmem:[#allocation18 + $0x28] sm:$0xff]  ;;  %v1906_v32 = vld [vmem:[#allocation18 + $0x38] sm:$0xff] }
 0x519   :  { %v1910_v33 = vld [vmem:[#allocation18 + $0x58] sm:$0xff]  ;;  %v5122_v37 = vpack.c.bf16 %v1904_v28, %v1899_v27  ;;  %v1940_v7 = vld [vmem:[#allocation18 + $0x148] sm:$0xff] }
 0x51a   :  { %4959 = vmatpush1.bf16.msra.mxu0 %v4958_v42  ;;  %5055 = vmatpush1.bf16.msra.mxu1 %v5054_v43  ;;  %v1327_v42 = vld [vmem:[#allocation15 + $0x3e0] sm:$0xff]  ;;  %v1332_v43 = vld [vmem:[#allocation15 + $0x408] sm:$0xff] }
 0x51b   :  { %4961 = vmatprep.subr.bf16.mxu0 %v4960_v49  ;;  %5057 = vmatprep.subr.bf16.mxu1 %v5056_v50  ;;  %v5080_v49 = vpack.c.bf16 %v1332_v43, %v1327_v42  ;;  %v1247_v50 = vld [vmem:[#allocation15 + $0x160] sm:$0xff] }
 0x51c   :  { %v5082_v55 = vpack.c.bf16 %v1252_v51, %v1247_v50  ;;  %v1914_v42 = vld [vmem:[#allocation18 + $0x78] sm:$0xff]  ;;  %v1911_v43 = vld [vmem:[#allocation18 + $0x60] sm:$0xff]  ;;  %v1925_v50 = vld [vmem:[#allocation18 + $0xd0] sm:$0xff] }
 0x51d   :  { %v1922_v51 = vld [vmem:[#allocation18 + $0xb8] sm:$0xff] }
 0x51e   :  { %4963 = vmatpush1.bf16.msra.mxu0 %v4962_v56  ;;  %5059 = vmatpush1.bf16.msra.mxu1 %v5058_v57  ;;  %v5109_v56 = vpack.c.bf16 %v1412_v53, %v1407_v52  ;;  %v5084_v57 = vpack.c.bf16 %v1342_v54, %v1337_v18  ;;  %v1927_v52 = vld [vmem:[#allocation18 + $0xe0] sm:$0xff]  ;;  %v5126_v53 = vpack.c.bf16 %v1914_v42, %v1909_v41 }
 0x51f   :  { %4965 = vmatprep.subr.bf16.mxu0 %v4964_v59  ;;  %5061 = vmatprep.subr.bf16.mxu1 %v5060_v60  ;;  %v1262_v59 = vld [vmem:[#allocation15 + $0x1d8] sm:$0xff]  ;;  %v1417_v60 = vld [vmem:[#allocation15 + $0x6b0] sm:$0xff] }
 0x520   :  { %v5086_v2 = vpack.c.bf16 %v1262_v59, %v1257_v58  ;;  %v5112_v3 = vpack.c.bf16 %v1422_v61, %v1417_v60  ;;  %v5288_v58 = vpack.c.bf16 %v1927_v52, %v1922_v51  ;;  %v1926_v59 = vld [vmem:[#allocation18 + $0xd8] sm:$0xff]  ;;  %v1935_v61 = vld [vmem:[#allocation18 + $0x120] sm:$0xff] }
 0x521   :  { %v1930_v60 = vld [vmem:[#allocation18 + $0xf8] sm:$0xff]  ;;  %v1975_v52 = vld [vmem:[#allocation18 + $0x260] sm:$0xff] }
 0x522   :  { %4967 = vmatpush1.bf16.msra.mxu0 %v4966_v31  ;;  %5063 = vmatpush1.bf16.msra.mxu1 %v5062_v4  ;;  %v5088_v31 = vpack.c.bf16 %v1352_v63, %v1347_v62  ;;  %v1267_v4 = vld [vmem:[#allocation15 + $0x200] sm:$0xff]  ;;  %v1932_v62 = vld [vmem:[#allocation18 + $0x108] sm:$0xff] }
 0x523   :  { %5065 = vmatprep.subr.bf16.mxu0 %v5064_v5  ;;  %5096 = vmatprep.subr.bf16.mxu1 %v6409_v0  ;;  %v1272_v5 = vld [vmem:[#allocation15 + $0x228] sm:$0xff]  ;;  %v1970_v51 = vld [vmem:[#allocation18 + $0x238] sm:$0xff] }
 0x524   :  { %v5090_v10 = vpack.c.bf16 %v1272_v5, %v1267_v4  ;;  %v1931_v4 = vld [vmem:[#allocation18 + $0x100] sm:$0xff] }
 0x525   :  { %1606 = vmatmul.mubr.f32.vlgmr.msra.gmra.mrb[8].mxu0 %v6814_v13  ;;  %1748 = vmatmul.mubr.f32.vlgmr.msra.gmra.mrb[6].mxu1 %v6814_v13 }
 0x526   :  { %5067 = vmatpush3.bf16.msra.mxu0 %v5066_v12  ;;  %1818 = vmatprep.mubr.f32.mxu0 %v6803_v35  ;;  %v5103_v35 = vpack.c.bf16 %v1392_v30, %v1387_v29  ;;  %v5092_v12 = vpack.c.bf16 %v1362_v9, %v1357_v8  ;;  %v1901_v29 = vld [vmem:[#allocation18 + $0x10] sm:$0xff]  ;;  %v5280_v30 = vpack.c.bf16 %v1907_v22, %v1902_v21  ;;  %v1942_v9 = vld [vmem:[#allocation18 + $0x158] sm:$0xff]  ;;  %v1955_v22 = vld [vmem:[#allocation18 + $0x1c0] sm:$0xff] }
 0x527   :  { %5098 = vmatpush3.bf16.msra.mxu1 %v5097_v14  ;;  %5069 = vmatprep.subr.bf16.mxu0 %v5068_v15  ;;  %v1277_v14 = vld [vmem:[#allocation15 + $0x250] sm:$0xff]  ;;  %v1282_v15 = vld [vmem:[#allocation15 + $0x278] sm:$0xff]  ;;  %v5282_v38 = vpack.c.bf16 %v1906_v32, %v1901_v29  ;;  %v1951_v32 = vld [vmem:[#allocation18 + $0x1a0] sm:$0xff] }
 0x528   :  { %5099 = vmatprep.subr.bf16.mxu1 %v6409_v0  ;;  %4495 = vmatprep.mubr.msk.f32.mxu1 %vm6410_vm0, %v6411_v1  ;;  %v1945_v8 = vld [vmem:[#allocation18 + $0x170] sm:$0xff]  ;;  %v1950_v21 = vld [vmem:[#allocation18 + $0x198] sm:$0xff] }
 0x529   :  { %v5140_v28 = vpack.c.bf16 %v1955_v22, %v1950_v21  ;;  %v1949_v29 = vld [vmem:[#allocation18 + $0x190] sm:$0xff]  ;;  %v1996_v22 = vld [vmem:[#allocation18 + $0x308] sm:$0xff] }
 0x52a   :  { %5071 = vmatpush3.bf16.msra.mxu0 %v5070_v23  ;;  %v5094_v23 = vpack.c.bf16 %v1282_v15, %v1277_v14  ;;  %v5136_v14 = vpack.c.bf16 %v1945_v8, %v1940_v7  ;;  %v1939_v15 = vld [vmem:[#allocation18 + $0x140] sm:$0xff]  ;;  %v1986_v8 = vld [vmem:[#allocation18 + $0x2b8] sm:$0xff] }
 0x52b   :  { %5101 = vmatpush3.bf16.msra.mxu1 %v5100_v24  ;;  %5073 = vmatprep.subr.bf16.mxu0 %v5072_v25  ;;  %v5118_v24 = vpack.c.bf16 %v1442_v17, %v1437_v16  ;;  %v5120_v25 = vpack.c.bf16 %v1905_v20, %v1900_v19  ;;  %v1944_v16 = vld [vmem:[#allocation18 + $0x168] sm:$0xff]  ;;  %v1941_v17 = vld [vmem:[#allocation18 + $0x150] sm:$0xff]  ;;  %v1946_v20 = vld [vmem:[#allocation18 + $0x178] sm:$0xff] }
 0x52c   :  { %5102 = vmatprep.subr.bf16.mxu1 %v6409_v0  ;;  %v5298_v27 = vpack.c.bf16 %v1946_v20, %v1941_v17  ;;  %v1989_v17 = vld [vmem:[#allocation18 + $0x2d0] sm:$0xff]  ;;  %v1991_v20 = vld [vmem:[#allocation18 + $0x2e0] sm:$0xff] }
 0x52e   :  { %5075 = vmatpush3.bf16.msra.mxu0 %v5074_v34  ;;  %v1915_v34 = vld [vmem:[#allocation18 + $0x80] sm:$0xff] }
 0x52f   :  { %5104 = vmatpush3.bf16.msra.mxu1 %v5103_v35  ;;  %5077 = vmatprep.subr.bf16.mxu0 %v5076_v36  ;;  %v1912_v35 = vld [vmem:[#allocation18 + $0x68] sm:$0xff]  ;;  %v1917_v36 = vld [vmem:[#allocation18 + $0x90] sm:$0xff]  ;;  %v5124_v39 = vpack.c.bf16 %v1915_v34, %v1910_v33 }
 0x530   :  { %5105 = vmatprep.subr.bf16.mxu1 %v6409_v0  ;;  %v1956_v34 = vld [vmem:[#allocation18 + $0x1c8] sm:$0xff] }
 0x531   :  { %v5302_v41 = vpack.c.bf16 %v1956_v34, %v1951_v32  ;;  %v1999_v32 = vld [vmem:[#allocation18 + $0x320] sm:$0xff]  ;;  %v2001_v34 = vld [vmem:[#allocation18 + $0x330] sm:$0xff] }
 0x532   :  { %5079 = vmatpush3.bf16.msra.mxu0 %v5078_v44  ;;  %v5284_v44 = vpack.c.bf16 %v1917_v36, %v1912_v35  ;;  %v1960_v35 = vld [vmem:[#allocation18 + $0x1e8] sm:$0xff]  ;;  %v1965_v36 = vld [vmem:[#allocation18 + $0x210] sm:$0xff] }
 0x533   :  { %5107 = vmatpush3.bf16.msra.mxu1 %v5106_v47  ;;  %5081 = vmatprep.subr.bf16.mxu0 %v5080_v49  ;;  %v1916_v47 = vld [vmem:[#allocation18 + $0x88] sm:$0xff]  ;;  %v5144_v42 = vpack.c.bf16 %v1965_v36, %v1960_v35  ;;  %v2006_v36 = vld [vmem:[#allocation18 + $0x358] sm:$0xff] }
 0x534   :  { %5108 = vmatprep.subr.bf16.mxu1 %v6409_v0  ;;  %v1920_v49 = vld [vmem:[#allocation18 + $0xa8] sm:$0xff]  ;;  %v5286_v18 = vpack.c.bf16 %v1916_v47, %v1911_v43  ;;  %v1959_v43 = vld [vmem:[#allocation18 + $0x1e0] sm:$0xff]  ;;  %v1961_v47 = vld [vmem:[#allocation18 + $0x1f0] sm:$0xff] }
 0x535   :  { %v5128_v54 = vpack.c.bf16 %v1925_v50, %v1920_v49  ;;  %v1966_v50 = vld [vmem:[#allocation18 + $0x218] sm:$0xff] }
 0x536   :  { %5083 = vmatpush3.bf16.msra.mxu0 %v5082_v55  ;;  %v1919_v55 = vld [vmem:[#allocation18 + $0xa0] sm:$0xff] }
 0x537   :  { %5110 = vmatpush3.bf16.msra.mxu1 %v5109_v56  ;;  %5085 = vmatprep.subr.bf16.mxu0 %v5084_v57  ;;  %v1924_v56 = vld [vmem:[#allocation18 + $0xc8] sm:$0xff]  ;;  %v1921_v57 = vld [vmem:[#allocation18 + $0xb0] sm:$0xff] }
 0x538   :  { %5111 = vmatprep.subr.bf16.mxu1 %v6409_v0  ;;  %v5130_v63 = vpack.c.bf16 %v1924_v56, %v1919_v55  ;;  %v5306_v55 = vpack.c.bf16 %v1966_v50, %v1961_v47  ;;  %v5148_v56 = vpack.c.bf16 %v1975_v52, %v1970_v51  ;;  %v2009_v47 = vld [vmem:[#allocation18 + $0x370] sm:$0xff]  ;;  %v2011_v50 = vld [vmem:[#allocation18 + $0x380] sm:$0xff]  ;;  %v2016_v52 = vld [vmem:[#allocation18 + $0x3a8] sm:$0xff] }
 0x53a   :  { %5087 = vmatpush3.bf16.msra.mxu0 %v5086_v2  ;;  %v5132_v2 = vpack.c.bf16 %v1935_v61, %v1930_v60  ;;  %v1976_v61 = vld [vmem:[#allocation18 + $0x268] sm:$0xff] }
 0x53b   :  { %5113 = vmatpush3.bf16.msra.mxu1 %v5112_v3  ;;  %5089 = vmatprep.subr.bf16.mxu0 %v5088_v31  ;;  %v1929_v3 = vld [vmem:[#allocation18 + $0xf0] sm:$0xff]  ;;  %v1934_v31 = vld [vmem:[#allocation18 + $0x118] sm:$0xff] }
 0x53c   :  { %5114 = vmatprep.subr.bf16.mxu1 %v6409_v0 }
 0x53e   :  { %5091 = vmatpush3.bf16.msra.mxu0 %v5090_v10  ;;  %v1947_v10 = vld [vmem:[#allocation18 + $0x180] sm:$0xff] }
 0x53f   :  { %5116 = vmatpush3.bf16.msra.mxu1 %v5115_v11  ;;  %5093 = vmatprep.subr.bf16.mxu0 %v5092_v12  ;;  %v5134_v11 = vpack.c.bf16 %v1934_v31, %v1929_v3  ;;  %v5294_v12 = vpack.c.bf16 %v1936_v6, %v1931_v4  ;;  %v5296_v19 = vpack.c.bf16 %v1947_v10, %v1942_v9  ;;  %v1979_v4 = vld [vmem:[#allocation18 + $0x280] sm:$0xff]  ;;  %v1981_v6 = vld [vmem:[#allocation18 + $0x290] sm:$0xff]  ;;  %v1990_v9 = vld [vmem:[#allocation18 + $0x2d8] sm:$0xff] }
 0x540   :  { %5117 = vmatprep.subr.bf16.mxu1 %v6409_v0  ;;  %v1995_v10 = vld [vmem:[#allocation18 + $0x300] sm:$0xff] }
 0x542   :  { %5095 = vmatpush3.bf16.msra.mxu0 %v5094_v23  ;;  %v1952_v23 = vld [vmem:[#allocation18 + $0x1a8] sm:$0xff] }
 0x543   :  { %5119 = vmatpush3.bf16.msra.mxu1 %v5118_v24  ;;  %5121 = vmatprep.subr.bf16.mxu0 %v5120_v25  ;;  %v1957_v24 = vld [vmem:[#allocation18 + $0x1d0] sm:$0xff]  ;;  %v5138_v25 = vpack.c.bf16 %v1944_v16, %v1939_v15  ;;  %v5314_v15 = vpack.c.bf16 %v1986_v8, %v1981_v6  ;;  %v5156_v16 = vpack.c.bf16 %v1995_v10, %v1990_v9  ;;  %v2031_v8 = vld [vmem:[#allocation18 + $0x420] sm:$0xff]  ;;  %v2036_v10 = vld [vmem:[#allocation18 + $0x448] sm:$0xff] }
 0x544   :  { %5281 = vmatprep.subr.bf16.mxu1 %v5280_v30  ;;  %v1954_v30 = vld [vmem:[#allocation18 + $0x1b8] sm:$0xff]  ;;  %v5300_v33 = vpack.c.bf16 %v1957_v24, %v1952_v23  ;;  %v2000_v23 = vld [vmem:[#allocation18 + $0x328] sm:$0xff]  ;;  %v2005_v24 = vld [vmem:[#allocation18 + $0x350] sm:$0xff] }
 0x545   :  { %1819 = vmatmul.mubr.f32.vlgmr.msra.gmra.mrb[10].mxu0 %v6805_v40  ;;  %v1937_v40 = vld [vmem:[#allocation18 + $0x130] sm:$0xff] }
 0x546   :  { %4496 = vmatmul.mubr.f32.vlgmr.msra.gmra.mrb[8].mxu1 %v6814_v13  ;;  %5123 = vmatpush1.bf16.msra.mxu0 %v5122_v37  ;;  %v5290_v13 = vpack.c.bf16 %v1926_v59, %v1921_v57  ;;  %v5292_v5 = vpack.c.bf16 %v1937_v40, %v1932_v62  ;;  %v1962_v37 = vld [vmem:[#allocation18 + $0x1f8] sm:$0xff]  ;;  %v1969_v57 = vld [vmem:[#allocation18 + $0x230] sm:$0xff]  ;;  %v1971_v59 = vld [vmem:[#allocation18 + $0x240] sm:$0xff] }
 0x547   :  { %5283 = vmatpush1.bf16.msra.mxu1 %v5282_v38  ;;  %5125 = vmatprep.subr.bf16.mxu0 %v5124_v39  ;;  %v1967_v38 = vld [vmem:[#allocation18 + $0x220] sm:$0xff]  ;;  %v5142_v39 = vpack.c.bf16 %v1954_v30, %v1949_v29  ;;  %v1980_v62 = vld [vmem:[#allocation18 + $0x288] sm:$0xff]  ;;  %v1985_v40 = vld [vmem:[#allocation18 + $0x2b0] sm:$0xff]  ;;  %v5310_v3 = vpack.c.bf16 %v1976_v61, %v1971_v59  ;;  %v5318_v29 = vpack.c.bf16 %v1996_v22, %v1991_v20 }
 0x548   :  { %5285 = vmatprep.subr.bf16.mxu1 %v5284_v44  ;;  %v1964_v44 = vld [vmem:[#allocation18 + $0x208] sm:$0xff]  ;;  %v5304_v49 = vpack.c.bf16 %v1967_v38, %v1962_v37  ;;  %v5152_v31 = vpack.c.bf16 %v1985_v40, %v1980_v62  ;;  %v5160_v30 = vpack.c.bf16 %v2005_v24, %v2000_v23  ;;  %v2010_v37 = vld [vmem:[#allocation18 + $0x378] sm:$0xff]  ;;  %v2015_v38 = vld [vmem:[#allocation18 + $0x3a0] sm:$0xff] }
 0x549   :  { %v2019_v59 = vld [vmem:[#allocation18 + $0x3c0] sm:$0xff]  ;;  %v2021_v61 = vld [vmem:[#allocation18 + $0x3d0] sm:$0xff]  ;;  %v2026_v40 = vld [vmem:[#allocation18 + $0x3f8] sm:$0xff] }
 0x54a   :  { %5127 = vmatpush1.bf16.msra.mxu0 %v5126_v53  ;;  %v1972_v53 = vld [vmem:[#allocation18 + $0x248] sm:$0xff]  ;;  %v2029_v6 = vld [vmem:[#allocation18 + $0x410] sm:$0xff]  ;;  %v2039_v20 = vld [vmem:[#allocation18 + $0x460] sm:$0xff] }
 0x54b   :  { %5287 = vmatpush1.bf16.msra.mxu1 %v5286_v18  ;;  %5129 = vmatprep.subr.bf16.mxu0 %v5128_v54  ;;  %v1977_v18 = vld [vmem:[#allocation18 + $0x270] sm:$0xff]  ;;  %v5146_v54 = vpack.c.bf16 %v1964_v44, %v1959_v43  ;;  %v5322_v43 = vpack.c.bf16 %v2006_v36, %v2001_v34  ;;  %v5164_v44 = vpack.c.bf16 %v2015_v38, %v2010_v37  ;;  %v2046_v24 = vld [vmem:[#allocation18 + $0x498] sm:$0xff]  ;;  %v2051_v36 = vld [vmem:[#allocation18 + $0x4c0] sm:$0xff] }
 0x54c   :  { %5289 = vmatprep.subr.bf16.mxu1 %v5288_v58  ;;  %v1974_v58 = vld [vmem:[#allocation18 + $0x258] sm:$0xff]  ;;  %v5308_v60 = vpack.c.bf16 %v1977_v18, %v1972_v53  ;;  %v2020_v53 = vld [vmem:[#allocation18 + $0x3c8] sm:$0xff]  ;;  %v2025_v18 = vld [vmem:[#allocation18 + $0x3f0] sm:$0xff] }
 0x54d   :  { %v2041_v22 = vld [vmem:[#allocation18 + $0x470] sm:$0xff]  ;;  %v2056_v38 = vld [vmem:[#allocation18 + $0x4e8] sm:$0xff] }
 0x54e   :  { %5131 = vmatpush1.bf16.msra.mxu0 %v5130_v63  ;;  %v1982_v63 = vld [vmem:[#allocation18 + $0x298] sm:$0xff]  ;;  %v2049_v34 = vld [vmem:[#allocation18 + $0x4b0] sm:$0xff] }
 0x54f   :  { %5291 = vmatpush1.bf16.msra.mxu1 %v5290_v13  ;;  %5133 = vmatprep.subr.bf16.mxu0 %v5132_v2  ;;  %v1987_v13 = vld [vmem:[#allocation18 + $0x2c0] sm:$0xff]  ;;  %v5150_v2 = vpack.c.bf16 %v1974_v58, %v1969_v57  ;;  %v5326_v57 = vpack.c.bf16 %v2016_v52, %v2011_v50  ;;  %v5168_v58 = vpack.c.bf16 %v2025_v18, %v2020_v53  ;;  %v1459_v52 = vsub.s32 3, %v6763_v45 }
 0x550   :  { %5293 = vmatprep.subr.bf16.mxu1 %v5292_v5  ;;  %v1984_v5 = vld [vmem:[#allocation18 + $0x2a8] sm:$0xff]  ;;  %v5312_v7 = vpack.c.bf16 %v1987_v13, %v1982_v63  ;;  %v2030_v63 = vld [vmem:[#allocation18 + $0x418] sm:$0xff]  ;;  %v2035_v13 = vld [vmem:[#allocation18 + $0x440] sm:$0xff] }
 0x552   :  { %5135 = vmatpush1.bf16.msra.mxu0 %v5134_v11  ;;  %v1992_v11 = vld [vmem:[#allocation18 + $0x2e8] sm:$0xff] }
 0x553   :  { %5295 = vmatpush1.bf16.msra.mxu1 %v5294_v12  ;;  %5137 = vmatprep.subr.bf16.mxu0 %v5136_v14  ;;  %v1997_v12 = vld [vmem:[#allocation18 + $0x310] sm:$0xff]  ;;  %v5154_v14 = vpack.c.bf16 %v1984_v5, %v1979_v4  ;;  %v5330_v4 = vpack.c.bf16 %v2026_v40, %v2021_v61  ;;  %v5172_v5 = vpack.c.bf16 %v2035_v13, %v2030_v63  ;;  %v2064_v61 = vld [vmem:[#allocation18 + $0x528] sm:$0xff]  ;;  %v2066_v40 = vld [vmem:[#allocation18 + $0x538] sm:$0xff] }
 0x554   :  { %5297 = vmatprep.subr.bf16.mxu1 %v5296_v19  ;;  %v1994_v19 = vld [vmem:[#allocation18 + $0x2f8] sm:$0xff]  ;;  %v5316_v21 = vpack.c.bf16 %v1997_v12, %v1992_v11  ;;  %v2040_v11 = vld [vmem:[#allocation18 + $0x468] sm:$0xff]  ;;  %v2045_v12 = vld [vmem:[#allocation18 + $0x490] sm:$0xff] }
 0x555   :  { %v2070_v13 = vld [vmem:[#allocation18 + $0x558] sm:$0xff] }
 0x556   :  { %5139 = vmatpush1.bf16.msra.mxu0 %v5138_v25  ;;  %v2002_v25 = vld [vmem:[#allocation18 + $0x338] sm:$0xff] }
 0x557   :  { %5299 = vmatpush1.bf16.msra.mxu1 %v5298_v27  ;;  %5141 = vmatprep.subr.bf16.mxu0 %v5140_v28  ;;  %v2007_v27 = vld [vmem:[#allocation18 + $0x360] sm:$0xff]  ;;  %v5158_v28 = vpack.c.bf16 %v1994_v19, %v1989_v17  ;;  %v5334_v17 = vpack.c.bf16 %v2036_v10, %v2031_v8  ;;  %v5176_v19 = vpack.c.bf16 %v2045_v12, %v2040_v11  ;;  %v2069_v8 = vld [vmem:[#allocation18 + $0x550] sm:$0xff]  ;;  %v2076_v12 = vld [vmem:[#allocation18 + $0x588] sm:$0xff] }
 0x558   :  { %5301 = vmatprep.subr.bf16.mxu1 %v5300_v33  ;;  %v2004_v33 = vld [vmem:[#allocation18 + $0x348] sm:$0xff]  ;;  %v5320_v35 = vpack.c.bf16 %v2007_v27, %v2002_v25  ;;  %v2050_v25 = vld [vmem:[#allocation18 + $0x4b8] sm:$0xff]  ;;  %v2055_v27 = vld [vmem:[#allocation18 + $0x4e0] sm:$0xff] }
 0x559   :  { %v2071_v11 = vld [vmem:[#allocation18 + $0x560] sm:$0xff] }
 0x55a   :  { %5143 = vmatpush1.bf16.msra.mxu0 %v5142_v39  ;;  %v2012_v39 = vld [vmem:[#allocation18 + $0x388] sm:$0xff] }
 0x55b   :  { %5303 = vmatpush1.bf16.msra.mxu1 %v5302_v41  ;;  %5145 = vmatprep.subr.bf16.mxu0 %v5144_v42  ;;  %v2017_v41 = vld [vmem:[#allocation18 + $0x3b0] sm:$0xff]  ;;  %v5162_v42 = vpack.c.bf16 %v2004_v33, %v1999_v32  ;;  %v5338_v32 = vpack.c.bf16 %v2046_v24, %v2041_v22  ;;  %v5180_v33 = vpack.c.bf16 %v2055_v27, %v2050_v25  ;;  %v2079_v24 = vld [vmem:[#allocation18 + $0x5a0] sm:$0xff]  ;;  %v2084_v25 = vld [vmem:[#allocation18 + $0x5c8] sm:$0xff] }
 0x55c   :  { %5305 = vmatprep.subr.bf16.mxu1 %v5304_v49  ;;  %v2014_v49 = vld [vmem:[#allocation18 + $0x398] sm:$0xff]  ;;  %v5324_v51 = vpack.c.bf16 %v2017_v41, %v2012_v39  ;;  %v2060_v39 = vld [vmem:[#allocation18 + $0x508] sm:$0xff]  ;;  %v2065_v41 = vld [vmem:[#allocation18 + $0x530] sm:$0xff] }
 0x55e   :  { %5147 = vmatpush1.bf16.msra.mxu0 %v5146_v54  ;;  %v2022_v54 = vld [vmem:[#allocation18 + $0x3d8] sm:$0xff] }
 0x55f   :  { %5307 = vmatpush1.bf16.msra.mxu1 %v5306_v55  ;;  %5149 = vmatprep.subr.bf16.mxu0 %v5148_v56  ;;  %v2027_v55 = vld [vmem:[#allocation18 + $0x400] sm:$0xff]  ;;  %v5166_v56 = vpack.c.bf16 %v2014_v49, %v2009_v47  ;;  %v5342_v47 = vpack.c.bf16 %v2056_v38, %v2051_v36  ;;  %v5184_v49 = vpack.c.bf16 %v2065_v41, %v2060_v39  ;;  %v2089_v38 = vld [vmem:[#allocation18 + $0x5f0] sm:$0xff]  ;;  %v2094_v39 = vld [vmem:[#allocation18 + $0x618] sm:$0xff] }
 0x560   :  { %5309 = vmatprep.subr.bf16.mxu1 %v5308_v60  ;;  %v2024_v60 = vld [vmem:[#allocation18 + $0x3e8] sm:$0xff]  ;;  %v5328_v62 = vpack.c.bf16 %v2027_v55, %v2022_v54  ;;  %v5194_v36 = vpack.c.bf16 %v2084_v25, %v2079_v24  ;;  %v2121_v24 = vld [vmem:[#allocation18 + $0x6f0] sm:$0xff]  ;;  %v2126_v25 = vld [vmem:[#allocation18 + $0x718] sm:$0xff] }
 0x562   :  { %5151 = vmatpush1.bf16.msra.mxu0 %v5150_v2  ;;  %v2032_v2 = vld [vmem:[#allocation18 + $0x428] sm:$0xff] }
 0x563   :  { %5311 = vmatpush1.bf16.msra.mxu1 %v5310_v3  ;;  %5153 = vmatprep.subr.bf16.mxu0 %v5152_v31  ;;  %v2037_v3 = vld [vmem:[#allocation18 + $0x450] sm:$0xff]  ;;  %v5170_v31 = vpack.c.bf16 %v2024_v60, %v2019_v59 }
 0x564   :  { %5313 = vmatprep.subr.bf16.mxu1 %v5312_v7  ;;  %v2034_v7 = vld [vmem:[#allocation18 + $0x438] sm:$0xff]  ;;  %v5332_v9 = vpack.c.bf16 %v2037_v3, %v2032_v2  ;;  %v2075_v3 = vld [vmem:[#allocation18 + $0x580] sm:$0xff] }
 0x566   :  { %5155 = vmatpush1.bf16.msra.mxu0 %v5154_v14  ;;  %v2042_v14 = vld [vmem:[#allocation18 + $0x478] sm:$0xff] }
 0x567   :  { %5315 = vmatpush1.bf16.msra.mxu1 %v5314_v15  ;;  %5157 = vmatprep.subr.bf16.mxu0 %v5156_v16  ;;  %v2047_v15 = vld [vmem:[#allocation18 + $0x4a0] sm:$0xff]  ;;  %v5174_v16 = vpack.c.bf16 %v2034_v7, %v2029_v6 }
 0x568   :  { %5317 = vmatprep.subr.bf16.mxu1 %v5316_v21  ;;  %v2044_v21 = vld [vmem:[#allocation18 + $0x488] sm:$0xff]  ;;  %v5336_v23 = vpack.c.bf16 %v2047_v15, %v2042_v14  ;;  %v5188_v15 = vpack.c.bf16 %v2075_v3, %v2070_v13  ;;  %v2117_v13 = vld [vmem:[#allocation18 + $0x6d0] sm:$0xff] }
 0x569   :  { %v2080_v14 = vld [vmem:[#allocation18 + $0x5a8] sm:$0xff] }
 0x56a   :  { %5159 = vmatpush1.bf16.msra.mxu0 %v5158_v28  ;;  %v2052_v28 = vld [vmem:[#allocation18 + $0x4c8] sm:$0xff] }
 0x56b   :  { %5319 = vmatpush1.bf16.msra.mxu1 %v5318_v29  ;;  %5161 = vmatprep.subr.bf16.mxu0 %v5160_v30  ;;  %v2057_v29 = vld [vmem:[#allocation18 + $0x4f0] sm:$0xff]  ;;  %v5178_v30 = vpack.c.bf16 %v2044_v21, %v2039_v20  ;;  %v2087_v20 = vld [vmem:[#allocation18 + $0x5e0] sm:$0xff] }
 0x56c   :  { %5321 = vmatprep.subr.bf16.mxu1 %v5320_v35  ;;  %v2054_v35 = vld [vmem:[#allocation18 + $0x4d8] sm:$0xff]  ;;  %v5340_v37 = vpack.c.bf16 %v2057_v29, %v2052_v28  ;;  %v2081_v29 = vld [vmem:[#allocation18 + $0x5b0] sm:$0xff] }
 0x56e   :  { %5163 = vmatpush1.bf16.msra.mxu0 %v5162_v42  ;;  %v2062_v42 = vld [vmem:[#allocation18 + $0x518] sm:$0xff] }
 0x56f   :  { %5323 = vmatpush1.bf16.msra.mxu1 %v5322_v43  ;;  %5165 = vmatprep.subr.bf16.mxu0 %v5164_v44  ;;  %v2067_v43 = vld [vmem:[#allocation18 + $0x540] sm:$0xff]  ;;  %v5182_v44 = vpack.c.bf16 %v2054_v35, %v2049_v34  ;;  %v2092_v34 = vld [vmem:[#allocation18 + $0x608] sm:$0xff]  ;;  %v2097_v35 = vld [vmem:[#allocation18 + $0x630] sm:$0xff] }
 0x570   :  { %5325 = vmatprep.subr.bf16.mxu1 %v5324_v51  ;;  %v5344_v50 = vpack.c.bf16 %v2067_v43, %v2062_v42  ;;  %v6831_v51 = vld [vmem:[#allocation16] sm:$0x1f]  ;;  %v5356_v42 = vpack.c.bf16 %v2097_v35, %v2092_v34  ;;  %v2091_v43 = vld [vmem:[#allocation18 + $0x600] sm:$0xff]  ;;  %v1463_v34 = vsub.s32 4, %v6763_v45  ;;  %v2129_v35 = vld [vmem:[#allocation18 + $0x730] sm:$0xff] }
 0x571   :  { %v1448_v53 = vrot.slane %v6831_v51, %v6766_v46  ;;  %v1452_v18 = vrot.slane %v6831_v51, %v6769_v48  ;;  %v1460_v54 = vrot.slane %v6831_v51, %v1459_v52  ;;  %v3121_v45 = vld [vmem:[#allocation21 + $0x4d0] sm:$0xff] }
 0x572   :  { %5167 = vmatpush1.bf16.msra.mxu0 %v5166_v56 }
 0x573   :  { %5327 = vmatpush1.bf16.msra.mxu1 %v5326_v57  ;;  %5169 = vmatprep.subr.bf16.mxu0 %v5168_v58  ;;  %v2059_v57 = vld [vmem:[#allocation18 + $0x500] sm:$0xff] }
 0x574   :  { %5329 = vmatprep.subr.bf16.mxu1 %v5328_v62  ;;  %v2061_v62 = vld [vmem:[#allocation18 + $0x510] sm:$0xff]  ;;  %v5186_v6 = vpack.c.bf16 %v2064_v61, %v2059_v57  ;;  %v2104_v57 = vld [vmem:[#allocation18 + $0x668] sm:$0xff]  ;;  %v2106_v61 = vld [vmem:[#allocation18 + $0x678] sm:$0xff] }
 0x575   :  { %v5346_v7 = vpack.c.bf16 %v2066_v40, %v2061_v62  ;;  %v2110_v62 = vld [vmem:[#allocation18 + $0x698] sm:$0xff]  ;;  %v2115_v40 = vld [vmem:[#allocation18 + $0x6c0] sm:$0xff] }
 0x576   :  { %5171 = vmatpush1.bf16.msra.mxu0 %v5170_v31  ;;  %v2072_v31 = vld [vmem:[#allocation18 + $0x568] sm:$0xff] }
 0x577   :  { %5331 = vmatpush1.bf16.msra.mxu1 %v5330_v4  ;;  %5173 = vmatprep.subr.bf16.mxu0 %v5172_v5  ;;  %v2077_v4 = vld [vmem:[#allocation18 + $0x590] sm:$0xff] }
 0x578   :  { %5333 = vmatprep.subr.bf16.mxu1 %v5332_v9  ;;  %v2074_v9 = vld [vmem:[#allocation18 + $0x578] sm:$0xff] }
 0x579   :  { %v5190_v22 = vpack.c.bf16 %v2074_v9, %v2069_v8  ;;  %v2111_v8 = vld [vmem:[#allocation18 + $0x6a0] sm:$0xff]  ;;  %v2116_v9 = vld [vmem:[#allocation18 + $0x6c8] sm:$0xff] }
 0x57a   :  { %5175 = vmatpush1.bf16.msra.mxu0 %v5174_v16  ;;  %v5348_v16 = vpack.c.bf16 %v2077_v4, %v2072_v31  ;;  %v2109_v31 = vld [vmem:[#allocation18 + $0x690] sm:$0xff]  ;;  %v2114_v4 = vld [vmem:[#allocation18 + $0x6b8] sm:$0xff] }
 0x57b   :  { %5335 = vmatpush1.bf16.msra.mxu1 %v5334_v17  ;;  %5177 = vmatprep.subr.bf16.mxu0 %v5176_v19  ;;  %v2085_v17 = vld [vmem:[#allocation18 + $0x5d0] sm:$0xff]  ;;  %v2082_v19 = vld [vmem:[#allocation18 + $0x5b8] sm:$0xff] }
 0x57c   :  { %5337 = vmatprep.subr.bf16.mxu1 %v5336_v23  ;;  %v5350_v23 = vpack.c.bf16 %v2076_v12, %v2071_v11  ;;  %v5192_v27 = vpack.c.bf16 %v2085_v17, %v2080_v14  ;;  %v5352_v28 = vpack.c.bf16 %v2087_v20, %v2082_v19  ;;  %v2120_v11 = vld [vmem:[#allocation18 + $0x6e8] sm:$0xff]  ;;  %v2125_v12 = vld [vmem:[#allocation18 + $0x710] sm:$0xff]  ;;  %v2122_v14 = vld [vmem:[#allocation18 + $0x6f8] sm:$0xff]  ;;  %v5366_v17 = vpack.c.bf16 %v2116_v9, %v2111_v8 }
 0x57d   :  { %v2119_v19 = vld [vmem:[#allocation18 + $0x6e0] sm:$0xff]  ;;  %v2124_v20 = vld [vmem:[#allocation18 + $0x708] sm:$0xff]  ;;  %v2149_v8 = vld [vmem:[#allocation18 + $0x7d0] sm:$0xff] }
 0x57e   :  { %5179 = vmatpush1.bf16.msra.mxu0 %v5178_v30  ;;  %v2086_v30 = vld [vmem:[#allocation18 + $0x5d8] sm:$0xff] }
 0x57f   :  { %5339 = vmatpush1.bf16.msra.mxu1 %v5338_v32  ;;  %5181 = vmatprep.subr.bf16.mxu0 %v5180_v33  ;;  %v2090_v32 = vld [vmem:[#allocation18 + $0x5f8] sm:$0xff]  ;;  %v2095_v33 = vld [vmem:[#allocation18 + $0x620] sm:$0xff] }
 0x580   :  { %5341 = vmatprep.subr.bf16.mxu1 %v5340_v37  ;;  %v5354_v37 = vpack.c.bf16 %v2086_v30, %v2081_v29  ;;  %v5196_v41 = vpack.c.bf16 %v2095_v33, %v2090_v32  ;;  %v2132_v29 = vld [vmem:[#allocation18 + $0x748] sm:$0xff]  ;;  %v2137_v30 = vld [vmem:[#allocation18 + $0x770] sm:$0xff]  ;;  %v5210_v32 = vpack.c.bf16 %v2124_v20, %v2119_v19  ;;  %v5370_v33 = vpack.c.bf16 %v2126_v25, %v2121_v24  ;;  %v2154_v9 = vld [vmem:[#allocation18 + $0x7f8] sm:$0xff] }
 0x581   :  { %v2165_v19 = vld [vmem:[#allocation18 + $0x850] sm:$0xff]  ;;  %v2162_v20 = vld [vmem:[#allocation18 + $0x838] sm:$0xff]  ;;  %v2159_v25 = vld [vmem:[#allocation18 + $0x820] sm:$0xff] }
 0x582   :  { %5183 = vmatpush1.bf16.msra.mxu0 %v5182_v44  ;;  %v2096_v44 = vld [vmem:[#allocation18 + $0x628] sm:$0xff] }
 0x583   :  { %5343 = vmatpush1.bf16.msra.mxu1 %v5342_v47  ;;  %5185 = vmatprep.subr.bf16.mxu0 %v5184_v49  ;;  %v2100_v47 = vld [vmem:[#allocation18 + $0x648] sm:$0xff]  ;;  %v2105_v49 = vld [vmem:[#allocation18 + $0x670] sm:$0xff] }
 0x584   :  { %5345 = vmatprep.subr.bf16.mxu1 %v5344_v50  ;;  %v2102_v50 = vld [vmem:[#allocation18 + $0x658] sm:$0xff] }
 0x5f8   :  { %v1607_v55 = vpop.f32.mrb[8].mxu0  ;;  %v6841_v56 = vpop.f32.mrb[6].mxu1 }
 0x5f9   :  { %v5906_v58 = vadd.f32 %v1607_v55, %v1448_v53  ;;  %v1609_v59 = vpop.f32.mrb[9].mxu0  ;;  %v1751_v60 = vpop.f32.mrb[7].mxu1  ;;  %v2107_v53 = vld [vmem:[#allocation18 + $0x680] sm:$0xff] }
 0x5fa   :  { %v5907_v63 = vadd.f32 %v1609_v59, %v1452_v18  ;;  %v5909_v2 = vadd.f32 %v1751_v60, %v1460_v54  ;;  %v5198_v18 = vpack.c.bf16 %v2094_v39, %v2089_v38  ;;  %v5358_v54 = vpack.c.bf16 %v2096_v44, %v2091_v43  ;;  %v2099_v55 = vld [vmem:[#allocation18 + $0x640] sm:$0xff]  ;;  %v2101_v60 = vld [vmem:[#allocation18 + $0x650] sm:$0xff]  ;;  %v2142_v44 = vld [vmem:[#allocation18 + $0x798] sm:$0xff] }
 0x5fb   :  { %v6845_v10 = vmax.f32 %v5906_v58, 0.0  ;;  %v5200_v58 = vpack.c.bf16 %v2105_v49, %v2100_v47  ;;  %v5360_v59 = vpack.c.bf16 %v2107_v53, %v2102_v50  ;;  %v5362_v3 = vpack.c.bf16 %v2106_v61, %v2101_v60  ;;  %v2131_v39 = vld [vmem:[#allocation18 + $0x740] sm:$0xff]  ;;  %v2145_v43 = vld [vmem:[#allocation18 + $0x7b0] sm:$0xff] }
 0x5fc   :  { %v6843_v5 = vmax.f32 %v5907_v63, 0.0  ;;  %v6849_v21 = vmax.f32 %v5909_v2, 0.0  ;;  %v2112_v63 = vld [vmem:[#allocation18 + $0x6a8] sm:$0xff]  ;;  %v5202_v2 = vpack.c.bf16 %v2104_v57, %v2099_v55  ;;  %v5372_v38 = vpack.c.bf16 %v2137_v30, %v2132_v29  ;;  %v2147_v47 = vld [vmem:[#allocation18 + $0x7c0] sm:$0xff]  ;;  %v2141_v61 = vld [vmem:[#allocation18 + $0x790] sm:$0xff] }
 0x5fd   :  { %v1464_v50 = vrot.slane %v6831_v51, %v1463_v34  ;;  %v2144_v55 = vld [vmem:[#allocation18 + $0x7a8] sm:$0xff]  ;;  %v5376_v60 = vpack.c.bf16 %v2147_v47, %v2142_v44  ;;  %v2161_v30 = vld [vmem:[#allocation18 + $0x830] sm:$0xff]  ;;  %v2171_v47 = vld [vmem:[#allocation18 + $0x880] sm:$0xff] }
 0x5fe   :  { %2390 = vmatprep.mubr.f32.mxu0 %v6843_v5  ;;  %2603 = vmatprep.mubr.f32.mxu1 %v6843_v5 }
 0x5ff   :  { %2391 = vmatmul.mubr.f32.vlgmr.msra.gmra.mrb[12].mxu0 %v6845_v10  ;;  %2604 = vmatmul.mubr.f32.vlgmr.msra.gmra.mrb[10].mxu1 %v6845_v10 }
 0x600   :  { %5187 = vmatpush1.bf16.msra.mxu0 %v5186_v6  ;;  %5347 = vmatpush1.bf16.msra.mxu1 %v5346_v7  ;;  %v5204_v6 = vpack.c.bf16 %v2115_v40, %v2110_v62  ;;  %v5364_v7 = vpack.c.bf16 %v2117_v13, %v2112_v63  ;;  %v2146_v62 = vld [vmem:[#allocation18 + $0x7b8] sm:$0xff] }
 0x601   :  { %2461 = vmatprep.mubr.f32.mxu0 %v6849_v21  ;;  %2674 = vmatprep.mubr.f32.mxu1 %v6849_v21  ;;  %v2150_v40 = vld [vmem:[#allocation18 + $0x7d8] sm:$0xff] }
 0x602   :  { %5189 = vmatprep.subr.bf16.mxu0 %v5188_v15  ;;  %5349 = vmatprep.subr.bf16.mxu1 %v5348_v16  ;;  %v2127_v15 = vld [vmem:[#allocation18 + $0x720] sm:$0xff]  ;;  %v5206_v16 = vpack.c.bf16 %v2114_v4, %v2109_v31  ;;  %v2157_v31 = vld [vmem:[#allocation18 + $0x810] sm:$0xff] }
 0x604   :  { %5191 = vmatpush1.bf16.msra.mxu0 %v5190_v22  ;;  %5351 = vmatpush1.bf16.msra.mxu1 %v5350_v23  ;;  %v5208_v22 = vpack.c.bf16 %v2125_v12, %v2120_v11  ;;  %v5368_v23 = vpack.c.bf16 %v2127_v15, %v2122_v14  ;;  %v2151_v14 = vld [vmem:[#allocation18 + $0x7e0] sm:$0xff]  ;;  %v2156_v15 = vld [vmem:[#allocation18 + $0x808] sm:$0xff] }
 0x605   :  { %5193 = vmatprep.subr.bf16.mxu0 %v5192_v27  ;;  %5353 = vmatprep.subr.bf16.mxu1 %v5352_v28  ;;  %v2130_v27 = vld [vmem:[#allocation18 + $0x738] sm:$0xff]  ;;  %v2135_v28 = vld [vmem:[#allocation18 + $0x760] sm:$0xff]  ;;  %v5382_v24 = vpack.c.bf16 %v2156_v15, %v2151_v14  ;;  %v2200_v14 = vld [vmem:[#allocation18 + $0x968] sm:$0xff] }
 0x606   :  { %v2205_v15 = vld [vmem:[#allocation18 + $0x990] sm:$0xff] }
 0x608   :  { %5195 = vmatpush1.bf16.msra.mxu0 %v5194_v36  ;;  %5355 = vmatpush1.bf16.msra.mxu1 %v5354_v37  ;;  %v2134_v36 = vld [vmem:[#allocation18 + $0x758] sm:$0xff]  ;;  %v5212_v37 = vpack.c.bf16 %v2135_v28, %v2130_v27  ;;  %v2164_v27 = vld [vmem:[#allocation18 + $0x848] sm:$0xff] }
 0x609   :  { %5197 = vmatprep.subr.bf16.mxu0 %v5196_v41  ;;  %5357 = vmatprep.subr.bf16.mxu1 %v5356_v42  ;;  %v2136_v41 = vld [vmem:[#allocation18 + $0x768] sm:$0xff]  ;;  %v5214_v53 = vpack.c.bf16 %v2134_v36, %v2129_v35  ;;  %v2175_v35 = vld [vmem:[#allocation18 + $0x8a0] sm:$0xff] }
 0x60a   :  { %v2140_v42 = vld [vmem:[#allocation18 + $0x788] sm:$0xff] }
 0x60b   :  { %v2172_v36 = vld [vmem:[#allocation18 + $0x888] sm:$0xff] }
 0x60c   :  { %5199 = vmatpush1.bf16.msra.mxu0 %v5198_v18  ;;  %5359 = vmatpush1.bf16.msra.mxu1 %v5358_v54  ;;  %v5374_v18 = vpack.c.bf16 %v2136_v41, %v2131_v39  ;;  %v2139_v54 = vld [vmem:[#allocation18 + $0x780] sm:$0xff]  ;;  %v2169_v41 = vld [vmem:[#allocation18 + $0x870] sm:$0xff] }
 0x60d   :  { %5201 = vmatprep.subr.bf16.mxu0 %v5200_v58  ;;  %5361 = vmatprep.subr.bf16.mxu1 %v5360_v59  ;;  %v5216_v59 = vpack.c.bf16 %v2145_v43, %v2140_v42  ;;  %v2174_v42 = vld [vmem:[#allocation18 + $0x898] sm:$0xff] }
 0x610   :  { %5203 = vmatpush1.bf16.msra.mxu0 %v5202_v2  ;;  %5363 = vmatpush1.bf16.msra.mxu1 %v5362_v3  ;;  %v2155_v2 = vld [vmem:[#allocation18 + $0x800] sm:$0xff]  ;;  %v2152_v3 = vld [vmem:[#allocation18 + $0x7e8] sm:$0xff] }
 0x611   :  { %5205 = vmatprep.subr.bf16.mxu0 %v5204_v6  ;;  %5365 = vmatprep.subr.bf16.mxu1 %v5364_v7  ;;  %v5218_v6 = vpack.c.bf16 %v2144_v55, %v2139_v54  ;;  %v5378_v7 = vpack.c.bf16 %v2146_v62, %v2141_v61  ;;  %v5220_v11 = vpack.c.bf16 %v2155_v2, %v2150_v40  ;;  %v2187_v54 = vld [vmem:[#allocation18 + $0x900] sm:$0xff]  ;;  %v2181_v62 = vld [vmem:[#allocation18 + $0x8d0] sm:$0xff]  ;;  %v2186_v40 = vld [vmem:[#allocation18 + $0x8f8] sm:$0xff] }
 0x612   :  { %v5380_v12 = vpack.c.bf16 %v2157_v31, %v2152_v3  ;;  %v5230_v55 = vpack.c.bf16 %v2174_v42, %v2169_v41  ;;  %v2192_v2 = vld [vmem:[#allocation18 + $0x928] sm:$0xff]  ;;  %v2197_v3 = vld [vmem:[#allocation18 + $0x950] sm:$0xff]  ;;  %v1456_v41 = vrot.slane %v6831_v51, %v6790_v26 }
 0x614   :  { %5207 = vmatpush1.bf16.msra.mxu0 %v5206_v16  ;;  %5367 = vmatpush1.bf16.msra.mxu1 %v5366_v17  ;;  %v2160_v16 = vld [vmem:[#allocation18 + $0x828] sm:$0xff] }
 0x615   :  { %5209 = vmatprep.subr.bf16.mxu0 %v5208_v22  ;;  %5369 = vmatprep.subr.bf16.mxu1 %v5368_v23  ;;  %v2167_v22 = vld [vmem:[#allocation18 + $0x860] sm:$0xff]  ;;  %v5222_v23 = vpack.c.bf16 %v2154_v9, %v2149_v8  ;;  %v5224_v28 = vpack.c.bf16 %v2165_v19, %v2160_v16  ;;  %v5396_v9 = vpack.c.bf16 %v2197_v3, %v2192_v2  ;;  %v2202_v16 = vld [vmem:[#allocation18 + $0x978] sm:$0xff]  ;;  %v2237_v2 = vld [vmem:[#allocation18 + $0xa90] sm:$0xff] }
 0x616   :  { %v5384_v29 = vpack.c.bf16 %v2167_v22, %v2162_v20  ;;  %v2207_v19 = vld [vmem:[#allocation18 + $0x9a0] sm:$0xff] }
 0x618   :  { %5211 = vmatpush1.bf16.msra.mxu0 %v5210_v32  ;;  %5371 = vmatpush1.bf16.msra.mxu1 %v5370_v33  ;;  %v4164_v49 = vpop.f32.mrb[10].mxu0  ;;  %v2166_v32 = vld [vmem:[#allocation18 + $0x858] sm:$0xff] }
 0x619   :  { %v1890_v57 = vpop.f32.mrb[8].mxu1  ;;  %v4165_v58 = vpop.f32.mrb[11].mxu0  ;;  %5213 = vmatprep.subr.bf16.mxu0 %v5212_v37  ;;  %5373 = vmatprep.subr.bf16.mxu1 %v5372_v38  ;;  %v2170_v33 = vld [vmem:[#allocation18 + $0x878] sm:$0xff]  ;;  %v2177_v37 = vld [vmem:[#allocation18 + $0x8b0] sm:$0xff]  ;;  %v5226_v38 = vpack.c.bf16 %v2164_v27, %v2159_v25  ;;  %v5386_v39 = vpack.c.bf16 %v2166_v32, %v2161_v30  ;;  %v5240_v25 = vpack.c.bf16 %v2205_v15, %v2200_v14  ;;  %v2215_v32 = vld [vmem:[#allocation18 + $0x9e0] sm:$0xff] }
 0x61a   :  { %v4166_v63 = vadd.f32 %v4165_v58, %v4164_v49  ;;  %v4497_v13 = vpop.f32.mrb[9].mxu1  ;;  %v5228_v43 = vpack.c.bf16 %v2175_v35, %v2170_v33  ;;  %v5388_v44 = vpack.c.bf16 %v2177_v37, %v2172_v36  ;;  %v2176_v49 = vld [vmem:[#allocation18 + $0x8a8] sm:$0xff]  ;;  %v2179_v58 = vld [vmem:[#allocation18 + $0x8c0] sm:$0xff]  ;;  %v5400_v27 = vpack.c.bf16 %v2207_v19, %v2202_v16  ;;  %v2210_v30 = vld [vmem:[#allocation18 + $0x9b8] sm:$0xff] }
 0x61b   :  { %v2195_v13 = vld [vmem:[#allocation18 + $0x940] sm:$0xff]  ;;  %v2212_v33 = vld [vmem:[#allocation18 + $0x9c8] sm:$0xff]  ;;  %v2217_v35 = vld [vmem:[#allocation18 + $0x9f0] sm:$0xff]  ;;  %v5244_v42 = vpack.c.bf16 %v2215_v32, %v2210_v30 }
 0x61c   :  { %v1821_v4 = vadd.f32 %v4166_v63, %v1464_v50  ;;  %5215 = vmatpush1.bf16.msra.mxu0 %v5214_v53  ;;  %5375 = vmatpush1.bf16.msra.mxu1 %v5374_v18  ;;  %v2180_v50 = vld [vmem:[#allocation18 + $0x8c8] sm:$0xff]  ;;  %v2185_v53 = vld [vmem:[#allocation18 + $0x8f0] sm:$0xff]  ;;  %v2182_v18 = vld [vmem:[#allocation18 + $0x8d8] sm:$0xff] }
 0x61d   :  { %5217 = vmatprep.subr.bf16.mxu0 %v5216_v59  ;;  %5377 = vmatprep.subr.bf16.mxu1 %v5376_v60  ;;  %v2184_v59 = vld [vmem:[#allocation18 + $0x8e8] sm:$0xff]  ;;  %v5232_v60 = vpack.c.bf16 %v2185_v53, %v2180_v50  ;;  %v5392_v61 = vpack.c.bf16 %v2187_v54, %v2182_v18  ;;  %v2190_v63 = vld [vmem:[#allocation18 + $0x918] sm:$0xff]  ;;  %v2225_v50 = vld [vmem:[#allocation18 + $0xa30] sm:$0xff] }
 0x61e   :  { %v6859_v17 = vadd.f32 %v1890_v57, %v1821_v4  ;;  %v5390_v57 = vpack.c.bf16 %v2176_v49, %v2171_v47  ;;  %v5234_v31 = vpack.c.bf16 %v2184_v59, %v2179_v58  ;;  %v5394_v4 = vpack.c.bf16 %v2186_v40, %v2181_v62  ;;  %v2216_v47 = vld [vmem:[#allocation18 + $0x9e8] sm:$0xff]  ;;  %v2222_v53 = vld [vmem:[#allocation18 + $0xa18] sm:$0xff]  ;;  %v2227_v18 = vld [vmem:[#allocation18 + $0xa40] sm:$0xff] }
 0x61f   :  { %v5236_v8 = vpack.c.bf16 %v2195_v13, %v2190_v63  ;;  %v2220_v49 = vld [vmem:[#allocation18 + $0xa08] sm:$0xff]  ;;  %v5908_v59 = vadd.f32 %v6841_v56, %v1456_v41  ;;  %v2226_v62 = vld [vmem:[#allocation18 + $0xa38] sm:$0xff]  ;;  %v2235_v63 = vld [vmem:[#allocation18 + $0xa80] sm:$0xff] }
 0x620   :  { %5219 = vmatpush1.bf16.msra.mxu0 %v5218_v6  ;;  %5379 = vmatpush1.bf16.msra.mxu1 %v5378_v7  ;;  %v2189_v6 = vld [vmem:[#allocation18 + $0x910] sm:$0xff]  ;;  %v2194_v7 = vld [vmem:[#allocation18 + $0x938] sm:$0xff]  ;;  %v2224_v58 = vld [vmem:[#allocation18 + $0xa28] sm:$0xff]  ;;  %v5248_v51 = vpack.c.bf16 %v2225_v50, %v2220_v49 }
 0x621   :  { %5221 = vmatprep.subr.bf16.mxu0 %v5220_v11  ;;  %5381 = vmatprep.subr.bf16.mxu1 %v5380_v12  ;;  %v2191_v11 = vld [vmem:[#allocation18 + $0x920] sm:$0xff]  ;;  %v2196_v12 = vld [vmem:[#allocation18 + $0x948] sm:$0xff]  ;;  %v5238_v20 = vpack.c.bf16 %v2194_v7, %v2189_v6  ;;  %v2230_v40 = vld [vmem:[#allocation18 + $0xa58] sm:$0xff]  ;;  %v6864_v7 = vmax.f32 %v5908_v59, 0.0 }
 0x622   :  { %v5398_v22 = vpack.c.bf16 %v2196_v12, %v2191_v11  ;;  %v2232_v13 = vld [vmem:[#allocation18 + $0xa68] sm:$0xff]  ;;  %v2234_v6 = vld [vmem:[#allocation18 + $0xa78] sm:$0xff]  ;;  %v5252_v56 = vpack.c.bf16 %v2235_v63, %v2230_v40  ;;  %v2245_v14 = vld [vmem:[#allocation18 + $0xad0] sm:$0xff] }
 0x623   :  { %v2236_v11 = vld [vmem:[#allocation18 + $0xa88] sm:$0xff]  ;;  %v2242_v15 = vld [vmem:[#allocation18 + $0xab8] sm:$0xff]  ;;  %v2247_v16 = vld [vmem:[#allocation18 + $0xae0] sm:$0xff] }
 0x624   :  { %5223 = vmatpush1.bf16.msra.mxu0 %v5222_v23  ;;  %5383 = vmatpush1.bf16.msra.mxu1 %v5382_v24  ;;  %v2199_v23 = vld [vmem:[#allocation18 + $0x960] sm:$0xff]  ;;  %v2204_v24 = vld [vmem:[#allocation18 + $0x988] sm:$0xff]  ;;  %v2262_v49 = vld [vmem:[#allocation18 + $0xb58] sm:$0xff] }
 0x625   :  { %5225 = vmatprep.subr.bf16.mxu0 %v5224_v28  ;;  %5385 = vmatprep.subr.bf16.mxu1 %v5384_v29  ;;  %v2201_v28 = vld [vmem:[#allocation18 + $0x970] sm:$0xff]  ;;  %v2206_v29 = vld [vmem:[#allocation18 + $0x998] sm:$0xff]  ;;  %v5242_v36 = vpack.c.bf16 %v2204_v24, %v2199_v23  ;;  %v2240_v12 = vld [vmem:[#allocation18 + $0xaa8] sm:$0xff] }
 0x626   :  { %v5402_v37 = vpack.c.bf16 %v2206_v29, %v2201_v28  ;;  %v2244_v23 = vld [vmem:[#allocation18 + $0xac8] sm:$0xff]  ;;  %v5256_v24 = vpack.c.bf16 %v2245_v14, %v2240_v12  ;;  %v2246_v28 = vld [vmem:[#allocation18 + $0xad8] sm:$0xff]  ;;  %v2255_v30 = vld [vmem:[#allocation18 + $0xb20] sm:$0xff] }
 0x627   :  { %v2250_v29 = vld [vmem:[#allocation18 + $0xaf8] sm:$0xff]  ;;  %v2252_v32 = vld [vmem:[#allocation18 + $0xb08] sm:$0xff]  ;;  %v2267_v50 = vld [vmem:[#allocation18 + $0xb80] sm:$0xff] }
 0x628   :  { %5227 = vmatpush1.bf16.msra.mxu0 %v5226_v38  ;;  %5387 = vmatpush1.bf16.msra.mxu1 %v5386_v39  ;;  %v2209_v38 = vld [vmem:[#allocation18 + $0x9b0] sm:$0xff]  ;;  %v2214_v39 = vld [vmem:[#allocation18 + $0x9d8] sm:$0xff]  ;;  %v2287_v12 = vld [vmem:[#allocation18 + $0xc20] sm:$0xff] }
 0x629   :  { %5229 = vmatprep.subr.bf16.mxu0 %v5228_v43  ;;  %5389 = vmatprep.subr.bf16.mxu1 %v5388_v44  ;;  %v5404_v43 = vpack.c.bf16 %v2217_v35, %v2212_v33  ;;  %v2211_v44 = vld [vmem:[#allocation18 + $0x9c0] sm:$0xff]  ;;  %v5246_v54 = vpack.c.bf16 %v2214_v39, %v2209_v38  ;;  %v2257_v33 = vld [vmem:[#allocation18 + $0xb30] sm:$0xff]  ;;  %v2254_v38 = vld [vmem:[#allocation18 + $0xb18] sm:$0xff]  ;;  %v5260_v39 = vpack.c.bf16 %v2255_v30, %v2250_v29 }
 0x62a   :  { %v5420_v41 = vpack.c.bf16 %v2257_v33, %v2252_v32  ;;  %v2261_v59 = vld [vmem:[#allocation18 + $0xb50] sm:$0xff] }
 0x62b   :  { %v2277_v40 = vld [vmem:[#allocation18 + $0xbd0] sm:$0xff] }
 0x62c   :  { %5231 = vmatpush1.bf16.msra.mxu0 %v5230_v55  ;;  %5391 = vmatpush1.bf16.msra.mxu1 %v5390_v57  ;;  %v5406_v55 = vpack.c.bf16 %v2216_v47, %v2211_v44  ;;  %v2219_v57 = vld [vmem:[#allocation18 + $0xa00] sm:$0xff]  ;;  %v2260_v44 = vld [vmem:[#allocation18 + $0xb48] sm:$0xff]  ;;  %v2265_v47 = vld [vmem:[#allocation18 + $0xb70] sm:$0xff] }
 0x62d   :  { %5233 = vmatprep.subr.bf16.mxu0 %v5232_v60  ;;  %5393 = vmatprep.subr.bf16.mxu1 %v5392_v61  ;;  %v5408_v60 = vpack.c.bf16 %v2227_v18, %v2222_v53  ;;  %v2221_v61 = vld [vmem:[#allocation18 + $0xa10] sm:$0xff]  ;;  %v5250_v3 = vpack.c.bf16 %v2224_v58, %v2219_v57  ;;  %v5264_v57 = vpack.c.bf16 %v2265_v47, %v2260_v44  ;;  %v2148_v44 = vld [vmem:[#allocation18 + $0x7c8] sm:$0xff] }
 0x62e   :  { %v5424_v58 = vpack.c.bf16 %v2267_v50, %v2262_v49  ;;  %v2297_v29 = vld [vmem:[#allocation18 + $0xc70] sm:$0xff] }
 0x62f   :  { %v2289_v33 = vld [vmem:[#allocation18 + $0xc30] sm:$0xff] }
 0x630   :  { %5235 = vmatpush1.bf16.msra.mxu0 %v5234_v31  ;;  %5395 = vmatpush1.bf16.msra.mxu1 %v5394_v4  ;;  %v5410_v31 = vpack.c.bf16 %v2226_v62, %v2221_v61  ;;  %v2229_v4 = vld [vmem:[#allocation18 + $0xa50] sm:$0xff]  ;;  %v2275_v61 = vld [vmem:[#allocation18 + $0xbc0] sm:$0xff]  ;;  %v2272_v62 = vld [vmem:[#allocation18 + $0xba8] sm:$0xff] }
 0x631   :  { %5237 = vmatprep.subr.bf16.mxu0 %v5236_v8  ;;  %5397 = vmatprep.subr.bf16.mxu1 %v5396_v9  ;;  %v5412_v8 = vpack.c.bf16 %v2237_v2, %v2232_v13  ;;  %v2231_v9 = vld [vmem:[#allocation18 + $0xa60] sm:$0xff]  ;;  %v5254_v19 = vpack.c.bf16 %v2234_v6, %v2229_v4  ;;  %v2269_v2 = vld [vmem:[#allocation18 + $0xb90] sm:$0xff]  ;;  %v5428_v4 = vpack.c.bf16 %v2277_v40, %v2272_v62  ;;  %v6871_v62 = vmax.f32 %v6859_v17, 0.0 }
 0x632   :  { %v2271_v6 = vld [vmem:[#allocation18 + $0xba0] sm:$0xff] }
 0x634   :  { %5239 = vmatpush1.bf16.msra.mxu0 %v5238_v20  ;;  %5399 = vmatpush1.bf16.msra.mxu1 %v5398_v22  ;;  %v5414_v20 = vpack.c.bf16 %v2236_v11, %v2231_v9  ;;  %v2239_v22 = vld [vmem:[#allocation18 + $0xaa0] sm:$0xff]  ;;  %v2285_v9 = vld [vmem:[#allocation18 + $0xc10] sm:$0xff]  ;;  %v2282_v11 = vld [vmem:[#allocation18 + $0xbf8] sm:$0xff] }
 0x635   :  { %5241 = vmatprep.subr.bf16.mxu0 %v5240_v25  ;;  %5401 = vmatprep.subr.bf16.mxu1 %v5400_v27  ;;  %v5416_v25 = vpack.c.bf16 %v2247_v16, %v2242_v15  ;;  %v2241_v27 = vld [vmem:[#allocation18 + $0xab0] sm:$0xff]  ;;  %v5258_v35 = vpack.c.bf16 %v2244_v23, %v2239_v22  ;;  %v2279_v16 = vld [vmem:[#allocation18 + $0xbe0] sm:$0xff]  ;;  %v5432_v22 = vpack.c.bf16 %v2287_v12, %v2282_v11 }
 0x636   :  { %v2281_v23 = vld [vmem:[#allocation18 + $0xbf0] sm:$0xff] }
 0x638   :  { %5243 = vmatpush1.bf16.msra.mxu0 %v5242_v36  ;;  %5403 = vmatpush1.bf16.msra.mxu1 %v5402_v37  ;;  %v5418_v36 = vpack.c.bf16 %v2246_v28, %v2241_v27  ;;  %v2249_v37 = vld [vmem:[#allocation18 + $0xaf0] sm:$0xff]  ;;  %v2295_v27 = vld [vmem:[#allocation18 + $0xc60] sm:$0xff]  ;;  %v2292_v28 = vld [vmem:[#allocation18 + $0xc48] sm:$0xff] }
 0x639   :  { %5245 = vmatprep.subr.bf16.mxu0 %v5244_v42  ;;  %5405 = vmatprep.subr.bf16.mxu1 %v5404_v43  ;;  %v2251_v42 = vld [vmem:[#allocation18 + $0xb00] sm:$0xff]  ;;  %v2256_v43 = vld [vmem:[#allocation18 + $0xb28] sm:$0xff]  ;;  %v5262_v53 = vpack.c.bf16 %v2254_v38, %v2249_v37  ;;  %v5436_v37 = vpack.c.bf16 %v2297_v29, %v2292_v28  ;;  %v1938_v29 = vld [vmem:[#allocation18 + $0x138] sm:$0xff] }
 0x63a   :  { %v5422_v18 = vpack.c.bf16 %v2256_v43, %v2251_v42  ;;  %v2291_v38 = vld [vmem:[#allocation18 + $0xc40] sm:$0xff]  ;;  %v1988_v42 = vld [vmem:[#allocation18 + $0x2c8] sm:$0xff] }
 0x63b   :  { %v2143_v43 = vld [vmem:[#allocation18 + $0x7a0] sm:$0xff] }
 0x63c   :  { %5247 = vmatpush1.bf16.msra.mxu0 %v5246_v54  ;;  %5407 = vmatpush1.bf16.msra.mxu1 %v5406_v55  ;;  %v2259_v54 = vld [vmem:[#allocation18 + $0xb40] sm:$0xff]  ;;  %v2264_v55 = vld [vmem:[#allocation18 + $0xb68] sm:$0xff] }
 0x63d   :  { %5249 = vmatprep.subr.bf16.mxu0 %v5248_v51  ;;  %5409 = vmatprep.subr.bf16.mxu1 %v5408_v60  ;;  %v2266_v51 = vld [vmem:[#allocation18 + $0xb78] sm:$0xff]  ;;  %v5266_v63 = vpack.c.bf16 %v2264_v55, %v2259_v54  ;;  %v1908_v54 = vld [vmem:[#allocation18 + $0x48] sm:$0xff]  ;;  %v2063_v55 = vld [vmem:[#allocation18 + $0x520] sm:$0xff] }
 0x63e   :  { %v2270_v60 = vld [vmem:[#allocation18 + $0xb98] sm:$0xff]  ;;  %v5426_v13 = vpack.c.bf16 %v2266_v51, %v2261_v59  ;;  %v2153_v51 = vld [vmem:[#allocation18 + $0x7f0] sm:$0xff] }
 0x63f   :  { %2462 = vmatmul.mubr.f32.vlgmr.msra.gmra.mrb[12].mxu0 %v6864_v7  ;;  %2675 = vmatmul.mubr.f32.vlgmr.msra.gmra.mrb[10].mxu1 %v6864_v7  ;;  %v1998_v59 = vld [vmem:[#allocation18 + $0x318] sm:$0xff] }
 0x640   :  { %5251 = vmatpush1.bf16.msra.mxu0 %v5250_v3  ;;  %5411 = vmatpush1.bf16.msra.mxu1 %v5410_v31  ;;  %v2274_v3 = vld [vmem:[#allocation18 + $0xbb8] sm:$0xff]  ;;  %v5268_v31 = vpack.c.bf16 %v2275_v61, %v2270_v60 }
 0x641   :  { %5253 = vmatprep.subr.bf16.mxu0 %v5252_v56  ;;  %5413 = vmatprep.subr.bf16.mxu1 %v5412_v8  ;;  %v2276_v56 = vld [vmem:[#allocation18 + $0xbc8] sm:$0xff]  ;;  %v5270_v14 = vpack.c.bf16 %v2274_v3, %v2269_v2  ;;  %v2158_v60 = vld [vmem:[#allocation18 + $0x818] sm:$0xff]  ;;  %v2073_v2 = vld [vmem:[#allocation18 + $0x570] sm:$0xff] }
 0x642   :  { %2532 = vmatprep.mubr.f32.mxu0 %v6411_v1  ;;  %2745 = vmatprep.mubr.f32.mxu1 %v6411_v1  ;;  %v2280_v8 = vld [vmem:[#allocation18 + $0xbe8] sm:$0xff]  ;;  %v5430_v15 = vpack.c.bf16 %v2276_v56, %v2271_v6  ;;  %v2003_v6 = vld [vmem:[#allocation18 + $0x340] sm:$0xff] }
 0x643   :  { %v2008_v56 = vld [vmem:[#allocation18 + $0x368] sm:$0xff] }
 0x644   :  { %5255 = vmatpush1.bf16.msra.mxu0 %v5254_v19  ;;  %5415 = vmatpush1.bf16.msra.mxu1 %v5414_v20  ;;  %v2284_v19 = vld [vmem:[#allocation18 + $0xc08] sm:$0xff]  ;;  %v5272_v20 = vpack.c.bf16 %v2285_v9, %v2280_v8  ;;  %v2163_v8 = vld [vmem:[#allocation18 + $0x840] sm:$0xff]  ;;  %v5448_v12 = vpack.c.bf16 %v2008_v56, %v2003_v6 }
 0x645   :  { %5257 = vmatprep.subr.bf16.mxu0 %v5256_v24  ;;  %5417 = vmatprep.subr.bf16.mxu1 %v5416_v25  ;;  %v2286_v24 = vld [vmem:[#allocation18 + $0xc18] sm:$0xff]  ;;  %v5274_v30 = vpack.c.bf16 %v2284_v19, %v2279_v16  ;;  %v2168_v9 = vld [vmem:[#allocation18 + $0x868] sm:$0xff]  ;;  %v2083_v16 = vld [vmem:[#allocation18 + $0x5c0] sm:$0xff] }
 0x646   :  { %v2290_v25 = vld [vmem:[#allocation18 + $0xc38] sm:$0xff]  ;;  %v5434_v32 = vpack.c.bf16 %v2286_v24, %v2281_v23  ;;  %v5480_v19 = vpack.c.bf16 %v2168_v9, %v2163_v8  ;;  %v2173_v24 = vld [vmem:[#allocation18 + $0x890] sm:$0xff]  ;;  %v1963_v8 = vld [vmem:[#allocation18 + $0x200] sm:$0xff] }
 0x647   :  { %v2018_v23 = vld [vmem:[#allocation18 + $0x3b8] sm:$0xff]  ;;  %v1968_v9 = vld [vmem:[#allocation18 + $0x228] sm:$0xff] }
 0x648   :  { %5259 = vmatpush1.bf16.msra.mxu0 %v5258_v35  ;;  %5419 = vmatpush1.bf16.msra.mxu1 %v5418_v36  ;;  %v2294_v35 = vld [vmem:[#allocation18 + $0xc58] sm:$0xff]  ;;  %v5276_v36 = vpack.c.bf16 %v2295_v27, %v2290_v25 }
 0x649   :  { %5261 = vmatprep.subr.bf16.mxu0 %v5260_v39  ;;  %5421 = vmatprep.subr.bf16.mxu1 %v5420_v41  ;;  %v2296_v39 = vld [vmem:[#allocation18 + $0xc68] sm:$0xff]  ;;  %v1983_v41 = vld [vmem:[#allocation18 + $0x2a0] sm:$0xff]  ;;  %v5278_v47 = vpack.c.bf16 %v2294_v35, %v2289_v33  ;;  %v2178_v25 = vld [vmem:[#allocation18 + $0x8b8] sm:$0xff] }
 0x64a   :  { %v5438_v49 = vpack.c.bf16 %v2296_v39, %v2291_v38  ;;  %v5440_v50 = vpack.c.bf16 %v1988_v42, %v1983_v41  ;;  %v2098_v33 = vld [vmem:[#allocation18 + $0x638] sm:$0xff]  ;;  %v2023_v35 = vld [vmem:[#allocation18 + $0x3e0] sm:$0xff]  ;;  %v2188_v38 = vld [vmem:[#allocation18 + $0x908] sm:$0xff] }
 0x64c   :  { %5263 = vmatpush1.bf16.msra.mxu0 %v5262_v53  ;;  %5423 = vmatpush1.bf16.msra.mxu1 %v5422_v18  ;;  %v5472_v53 = vpack.c.bf16 %v2148_v44, %v2143_v43  ;;  %v1903_v18 = vld [vmem:[#allocation18 + $0x20] sm:$0xff]  ;;  %v1948_v44 = vld [vmem:[#allocation18 + $0x188] sm:$0xff] }
 0x64d   :  { %5265 = vmatprep.subr.bf16.mxu0 %v5264_v57  ;;  %5425 = vmatprep.subr.bf16.mxu1 %v5424_v58  ;;  %v2068_v57 = vld [vmem:[#allocation18 + $0x548] sm:$0xff]  ;;  %v1993_v58 = vld [vmem:[#allocation18 + $0x2f0] sm:$0xff]  ;;  %v5442_v61 = vpack.c.bf16 %v1908_v54, %v1903_v18  ;;  %v1943_v43 = vld [vmem:[#allocation18 + $0x160] sm:$0xff] }
 0x64e   :  { %v5474_v40 = vpack.c.bf16 %v2068_v57, %v2063_v55  ;;  %v5444_v3 = vpack.c.bf16 %v1998_v59, %v1993_v58  ;;  %v2038_v18 = vld [vmem:[#allocation18 + $0x458] sm:$0xff]  ;;  %v2193_v54 = vld [vmem:[#allocation18 + $0x930] sm:$0xff]  ;;  %v5458_v57 = vpack.c.bf16 %v1948_v44, %v1943_v43 }
 0x64f   :  { %v2198_v55 = vld [vmem:[#allocation18 + $0x958] sm:$0xff]  ;;  %v2233_v43 = vld [vmem:[#allocation18 + $0xa70] sm:$0xff] }
 0x650   :  { %5267 = vmatpush1.bf16.msra.mxu0 %v5266_v63  ;;  %5427 = vmatpush1.bf16.msra.mxu1 %v5426_v13  ;;  %v1913_v63 = vld [vmem:[#allocation18 + $0x70] sm:$0xff]  ;;  %v1918_v13 = vld [vmem:[#allocation18 + $0x98] sm:$0xff] }
 0x651   :  { %5269 = vmatprep.subr.bf16.mxu0 %v5268_v31  ;;  %5429 = vmatprep.subr.bf16.mxu1 %v5428_v4  ;;  %v5476_v31 = vpack.c.bf16 %v2158_v60, %v2153_v51  ;;  %v2078_v4 = vld [vmem:[#allocation18 + $0x598] sm:$0xff]  ;;  %v5446_v17 = vpack.c.bf16 %v1918_v13, %v1913_v63  ;;  %v1953_v51 = vld [vmem:[#allocation18 + $0x1b0] sm:$0xff]  ;;  %v2043_v13 = vld [vmem:[#allocation18 + $0x480] sm:$0xff] }
 0x652   :  { %v5478_v11 = vpack.c.bf16 %v2078_v4, %v2073_v2  ;;  %v1958_v60 = vld [vmem:[#allocation18 + $0x1d8] sm:$0xff]  ;;  %v2048_v2 = vld [vmem:[#allocation18 + $0x4a8] sm:$0xff] }
 0x653   :  { %v2118_v63 = vld [vmem:[#allocation18 + $0x6d8] sm:$0xff]  ;;  %v5462_v4 = vpack.c.bf16 %v1958_v60, %v1953_v51  ;;  %v5464_v56 = vpack.c.bf16 %v2048_v2, %v2043_v13  ;;  %v2979_v51 = vld [vmem:[#allocation21 + $0x60] sm:$0xff] }
 0x654   :  { %5271 = vmatpush1.bf16.msra.mxu0 %v5270_v14  ;;  %5431 = vmatpush1.bf16.msra.mxu1 %v5430_v15  ;;  %v1923_v14 = vld [vmem:[#allocation18 + $0xc0] sm:$0xff]  ;;  %v1928_v15 = vld [vmem:[#allocation18 + $0xe8] sm:$0xff]  ;;  %v2238_v44 = vld [vmem:[#allocation18 + $0xa98] sm:$0xff] }
 0x655   :  { %5273 = vmatprep.subr.bf16.mxu0 %v5272_v20  ;;  %5433 = vmatprep.subr.bf16.mxu1 %v5432_v22  ;;  %v2088_v20 = vld [vmem:[#allocation18 + $0x5e8] sm:$0xff]  ;;  %v2013_v22 = vld [vmem:[#allocation18 + $0x390] sm:$0xff]  ;;  %v5450_v27 = vpack.c.bf16 %v1928_v15, %v1923_v14  ;;  %v2058_v15 = vld [vmem:[#allocation18 + $0x4f8] sm:$0xff] }
 0x656   :  { %v5452_v28 = vpack.c.bf16 %v2018_v23, %v2013_v22  ;;  %v2053_v14 = vld [vmem:[#allocation18 + $0x4d0] sm:$0xff]  ;;  %v2982_v60 = vld [vmem:[#allocation21 + $0x78] sm:$0xff] }
 0x657   :  { %v5468_v23 = vpack.c.bf16 %v2058_v15, %v2053_v14  ;;  %v2258_v13 = vld [vmem:[#allocation18 + $0xb38] sm:$0xff]  ;;  %v5538_v2 = vpack.c.bf16 %v2982_v60, %v2979_v51  ;;  %v2991_v14 = vld [vmem:[#allocation21 + $0xc0] sm:$0xff] }
 0x658   :  { %5275 = vmatpush1.bf16.msra.mxu0 %v5274_v30  ;;  %5435 = vmatpush1.bf16.msra.mxu1 %v5434_v32  ;;  %v2093_v30 = vld [vmem:[#allocation18 + $0x610] sm:$0xff]  ;;  %v5484_v32 = vpack.c.bf16 %v2178_v25, %v2173_v24  ;;  %v1978_v25 = vld [vmem:[#allocation18 + $0x278] sm:$0xff]  ;;  %v3023_v60 = vld [vmem:[#allocation21 + $0x1c0] sm:$0xff] }
 0x659   :  { %5277 = vmatprep.subr.bf16.mxu0 %v5276_v36  ;;  %5437 = vmatprep.subr.bf16.mxu1 %v5436_v37  ;;  %v2028_v36 = vld [vmem:[#allocation18 + $0x408] sm:$0xff]  ;;  %v2183_v37 = vld [vmem:[#allocation18 + $0x8e0] sm:$0xff]  ;;  %v5486_v41 = vpack.c.bf16 %v2098_v33, %v2093_v30  ;;  %v1973_v24 = vld [vmem:[#allocation18 + $0x250] sm:$0xff] }
 0x65a   :  { %v5456_v42 = vpack.c.bf16 %v2028_v36, %v2023_v35  ;;  %v5470_v30 = vpack.c.bf16 %v1978_v25, %v1973_v24  ;;  %v2223_v33 = vld [vmem:[#allocation18 + $0xa20] sm:$0xff]  ;;  %v2228_v35 = vld [vmem:[#allocation18 + $0xa48] sm:$0xff] }
 0x65b   :  { %v2994_v15 = vld [vmem:[#allocation21 + $0xd8] sm:$0xff] }
 0x65c   :  { %5279 = vmatpush1.bf16.msra.mxu0 %v5278_v47  ;;  %5439 = vmatpush1.bf16.msra.mxu1 %v5438_v49  ;;  %v2103_v47 = vld [vmem:[#allocation18 + $0x660] sm:$0xff]  ;;  %v5488_v49 = vpack.c.bf16 %v2188_v38, %v2183_v37  ;;  %v5546_v24 = vpack.c.bf16 %v2994_v15, %v2991_v14  ;;  %v3028_v15 = vld [vmem:[#allocation21 + $0x1e8] sm:$0xff] }
 0x65d   :  { %5441 = vmatprep.subr.bf16.mxu0 %v5440_v50  ;;  %5473 = vmatprep.subr.bf16.mxu1 %v5472_v53  ;;  %v2108_v50 = vld [vmem:[#allocation18 + $0x688] sm:$0xff]  ;;  %v2033_v53 = vld [vmem:[#allocation18 + $0x430] sm:$0xff]  ;;  %v2970_v38 = vld [vmem:[#allocation21 + $0x18] sm:$0xff] }
 0x65e   :  { %v5490_v58 = vpack.c.bf16 %v2108_v50, %v2103_v47  ;;  %v5460_v59 = vpack.c.bf16 %v2038_v18, %v2033_v53  ;;  %v2967_v37 = vld [vmem:[#allocation21] sm:$0xff]  ;;  %v2973_v50 = vld [vmem:[#allocation21 + $0x30] sm:$0xff]  ;;  %v2976_v53 = vld [vmem:[#allocation21 + $0x48] sm:$0xff]  ;;  %v5508_v18 = vpack.c.bf16 %v2238_v44, %v2233_v43 }
 0x65f   :  { %2533 = vmatmul.mubr.f32.vlgmr.msra.gmra.mrb[12].mxu0 %v6871_v62  ;;  %2746 = vmatmul.mubr.f32.vlgmr.msra.gmra.mrb[10].mxu1 %v6871_v62  ;;  %v5530_v47 = vpack.c.bf16 %v2970_v38, %v2967_v37  ;;  %v3006_v37 = vld [vmem:[#allocation21 + $0x138] sm:$0xff] }
 0x660   :  { %5443 = vmatpush3.bf16.msra.mxu0 %v5442_v61  ;;  %2816 = vmatprep.mubr.f32.mxu0 %v6843_v5  ;;  %v5482_v5 = vpack.c.bf16 %v2088_v20, %v2083_v16  ;;  %v2113_v61 = vld [vmem:[#allocation18 + $0x6b0] sm:$0xff]  ;;  %v5466_v20 = vpack.c.bf16 %v1968_v9, %v1963_v8  ;;  %v2995_v8 = vld [vmem:[#allocation21 + $0xe0] sm:$0xff]  ;;  %v2298_v43 = vld [vmem:[#allocation18 + $0xc78] sm:$0xff] }
 0x661   :  { %5475 = vmatpush3.bf16.msra.mxu1 %v5474_v40  ;;  %2886 = vmatprep.mubr.f32.mxu1 %v6849_v21  ;;  %v1933_v21 = vld [vmem:[#allocation18 + $0x110] sm:$0xff]  ;;  %v5492_v40 = vpack.c.bf16 %v2198_v55, %v2193_v54  ;;  %v5494_v6 = vpack.c.bf16 %v2118_v63, %v2113_v61  ;;  %v2983_v55 = vld [vmem:[#allocation21 + $0x80] sm:$0xff] }
 0x662   :  { %5445 = vmatprep.subr.bf16.mxu0 %v5444_v3  ;;  %5477 = vmatprep.subr.bf16.mxu1 %v5476_v31  ;;  %v5454_v39 = vpack.c.bf16 %v1938_v29, %v1933_v21  ;;  %v2203_v3 = vld [vmem:[#allocation18 + $0x980] sm:$0xff]  ;;  %v2208_v31 = vld [vmem:[#allocation18 + $0x9a8] sm:$0xff]  ;;  %v2213_v16 = vld [vmem:[#allocation18 + $0x9d0] sm:$0xff] }
 0x663   :  { %v2968_v21 = vld [vmem:[#allocation21 + $0x8] sm:$0xff]  ;;  %v2971_v29 = vld [vmem:[#allocation21 + $0x20] sm:$0xff] }
 0x664   :  { %5447 = vmatpush3.bf16.msra.mxu0 %v5446_v17  ;;  %v2123_v17 = vld [vmem:[#allocation18 + $0x700] sm:$0xff]  ;;  %v5528_v36 = vpack.c.bf16 %v2971_v29, %v2968_v21  ;;  %v2980_v54 = vld [vmem:[#allocation21 + $0x68] sm:$0xff] }
 0x665   :  { %5479 = vmatpush3.bf16.msra.mxu1 %v5478_v11  ;;  %5449 = vmatprep.subr.bf16.mxu0 %v5448_v12  ;;  %v5496_v11 = vpack.c.bf16 %v2208_v31, %v2203_v3  ;;  %v2128_v12 = vld [vmem:[#allocation18 + $0x728] sm:$0xff]  ;;  %v2253_v63 = vld [vmem:[#allocation18 + $0xb10] sm:$0xff]  ;;  %v2263_v9 = vld [vmem:[#allocation18 + $0xb60] sm:$0xff] }
 0x666   :  { %5481 = vmatprep.subr.bf16.mxu1 %v5480_v19  ;;  %v2218_v19 = vld [vmem:[#allocation18 + $0x9f8] sm:$0xff]  ;;  %v5498_v22 = vpack.c.bf16 %v2128_v12, %v2123_v17  ;;  %v2268_v17 = vld [vmem:[#allocation18 + $0xb88] sm:$0xff] }
 0x667   :  { %v2985_v31 = vld [vmem:[#allocation21 + $0x90] sm:$0xff]  ;;  %v3004_v21 = vld [vmem:[#allocation21 + $0x128] sm:$0xff]  ;;  %v3007_v29 = vld [vmem:[#allocation21 + $0x140] sm:$0xff] }
 0x668   :  { %5451 = vmatpush3.bf16.msra.mxu0 %v5450_v27  ;;  %v5500_v27 = vpack.c.bf16 %v2218_v19, %v2213_v16  ;;  %v5517_v16 = vpack.c.bf16 %v2268_v17, %v2263_v9  ;;  %v2998_v19 = vld [vmem:[#allocation21 + $0xf8] sm:$0xff]  ;;  %v3032_v9 = vld [vmem:[#allocation21 + $0x208] sm:$0xff] }
 0x669   :  { %5483 = vmatpush3.bf16.msra.mxu1 %v5482_v5  ;;  %5453 = vmatprep.subr.bf16.mxu0 %v5452_v28  ;;  %v2133_v5 = vld [vmem:[#allocation18 + $0x750] sm:$0xff]  ;;  %v2138_v28 = vld [vmem:[#allocation18 + $0x778] sm:$0xff] }
 0x66a   :  { %5485 = vmatprep.subr.bf16.mxu1 %v5484_v32  ;;  %v5502_v32 = vpack.c.bf16 %v2138_v28, %v2133_v5  ;;  %v3000_v5 = vld [vmem:[#allocation21 + $0x108] sm:$0xff] }
 0x66c   :  { %5455 = vmatpush3.bf16.msra.mxu0 %v5454_v39  ;;  %v5505_v39 = vpack.c.bf16 %v2228_v35, %v2223_v33  ;;  %v5552_v35 = vpack.c.bf16 %v3007_v29, %v3004_v21  ;;  %v3034_v21 = vld [vmem:[#allocation21 + $0x218] sm:$0xff]  ;;  %v3037_v29 = vld [vmem:[#allocation21 + $0x230] sm:$0xff] }
 0x66d   :  { %5487 = vmatpush3.bf16.msra.mxu1 %v5486_v41  ;;  %5457 = vmatprep.subr.bf16.mxu0 %v5456_v42  ;;  %v2974_v41 = vld [vmem:[#allocation21 + $0x38] sm:$0xff]  ;;  %v2977_v42 = vld [vmem:[#allocation21 + $0x50] sm:$0xff] }
 0x66e   :  { %5489 = vmatprep.subr.bf16.mxu1 %v5488_v49  ;;  %v5532_v49 = vpack.c.bf16 %v2977_v42, %v2974_v41  ;;  %v3013_v41 = vld [vmem:[#allocation21 + $0x170] sm:$0xff] }
 0x66f   :  { %v2293_v42 = vld [vmem:[#allocation18 + $0xc50] sm:$0xff] }
 0x670   :  { %5459 = vmatpush3.bf16.msra.mxu0 %v5458_v57  ;;  %v2243_v57 = vld [vmem:[#allocation18 + $0xac0] sm:$0xff] }
 0x671   :  { %5491 = vmatpush3.bf16.msra.mxu1 %v5490_v58  ;;  %5461 = vmatprep.subr.bf16.mxu0 %v5460_v59  ;;  %v2248_v58 = vld [vmem:[#allocation18 + $0xae8] sm:$0xff]  ;;  %v5534_v59 = vpack.c.bf16 %v2976_v53, %v2973_v50  ;;  %v3009_v53 = vld [vmem:[#allocation21 + $0x150] sm:$0xff] }
 0x672   :  { %5493 = vmatprep.subr.bf16.mxu1 %v5492_v40  ;;  %v5511_v61 = vpack.c.bf16 %v2248_v58, %v2243_v57  ;;  %v2989_v40 = vld [vmem:[#allocation21 + $0xb0] sm:$0xff]  ;;  %v3019_v57 = vld [vmem:[#allocation21 + $0x1a0] sm:$0xff] }
 0x674   :  { %5463 = vmatpush3.bf16.msra.mxu0 %v5462_v4  ;;  %v2988_v4 = vld [vmem:[#allocation21 + $0xa8] sm:$0xff] }
 0x675   :  { %5495 = vmatpush3.bf16.msra.mxu1 %v5494_v6  ;;  %5465 = vmatprep.subr.bf16.mxu0 %v5464_v56  ;;  %v5514_v6 = vpack.c.bf16 %v2258_v13, %v2253_v63  ;;  %v2992_v56 = vld [vmem:[#allocation21 + $0xc8] sm:$0xff]  ;;  %v3018_v63 = vld [vmem:[#allocation21 + $0x198] sm:$0xff] }
 0x676   :  { %5497 = vmatprep.subr.bf16.mxu1 %v5496_v11  ;;  %v5542_v11 = vpack.c.bf16 %v2988_v4, %v2985_v31  ;;  %v5544_v12 = vpack.c.bf16 %v2995_v8, %v2992_v56  ;;  %v2975_v4 = vld [vmem:[#allocation21 + $0x40] sm:$0xff]  ;;  %v3029_v8 = vld [vmem:[#allocation21 + $0x1f0] sm:$0xff] }
 0x678   :  { %5467 = vmatpush3.bf16.msra.mxu0 %v5466_v20  ;;  %v3001_v20 = vld [vmem:[#allocation21 + $0x110] sm:$0xff] }
 0x679   :  { %5499 = vmatpush3.bf16.msra.mxu1 %v5498_v22  ;;  %5469 = vmatprep.subr.bf16.mxu0 %v5468_v23  ;;  %v2273_v22 = vld [vmem:[#allocation18 + $0xbb0] sm:$0xff]  ;;  %v2278_v23 = vld [vmem:[#allocation18 + $0xbd8] sm:$0xff]  ;;  %v5548_v25 = vpack.c.bf16 %v3001_v20, %v2998_v19  ;;  %v5696_v19 = vpack.c.bf16 %v3032_v9, %v3029_v8 }
 0x67a   :  { %5501 = vmatprep.subr.bf16.mxu1 %v5500_v27  ;;  %v2997_v27 = vld [vmem:[#allocation21 + $0xf0] sm:$0xff]  ;;  %v5520_v28 = vpack.c.bf16 %v2278_v23, %v2273_v22  ;;  %v2984_v22 = vld [vmem:[#allocation21 + $0x88] sm:$0xff] }
 0x67b   :  { %v5550_v33 = vpack.c.bf16 %v3000_v5, %v2997_v27  ;;  %v2981_v20 = vld [vmem:[#allocation21 + $0x70] sm:$0xff]  ;;  %v3027_v5 = vld [vmem:[#allocation21 + $0x1e0] sm:$0xff] }
 0x67c   :  { %5471 = vmatpush3.bf16.msra.mxu0 %v5470_v30  ;;  %v2283_v30 = vld [vmem:[#allocation18 + $0xc00] sm:$0xff]  ;;  %v3005_v9 = vld [vmem:[#allocation21 + $0x130] sm:$0xff] }
 0x67d   :  { %5503 = vmatpush3.bf16.msra.mxu1 %v5502_v32  ;;  %5504 = vmatprep.subr.bf16.mxu0 %v6409_v0  ;;  %v2288_v32 = vld [vmem:[#allocation18 + $0xc28] sm:$0xff] }
 0x67e   :  { %5529 = vmatprep.subr.bf16.mxu1 %v5528_v36  ;;  %v3003_v36 = vld [vmem:[#allocation21 + $0x120] sm:$0xff]  ;;  %v5523_v38 = vpack.c.bf16 %v2288_v32, %v2283_v30 }
 0x67f   :  { %2817 = vmatmul.mubr.f32.vlgmr.msra.gmra.mrb[14].mxu0 %v6845_v10  ;;  %v5536_v10 = vpack.c.bf16 %v2983_v55, %v2980_v54  ;;  %v5554_v44 = vpack.c.bf16 %v3006_v37, %v3003_v36  ;;  %v5526_v54 = vpack.c.bf16 %v2298_v43, %v2293_v42  ;;  %v3016_v55 = vld [vmem:[#allocation21 + $0x188] sm:$0xff]  ;;  %v2987_v32 = vld [vmem:[#allocation21 + $0xa0] sm:$0xff]  ;;  %v3041_v36 = vld [vmem:[#allocation21 + $0x250] sm:$0xff] }
 0x680   :  { %2887 = vmatmul.mubr.f32.vlgmr.msra.gmra.mrb[12].mxu1 %v6864_v7  ;;  %5506 = vmatpush3.bf16.msra.mxu0 %v5505_v39  ;;  %v2986_v7 = vld [vmem:[#allocation21 + $0x98] sm:$0xff]  ;;  %v3044_v37 = vld [vmem:[#allocation21 + $0x268] sm:$0xff] }
 0x681   :  { %5507 = vmatprep.subr.bf16.mxu0 %v6409_v0  ;;  %4530 = vmatprep.mubr.msk.f32.mxu0 %vm6410_vm0, %v6411_v1  ;;  %v5540_v3 = vpack.c.bf16 %v2989_v40, %v2986_v7  ;;  %v3010_v39 = vld [vmem:[#allocation21 + $0x158] sm:$0xff]  ;;  %v5560_v7 = vpack.c.bf16 %v3019_v57, %v3016_v55  ;;  %v3015_v40 = vld [vmem:[#allocation21 + $0x180] sm:$0xff]  ;;  %v3040_v43 = vld [vmem:[#allocation21 + $0x248] sm:$0xff] }
 0x682   :  { %5531 = vmatpush1.bf16.msra.mxu1 %v5530_v47  ;;  %v3017_v47 = vld [vmem:[#allocation21 + $0x190] sm:$0xff]  ;;  %v5556_v50 = vpack.c.bf16 %v3013_v41, %v3010_v39  ;;  %v5562_v56 = vpack.c.bf16 %v3018_v63, %v3015_v40  ;;  %v3036_v41 = vld [vmem:[#allocation21 + $0x228] sm:$0xff]  ;;  %v3039_v57 = vld [vmem:[#allocation21 + $0x240] sm:$0xff] }
 0x683   :  { %5533 = vmatprep.subr.bf16.mxu1 %v5532_v49  ;;  %v3020_v49 = vld [vmem:[#allocation21 + $0x1a8] sm:$0xff]  ;;  %v3033_v39 = vld [vmem:[#allocation21 + $0x210] sm:$0xff] }
 0x684   :  { %5509 = vmatpush3.bf16.msra.mxu0 %v5508_v18  ;;  %v3012_v18 = vld [vmem:[#allocation21 + $0x168] sm:$0xff]  ;;  %v5688_v58 = vpack.c.bf16 %v3020_v49, %v3017_v47  ;;  %v5704_v47 = vpack.c.bf16 %v3044_v37, %v3041_v36  ;;  %v2993_v49 = vld [vmem:[#allocation21 + $0xd0] sm:$0xff] }
 0x685   :  { %5510 = vmatprep.subr.bf16.mxu0 %v6409_v0  ;;  %v5558_v51 = vpack.c.bf16 %v3012_v18, %v3009_v53  ;;  %v5574_v53 = vpack.c.bf16 %v3036_v41, %v3033_v39  ;;  %v3047_v18 = vld [vmem:[#allocation21 + $0x280] sm:$0xff]  ;;  %v3053_v63 = vld [vmem:[#allocation21 + $0x2b0] sm:$0xff]  ;;  %v6890_v39 = vld [vmem:[#allocation19] sm:$0x1f] }
 0x686   :  { %5535 = vmatpush1.bf16.msra.mxu1 %v5534_v59  ;;  %v2969_v59 = vld [vmem:[#allocation21 + $0x10] sm:$0xff]  ;;  %v2304_v41 = vrot.slane %v6890_v39, %v6766_v46 }
 0x687   :  { %5537 = vmatprep.subr.bf16.mxu1 %v5536_v10  ;;  %v2972_v10 = vld [vmem:[#allocation21 + $0x28] sm:$0xff] }
 0x688   :  { %5512 = vmatpush3.bf16.msra.mxu0 %v5511_v61  ;;  %v3026_v61 = vld [vmem:[#allocation21 + $0x1d8] sm:$0xff]  ;;  %v5690_v13 = vpack.c.bf16 %v2972_v10, %v2969_v59 }
 0x689   :  { %5513 = vmatprep.subr.bf16.mxu0 %v6409_v0  ;;  %v5692_v31 = vpack.c.bf16 %v3026_v61, %v3023_v60  ;;  %v3046_v10 = vld [vmem:[#allocation21 + $0x278] sm:$0xff]  ;;  %v2999_v61 = vld [vmem:[#allocation21 + $0x100] sm:$0xff] }
 0x68a   :  { %5539 = vmatpush1.bf16.msra.mxu1 %v5538_v2  ;;  %v3022_v2 = vld [vmem:[#allocation21 + $0x1b8] sm:$0xff] }
 0x68b   :  { %5541 = vmatprep.subr.bf16.mxu1 %v5540_v3  ;;  %v3025_v3 = vld [vmem:[#allocation21 + $0x1d0] sm:$0xff] }
 0x68c   :  { %5515 = vmatpush3.bf16.msra.mxu0 %v5514_v6  ;;  %v2978_v6 = vld [vmem:[#allocation21 + $0x58] sm:$0xff]  ;;  %v5564_v17 = vpack.c.bf16 %v3025_v3, %v3022_v2  ;;  %v3045_v3 = vld [vmem:[#allocation21 + $0x270] sm:$0xff] }
 0x68d   :  { %5516 = vmatprep.subr.bf16.mxu0 %v6409_v0  ;;  %v5694_v14 = vpack.c.bf16 %v2978_v6, %v2975_v4  ;;  %v3052_v6 = vld [vmem:[#allocation21 + $0x2a8] sm:$0xff] }
 0x68e   :  { %5543 = vmatpush1.bf16.msra.mxu1 %v5542_v11  ;;  %v3021_v11 = vld [vmem:[#allocation21 + $0x1b0] sm:$0xff] }
 0x68f   :  { %5545 = vmatprep.subr.bf16.mxu1 %v5544_v12  ;;  %v3024_v12 = vld [vmem:[#allocation21 + $0x1c8] sm:$0xff] }
 0x690   :  { %5518 = vmatpush3.bf16.msra.mxu0 %v5517_v16  ;;  %v3031_v16 = vld [vmem:[#allocation21 + $0x200] sm:$0xff]  ;;  %v5566_v23 = vpack.c.bf16 %v3024_v12, %v3021_v11 }
 0x691   :  { %5519 = vmatprep.subr.bf16.mxu0 %v6409_v0  ;;  %v5568_v27 = vpack.c.bf16 %v3031_v16, %v3028_v15  ;;  %v3059_v12 = vld [vmem:[#allocation21 + $0x2e0] sm:$0xff]  ;;  %v3054_v16 = vld [vmem:[#allocation21 + $0x2b8] sm:$0xff] }
 0x692   :  { %5547 = vmatpush1.bf16.msra.mxu1 %v5546_v24  ;;  %v3035_v24 = vld [vmem:[#allocation21 + $0x220] sm:$0xff] }
 0x693   :  { %5549 = vmatprep.subr.bf16.mxu1 %v5548_v25  ;;  %v3038_v25 = vld [vmem:[#allocation21 + $0x238] sm:$0xff]  ;;  %v3051_v15 = vld [vmem:[#allocation21 + $0x2a0] sm:$0xff] }
 0x694   :  { %5521 = vmatpush3.bf16.msra.mxu0 %v5520_v28  ;;  %v5698_v28 = vpack.c.bf16 %v2984_v22, %v2981_v20  ;;  %v5700_v30 = vpack.c.bf16 %v3038_v25, %v3035_v24  ;;  %v3058_v22 = vld [vmem:[#allocation21 + $0x2d8] sm:$0xff]  ;;  %v3011_v25 = vld [vmem:[#allocation21 + $0x160] sm:$0xff] }
 0x695   :  { %5522 = vmatprep.subr.bf16.mxu0 %v6409_v0 }
 0x696   :  { %5551 = vmatpush1.bf16.msra.mxu1 %v5550_v33  ;;  %v2990_v33 = vld [vmem:[#allocation21 + $0xb8] sm:$0xff] }
 0x697   :  { %5553 = vmatprep.subr.bf16.mxu1 %v5552_v35  ;;  %v5702_v42 = vpack.c.bf16 %v2990_v33, %v2987_v32  ;;  %v3064_v33 = vld [vmem:[#allocation21 + $0x308] sm:$0xff] }
 0x698   :  { %5524 = vmatpush3.bf16.msra.mxu0 %v5523_v38  ;;  %v5572_v38 = vpack.c.bf16 %v3037_v29, %v3034_v21  ;;  %v3057_v21 = vld [vmem:[#allocation21 + $0x2d0] sm:$0xff]  ;;  %v3060_v29 = vld [vmem:[#allocation21 + $0x2e8] sm:$0xff] }
 0x699   :  { %5525 = vmatprep.subr.bf16.mxu0 %v6409_v0  ;;  %v5590_v37 = vpack.c.bf16 %v3060_v29, %v3057_v21  ;;  %v3081_v21 = vld [vmem:[#allocation21 + $0x390] sm:$0xff]  ;;  %v3084_v29 = vld [vmem:[#allocation21 + $0x3a8] sm:$0xff] }
 0x69a   :  { %5555 = vmatpush1.bf16.msra.mxu1 %v5554_v44  ;;  %v3043_v44 = vld [vmem:[#allocation21 + $0x260] sm:$0xff] }
 0x69b   :  { %5557 = vmatprep.subr.bf16.mxu1 %v5556_v50  ;;  %v2996_v50 = vld [vmem:[#allocation21 + $0xe8] sm:$0xff]  ;;  %v5576_v55 = vpack.c.bf16 %v3043_v44, %v3040_v43  ;;  %v2316_v43 = vrot.slane %v6890_v39, %v1459_v52  ;;  %v3069_v52 = vld [vmem:[#allocation21 + $0x330] sm:$0xff] }
 0x69c   :  { %5527 = vmatpush3.bf16.msra.mxu0 %v5526_v54  ;;  %v3050_v54 = vld [vmem:[#allocation21 + $0x298] sm:$0xff]  ;;  %v5706_v59 = vpack.c.bf16 %v2996_v50, %v2993_v49  ;;  %v3063_v49 = vld [vmem:[#allocation21 + $0x300] sm:$0xff] }
 0x69d   :  { %5689 = vmatprep.subr.bf16.mxu0 %v5688_v58  ;;  %v3042_v58 = vld [vmem:[#allocation21 + $0x258] sm:$0xff]  ;;  %v5708_v60 = vpack.c.bf16 %v3050_v54, %v3047_v18 }
 0x69e   :  { %5559 = vmatpush1.bf16.msra.mxu1 %v5558_v51  ;;  %v3049_v51 = vld [vmem:[#allocation21 + $0x290] sm:$0xff]  ;;  %v5578_v40 = vpack.c.bf16 %v3042_v58, %v3039_v57  ;;  %v3066_v54 = vld [vmem:[#allocation21 + $0x318] sm:$0xff]  ;;  %v3068_v57 = vld [vmem:[#allocation21 + $0x328] sm:$0xff] }
 0x69f   :  { %4531 = vmatmul.mubr.f32.vlgmr.msra.gmra.mrb[16].mxu0 %v6871_v62  ;;  %5561 = vmatprep.subr.bf16.mxu1 %v5560_v7  ;;  %v3030_v62 = vld [vmem:[#allocation21 + $0x1f8] sm:$0xff]  ;;  %v5580_v2 = vpack.c.bf16 %v3049_v51, %v3046_v10  ;;  %v3073_v51 = vld [vmem:[#allocation21 + $0x350] sm:$0xff] }
 0x6a0   :  { %5691 = vmatpush3.bf16.msra.mxu0 %v5690_v13  ;;  %v5570_v35 = vpack.c.bf16 %v3030_v62, %v3027_v5  ;;  %v3002_v7 = vld [vmem:[#allocation21 + $0x118] sm:$0xff]  ;;  %v3056_v13 = vld [vmem:[#allocation21 + $0x2c8] sm:$0xff]  ;;  %v5586_v5 = vpack.c.bf16 %v3054_v16, %v3051_v15  ;;  %v3113_v62 = vld [vmem:[#allocation21 + $0x490] sm:$0xff] }
 0x6a1   :  { %5693 = vmatprep.subr.bf16.mxu0 %v5692_v31  ;;  %v3048_v31 = vld [vmem:[#allocation21 + $0x288] sm:$0xff]  ;;  %v5710_v4 = vpack.c.bf16 %v3002_v7, %v2999_v61  ;;  %v5712_v8 = vpack.c.bf16 %v3056_v13, %v3053_v63  ;;  %v3122_v61 = vld [vmem:[#allocation21 + $0x4d8] sm:$0xff]  ;;  %v3075_v15 = vld [vmem:[#allocation21 + $0x360] sm:$0xff] }
 0x6a2   :  { %5563 = vmatpush1.bf16.msra.mxu1 %v5562_v56  ;;  %v3055_v56 = vld [vmem:[#allocation21 + $0x2c0] sm:$0xff]  ;;  %v5582_v11 = vpack.c.bf16 %v3048_v31, %v3045_v3  ;;  %v3072_v13 = vld [vmem:[#allocation21 + $0x348] sm:$0xff]  ;;  %v3074_v31 = vld [vmem:[#allocation21 + $0x358] sm:$0xff] }
 0x6a3   :  { %5565 = vmatprep.subr.bf16.mxu1 %v5564_v17  ;;  %v3008_v17 = vld [vmem:[#allocation21 + $0x148] sm:$0xff]  ;;  %v3071_v3 = vld [vmem:[#allocation21 + $0x340] sm:$0xff]  ;;  %v3078_v16 = vld [vmem:[#allocation21 + $0x378] sm:$0xff] }
 0x6a4   :  { %5695 = vmatpush3.bf16.msra.mxu0 %v5694_v14  ;;  %v5584_v14 = vpack.c.bf16 %v3055_v56, %v3052_v6  ;;  %v5714_v20 = vpack.c.bf16 %v3008_v17, %v3005_v9  ;;  %v3125_v9 = vld [vmem:[#allocation21 + $0x4f0] sm:$0xff]  ;;  %v3128_v17 = vld [vmem:[#allocation21 + $0x508] sm:$0xff] }
 0x6a5   :  { %5697 = vmatprep.subr.bf16.mxu0 %v5696_v19  ;;  %v3062_v19 = vld [vmem:[#allocation21 + $0x2f8] sm:$0xff] }
 0x6a6   :  { %5567 = vmatpush1.bf16.msra.mxu1 %v5566_v23  ;;  %v3061_v23 = vld [vmem:[#allocation21 + $0x2f0] sm:$0xff]  ;;  %v5716_v24 = vpack.c.bf16 %v3062_v19, %v3059_v12  ;;  %v5598_v12 = vpack.c.bf16 %v3072_v13, %v3069_v52  ;;  %v3098_v52 = vld [vmem:[#allocation21 + $0x418] sm:$0xff]  ;;  %v3100_v13 = vld [vmem:[#allocation21 + $0x428] sm:$0xff] }
 0x6a7   :  { %5569 = vmatprep.subr.bf16.mxu1 %v5568_v27  ;;  %v3014_v27 = vld [vmem:[#allocation21 + $0x178] sm:$0xff] }
 0x6a8   :  { %5699 = vmatpush3.bf16.msra.mxu0 %v5698_v28  ;;  %v5588_v28 = vpack.c.bf16 %v3061_v23, %v3058_v22  ;;  %v5718_v32 = vpack.c.bf16 %v3014_v27, %v3011_v25  ;;  %v3077_v22 = vld [vmem:[#allocation21 + $0x370] sm:$0xff]  ;;  %v3080_v23 = vld [vmem:[#allocation21 + $0x388] sm:$0xff]  ;;  %v3131_v27 = vld [vmem:[#allocation21 + $0x520] sm:$0xff] }
 0x6a9   :  { %5701 = vmatprep.subr.bf16.mxu0 %v5700_v30  ;;  %v3116_v30 = vld [vmem:[#allocation21 + $0x4a8] sm:$0xff]  ;;  %v3085_v25 = vld [vmem:[#allocation21 + $0x3b0] sm:$0xff] }
 0x6aa   :  { %5571 = vmatpush1.bf16.msra.mxu1 %v5570_v35  ;;  %v3067_v35 = vld [vmem:[#allocation21 + $0x320] sm:$0xff]  ;;  %v5720_v36 = vpack.c.bf16 %v3116_v30, %v3113_v62  ;;  %v5602_v62 = vpack.c.bf16 %v3078_v16, %v3075_v15  ;;  %v3109_v15 = vld [vmem:[#allocation21 + $0x470] sm:$0xff] }
 0x6ab   :  { %5573 = vmatprep.subr.bf16.mxu1 %v5572_v38  ;;  %v5592_v38 = vpack.c.bf16 %v3067_v35, %v3064_v33  ;;  %v3083_v33 = vld [vmem:[#allocation21 + $0x3a0] sm:$0xff]  ;;  %v3086_v35 = vld [vmem:[#allocation21 + $0x3b8] sm:$0xff] }
 0x6ac   :  { %5703 = vmatpush3.bf16.msra.mxu0 %v5702_v42  ;;  %v2308_v42 = vrot.slane %v6890_v39, %v6769_v48  ;;  %v3155_v16 = vld [vmem:[#allocation21 + $0x5e0] sm:$0xff] }
 0x6ad   :  { %5705 = vmatprep.subr.bf16.mxu0 %v5704_v47 }
 0x6ae   :  { %5575 = vmatpush1.bf16.msra.mxu1 %v5574_v53 }
 0x6af   :  { %5577 = vmatprep.subr.bf16.mxu1 %v5576_v55  ;;  %v3065_v55 = vld [vmem:[#allocation21 + $0x310] sm:$0xff] }
 0x6b0   :  { %5707 = vmatpush3.bf16.msra.mxu0 %v5706_v59  ;;  %v3070_v59 = vld [vmem:[#allocation21 + $0x338] sm:$0xff]  ;;  %v5722_v63 = vpack.c.bf16 %v3068_v57, %v3065_v55  ;;  %v3097_v57 = vld [vmem:[#allocation21 + $0x410] sm:$0xff] }
 0x6b1   :  { %5709 = vmatprep.subr.bf16.mxu0 %v5708_v60  ;;  %v3119_v60 = vld [vmem:[#allocation21 + $0x4c0] sm:$0xff]  ;;  %v5596_v6 = vpack.c.bf16 %v3073_v51, %v3070_v59  ;;  %v3094_v55 = vld [vmem:[#allocation21 + $0x3f8] sm:$0xff] }
 0x6b2   :  { %5579 = vmatpush1.bf16.msra.mxu1 %v5578_v40  ;;  %v5594_v40 = vpack.c.bf16 %v3066_v54, %v3063_v49  ;;  %v5724_v56 = vpack.c.bf16 %v3122_v61, %v3119_v60  ;;  %v3090_v49 = vld [vmem:[#allocation21 + $0x3d8] sm:$0xff]  ;;  %v3092_v54 = vld [vmem:[#allocation21 + $0x3e8] sm:$0xff]  ;;  %v3093_v60 = vld [vmem:[#allocation21 + $0x3f0] sm:$0xff] }
 0x6b3   :  { %5581 = vmatprep.subr.bf16.mxu1 %v5580_v2  ;;  %v3146_v59 = vld [vmem:[#allocation21 + $0x598] sm:$0xff]  ;;  %v3096_v61 = vld [vmem:[#allocation21 + $0x408] sm:$0xff] }
 0x6b4   :  { %5711 = vmatpush3.bf16.msra.mxu0 %v5710_v4  ;;  %v3076_v4 = vld [vmem:[#allocation21 + $0x368] sm:$0xff] }
 0x6b5   :  { %5713 = vmatprep.subr.bf16.mxu0 %v5712_v8  ;;  %v3079_v8 = vld [vmem:[#allocation21 + $0x380] sm:$0xff] }
 0x6b6   :  { %5583 = vmatpush1.bf16.msra.mxu1 %v5582_v11  ;;  %v5600_v19 = vpack.c.bf16 %v3079_v8, %v3076_v4  ;;  %v5614_v4 = vpack.c.bf16 %v3096_v61, %v3093_v60  ;;  %v3102_v8 = vld [vmem:[#allocation21 + $0x438] sm:$0xff]  ;;  %v3124_v60 = vld [vmem:[#allocation21 + $0x4e8] sm:$0xff]  ;;  %v3127_v61 = vld [vmem:[#allocation21 + $0x500] sm:$0xff] }
 0x6b7   :  { %5585 = vmatprep.subr.bf16.mxu1 %v5584_v14  ;;  %v5726_v14 = vpack.c.bf16 %v3074_v31, %v3071_v3  ;;  %v3149_v3 = vld [vmem:[#allocation21 + $0x5b0] sm:$0xff]  ;;  %v3152_v31 = vld [vmem:[#allocation21 + $0x5c8] sm:$0xff] }
 0x6b8   :  { %5715 = vmatpush3.bf16.msra.mxu0 %v5714_v20  ;;  %v5728_v20 = vpack.c.bf16 %v3128_v17, %v3125_v9  ;;  %v5744_v17 = vpack.c.bf16 %v3152_v31, %v3149_v3  ;;  %v3173_v3 = vld [vmem:[#allocation21 + $0x670] sm:$0xff]  ;;  %v3176_v31 = vld [vmem:[#allocation21 + $0x688] sm:$0xff] }
 0x6b9   :  { %5717 = vmatprep.subr.bf16.mxu0 %v5716_v24  ;;  %v3082_v24 = vld [vmem:[#allocation21 + $0x398] sm:$0xff] }
 0x6ba   :  { %5587 = vmatpush1.bf16.msra.mxu1 %v5586_v5  ;;  %v3134_v5 = vld [vmem:[#allocation21 + $0x538] sm:$0xff]  ;;  %v5604_v30 = vpack.c.bf16 %v3085_v25, %v3082_v24  ;;  %v2312_v24 = vrot.slane %v6890_v39, %v6790_v26 }
 0x6bb   :  { %5589 = vmatprep.subr.bf16.mxu1 %v5588_v28  ;;  %v5730_v28 = vpack.c.bf16 %v3080_v23, %v3077_v22  ;;  %v3105_v23 = vld [vmem:[#allocation21 + $0x450] sm:$0xff] }
 0x6bc   :  { %5719 = vmatpush3.bf16.msra.mxu0 %v5718_v32  ;;  %v5732_v32 = vpack.c.bf16 %v3134_v5, %v3131_v27  ;;  %v3108_v5 = vld [vmem:[#allocation21 + $0x468] sm:$0xff] }
 0x6bd   :  { %5721 = vmatprep.subr.bf16.mxu0 %v5720_v36  ;;  %v3088_v36 = vld [vmem:[#allocation21 + $0x3c8] sm:$0xff] }
 0x6be   :  { %5591 = vmatpush1.bf16.msra.mxu1 %v5590_v37  ;;  %v3091_v37 = vld [vmem:[#allocation21 + $0x3e0] sm:$0xff] }
 0x6bf   :  { %5593 = vmatprep.subr.bf16.mxu1 %v5592_v38  ;;  %v3137_v38 = vld [vmem:[#allocation21 + $0x550] sm:$0xff] }
 0x732   :  { %v2534_v44 = vpop.f32.mrb[12].mxu0  ;;  %v6899_v47 = vpop.f32.mrb[10].mxu1 }
 0x733   :  { %v5910_v50 = vadd.f32 %v2534_v44, %v2304_v41  ;;  %v2536_v53 = vpop.f32.mrb[13].mxu0  ;;  %v2749_v18 = vpop.f32.mrb[11].mxu1  ;;  %v3140_v41 = vld [vmem:[#allocation21 + $0x568] sm:$0xff]  ;;  %v3087_v44 = vld [vmem:[#allocation21 + $0x3c0] sm:$0xff] }
 0x734   :  { %v5911_v58 = vadd.f32 %v2536_v53, %v2308_v42  ;;  %v5913_v10 = vadd.f32 %v2749_v18, %v2316_v43  ;;  %v5606_v42 = vpack.c.bf16 %v3084_v29, %v3081_v21  ;;  %v5734_v43 = vpack.c.bf16 %v3086_v35, %v3083_v33  ;;  %v3089_v18 = vld [vmem:[#allocation21 + $0x3d0] sm:$0xff]  ;;  %v3112_v21 = vld [vmem:[#allocation21 + $0x488] sm:$0xff]  ;;  %v3115_v29 = vld [vmem:[#allocation21 + $0x4a0] sm:$0xff] }
 0x735   :  { %v2962_v2 = vmax.f32 %v5910_v50, 0.0  ;;  %v5608_v50 = vpack.c.bf16 %v3091_v37, %v3088_v36  ;;  %v5736_v53 = vpack.c.bf16 %v3140_v41, %v3137_v38  ;;  %v5738_v51 = vpack.c.bf16 %v3092_v54, %v3089_v18  ;;  %v3111_v36 = vld [vmem:[#allocation21 + $0x480] sm:$0xff]  ;;  %v3118_v18 = vld [vmem:[#allocation21 + $0x4b8] sm:$0xff] }
 0x736   :  { %v2963_v7 = vmax.f32 %v5911_v58, 0.0  ;;  %v2965_v11 = vmax.f32 %v5913_v10, 0.0  ;;  %v3143_v58 = vld [vmem:[#allocation21 + $0x580] sm:$0xff]  ;;  %v5610_v10 = vpack.c.bf16 %v3090_v49, %v3087_v44  ;;  %v5622_v33 = vpack.c.bf16 %v3108_v5, %v3105_v23  ;;  %v3161_v44 = vld [vmem:[#allocation21 + $0x610] sm:$0xff]  ;;  %v3164_v49 = vld [vmem:[#allocation21 + $0x628] sm:$0xff] }
 0x737   :  { %v6907_v37 = vadd.f32 %v6899_v47, %v2312_v24  ;;  %v3117_v47 = vld [vmem:[#allocation21 + $0x4b0] sm:$0xff]  ;;  %v3138_v24 = vld [vmem:[#allocation21 + $0x558] sm:$0xff] }
 0x738   :  { %3288 = vmatprep.mubr.f32.mxu1 %v2963_v7  ;;  %3501 = vmatprep.mubr.f32.mxu0 %v2963_v7  ;;  %v5612_v7 = vpack.c.bf16 %v3097_v57, %v3094_v55  ;;  %v5753_v55 = vpack.c.bf16 %v3164_v49, %v3161_v44  ;;  %v3142_v5 = vld [vmem:[#allocation21 + $0x578] sm:$0xff] }
 0x739   :  { %3289 = vmatmul.mubr.f32.vlgmr.msra.gmra.mrb[14].mxu1 %v2962_v2  ;;  %3502 = vmatmul.mubr.f32.vlgmr.msra.gmra.mrb[18].mxu0 %v2962_v2  ;;  %v3103_v2 = vld [vmem:[#allocation21 + $0x440] sm:$0xff]  ;;  %v2964_v57 = vmax.f32 %v6907_v37, 0.0  ;;  %v3150_v49 = vld [vmem:[#allocation21 + $0x5b8] sm:$0xff] }
 0x73a   :  { %5595 = vmatpush1.bf16.msra.mxu1 %v5594_v40  ;;  %5723 = vmatpush3.bf16.msra.mxu0 %v5722_v63  ;;  %v5740_v40 = vpack.c.bf16 %v3146_v59, %v3143_v58  ;;  %v3095_v63 = vld [vmem:[#allocation21 + $0x400] sm:$0xff]  ;;  %v5616_v9 = vpack.c.bf16 %v3103_v2, %v3100_v13  ;;  %v5628_v58 = vpack.c.bf16 %v3121_v45, %v3118_v18  ;;  %v3120_v59 = vld [vmem:[#allocation21 + $0x4c8] sm:$0xff]  ;;  %v3126_v2 = vld [vmem:[#allocation21 + $0x4f8] sm:$0xff] }
 0x73b   :  { %3359 = vmatprep.mubr.f32.mxu1 %v2965_v11  ;;  %3571 = vmatprep.mubr.f32.mxu0 %v2965_v11  ;;  %v3101_v11 = vld [vmem:[#allocation21 + $0x430] sm:$0xff]  ;;  %v5632_v13 = vpack.c.bf16 %v3127_v61, %v3124_v60  ;;  %v3154_v18 = vld [vmem:[#allocation21 + $0x5d8] sm:$0xff]  ;;  %v3187_v37 = vld [vmem:[#allocation21 + $0x6e0] sm:$0xff] }
 0x73c   :  { %5597 = vmatprep.subr.bf16.mxu1 %v5596_v6  ;;  %5725 = vmatprep.subr.bf16.mxu0 %v5724_v56  ;;  %v5742_v6 = vpack.c.bf16 %v3098_v52, %v3095_v63  ;;  %v3099_v56 = vld [vmem:[#allocation21 + $0x420] sm:$0xff]  ;;  %v3157_v45 = vld [vmem:[#allocation21 + $0x5f0] sm:$0xff] }
 0x73d   :  { %v3123_v52 = vld [vmem:[#allocation21 + $0x4e0] sm:$0xff] }
 0x73e   :  { %5599 = vmatpush1.bf16.msra.mxu1 %v5598_v12  ;;  %5727 = vmatpush3.bf16.msra.mxu0 %v5726_v14  ;;  %v3104_v12 = vld [vmem:[#allocation21 + $0x448] sm:$0xff]  ;;  %v3106_v14 = vld [vmem:[#allocation21 + $0x458] sm:$0xff] }
 0x73f   :  { %5601 = vmatprep.subr.bf16.mxu1 %v5600_v19  ;;  %5729 = vmatprep.subr.bf16.mxu0 %v5728_v20  ;;  %v3158_v19 = vld [vmem:[#allocation21 + $0x5f8] sm:$0xff]  ;;  %v5618_v20 = vpack.c.bf16 %v3102_v8, %v3099_v56  ;;  %v5746_v22 = vpack.c.bf16 %v3104_v12, %v3101_v11  ;;  %v5620_v25 = vpack.c.bf16 %v3109_v15, %v3106_v14  ;;  %v3132_v11 = vld [vmem:[#allocation21 + $0x528] sm:$0xff]  ;;  %v3179_v12 = vld [vmem:[#allocation21 + $0x6a0] sm:$0xff] }
 0x740   :  { %v5748_v27 = vpack.c.bf16 %v3158_v19, %v3155_v16  ;;  %v5634_v56 = vpack.c.bf16 %v3126_v2, %v3123_v52  ;;  %v5759_v8 = vpack.c.bf16 %v3176_v31, %v3173_v3  ;;  %v3182_v14 = vld [vmem:[#allocation21 + $0x6b8] sm:$0xff]  ;;  %v3136_v15 = vld [vmem:[#allocation21 + $0x548] sm:$0xff]  ;;  %v3139_v16 = vld [vmem:[#allocation21 + $0x560] sm:$0xff] }
 0x741   :  { %v5640_v23 = vpack.c.bf16 %v3139_v16, %v3136_v15  ;;  %v3159_v2 = vld [vmem:[#allocation21 + $0x600] sm:$0xff]  ;;  %v3162_v3 = vld [vmem:[#allocation21 + $0x618] sm:$0xff] }
 0x742   :  { %5603 = vmatpush1.bf16.msra.mxu1 %v5602_v62  ;;  %5731 = vmatpush3.bf16.msra.mxu0 %v5730_v28  ;;  %v3107_v62 = vld [vmem:[#allocation21 + $0x460] sm:$0xff]  ;;  %v3110_v28 = vld [vmem:[#allocation21 + $0x478] sm:$0xff] }
 0x743   :  { %5605 = vmatprep.subr.bf16.mxu1 %v5604_v30  ;;  %5733 = vmatprep.subr.bf16.mxu0 %v5732_v32  ;;  %v2320_v32 = vrot.slane %v6890_v39, %v1463_v34  ;;  %v5750_v35 = vpack.c.bf16 %v3110_v28, %v3107_v62  ;;  %v3145_v62 = vld [vmem:[#allocation21 + $0x590] sm:$0xff]  ;;  %v3166_v31 = vld [vmem:[#allocation21 + $0x638] sm:$0xff] }
 0x744   :  { %v3174_v15 = vld [vmem:[#allocation21 + $0x678] sm:$0xff] }
 0x745   :  { %v3178_v16 = vld [vmem:[#allocation21 + $0x698] sm:$0xff] }
 0x746   :  { %5607 = vmatpush1.bf16.msra.mxu1 %v5606_v42  ;;  %5735 = vmatpush3.bf16.msra.mxu0 %v5734_v43  ;;  %v5624_v42 = vpack.c.bf16 %v3115_v29, %v3112_v21  ;;  %v3114_v43 = vld [vmem:[#allocation21 + $0x498] sm:$0xff]  ;;  %v3141_v29 = vld [vmem:[#allocation21 + $0x570] sm:$0xff] }
 0x747   :  { %5609 = vmatprep.subr.bf16.mxu1 %v5608_v50  ;;  %5737 = vmatprep.subr.bf16.mxu0 %v5736_v53  ;;  %v5626_v39 = vpack.c.bf16 %v3114_v43, %v3111_v36  ;;  %v3148_v36 = vld [vmem:[#allocation21 + $0x5a8] sm:$0xff]  ;;  %v3147_v43 = vld [vmem:[#allocation21 + $0x5a0] sm:$0xff] }
 0x74a   :  { %5611 = vmatpush1.bf16.msra.mxu1 %v5610_v10  ;;  %5739 = vmatpush3.bf16.msra.mxu0 %v5738_v51  ;;  %v3167_v10 = vld [vmem:[#allocation21 + $0x640] sm:$0xff]  ;;  %v3170_v51 = vld [vmem:[#allocation21 + $0x658] sm:$0xff] }
 0x74b   :  { %5613 = vmatprep.subr.bf16.mxu1 %v5612_v7  ;;  %5741 = vmatprep.subr.bf16.mxu0 %v5740_v40  ;;  %v5630_v40 = vpack.c.bf16 %v3120_v59, %v3117_v47  ;;  %v5756_v63 = vpack.c.bf16 %v3170_v51, %v3167_v10  ;;  %v3156_v47 = vld [vmem:[#allocation21 + $0x5e8] sm:$0xff]  ;;  %v3206_v59 = vld [vmem:[#allocation21 + $0x778] sm:$0xff]  ;;  %v3163_v51 = vld [vmem:[#allocation21 + $0x620] sm:$0xff] }
 0x74c   :  { %v3160_v10 = vld [vmem:[#allocation21 + $0x608] sm:$0xff] }
 0x74e   :  { %5615 = vmatpush1.bf16.msra.mxu1 %v5614_v4  ;;  %5743 = vmatpush3.bf16.msra.mxu0 %v5742_v6  ;;  %v3130_v4 = vld [vmem:[#allocation21 + $0x518] sm:$0xff]  ;;  %v3133_v6 = vld [vmem:[#allocation21 + $0x530] sm:$0xff] }
 0x74f   :  { %5617 = vmatprep.subr.bf16.mxu1 %v5616_v9  ;;  %5745 = vmatprep.subr.bf16.mxu0 %v5744_v17  ;;  %v3129_v9 = vld [vmem:[#allocation21 + $0x510] sm:$0xff]  ;;  %v5636_v17 = vpack.c.bf16 %v3133_v6, %v3130_v4 }
 0x750   :  { %v5638_v19 = vpack.c.bf16 %v3132_v11, %v3129_v9  ;;  %v3169_v4 = vld [vmem:[#allocation21 + $0x650] sm:$0xff]  ;;  %v3175_v11 = vld [vmem:[#allocation21 + $0x680] sm:$0xff] }
 0x751   :  { %v3165_v9 = vld [vmem:[#allocation21 + $0x630] sm:$0xff] }
 0x752   :  { %5619 = vmatpush1.bf16.msra.mxu1 %v5618_v20  ;;  %5747 = vmatpush3.bf16.msra.mxu0 %v5746_v22  ;;  %v4216_v30 = vpop.f32.mrb[14].mxu0  ;;  %v5762_v20 = vpack.c.bf16 %v3182_v14, %v3179_v12  ;;  %v3135_v22 = vld [vmem:[#allocation21 + $0x540] sm:$0xff] }
 0x753   :  { %v4251_v38 = vpop.f32.mrb[12].mxu1  ;;  %v4217_v41 = vpop.f32.mrb[15].mxu0  ;;  %5621 = vmatprep.subr.bf16.mxu1 %v5620_v25  ;;  %5749 = vmatprep.subr.bf16.mxu0 %v5748_v27  ;;  %v3185_v25 = vld [vmem:[#allocation21 + $0x6d0] sm:$0xff]  ;;  %v3188_v27 = vld [vmem:[#allocation21 + $0x6e8] sm:$0xff]  ;;  %v5642_v28 = vpack.c.bf16 %v3138_v24, %v3135_v22  ;;  %v3171_v14 = vld [vmem:[#allocation21 + $0x660] sm:$0xff] }
 0x754   :  { %v4218_v50 = vadd.f32 %v4217_v41, %v4216_v30  ;;  %v4252_v53 = vpop.f32.mrb[13].mxu1  ;;  %v5765_v21 = vpack.c.bf16 %v3188_v27, %v3185_v25  ;;  %v5644_v30 = vpack.c.bf16 %v3145_v62, %v3142_v5  ;;  %v3180_v24 = vld [vmem:[#allocation21 + $0x6a8] sm:$0xff]  ;;  %v3183_v5 = vld [vmem:[#allocation21 + $0x6c0] sm:$0xff]  ;;  %v3186_v62 = vld [vmem:[#allocation21 + $0x6d8] sm:$0xff] }
 0x755   :  { %v4253_v54 = vadd.f32 %v4252_v53, %v4251_v38  ;;  %v3151_v38 = vld [vmem:[#allocation21 + $0x5c0] sm:$0xff]  ;;  %v3200_v53 = vld [vmem:[#allocation21 + $0x748] sm:$0xff] }
 0x756   :  { %v2819_v34 = vadd.f32 %v4218_v50, %v2320_v32  ;;  %5623 = vmatpush1.bf16.msra.mxu1 %v5622_v33  ;;  %5751 = vmatpush3.bf16.msra.mxu0 %v5750_v35  ;;  %v3144_v32 = vld [vmem:[#allocation21 + $0x588] sm:$0xff]  ;;  %v3191_v33 = vld [vmem:[#allocation21 + $0x700] sm:$0xff]  ;;  %v3194_v35 = vld [vmem:[#allocation21 + $0x718] sm:$0xff]  ;;  %v5648_v44 = vpack.c.bf16 %v3151_v38, %v3148_v36 }
 0x757   :  { %5625 = vmatprep.subr.bf16.mxu1 %v5624_v42  ;;  %5752 = vmatprep.subr.bf16.mxu0 %v6409_v0  ;;  %v5646_v41 = vpack.c.bf16 %v3144_v32, %v3141_v29  ;;  %v5768_v42 = vpack.c.bf16 %v3194_v35, %v3191_v33  ;;  %v3197_v50 = vld [vmem:[#allocation21 + $0x730] sm:$0xff]  ;;  %v3184_v25 = vld [vmem:[#allocation21 + $0x6c8] sm:$0xff]  ;;  %v5674_v29 = vpack.c.bf16 %v3186_v62, %v3183_v5  ;;  %v3199_v36 = vld [vmem:[#allocation21 + $0x740] sm:$0xff] }
 0x758   :  { %v6911_v7 = vadd.f32 %v4253_v54, %v2819_v34  ;;  %v5650_v54 = vpack.c.bf16 %v3150_v49, %v3147_v43  ;;  %v5771_v34 = vpack.c.bf16 %v3200_v53, %v3197_v50  ;;  %v5672_v27 = vpack.c.bf16 %v3187_v37, %v3184_v25  ;;  %v3189_v32 = vld [vmem:[#allocation21 + $0x6f0] sm:$0xff]  ;;  %v3192_v33 = vld [vmem:[#allocation21 + $0x708] sm:$0xff]  ;;  %v3198_v43 = vld [vmem:[#allocation21 + $0x738] sm:$0xff] }
 0x759   :  { %3572 = vmatmul.mubr.f32.vlgmr.msra.gmra.mrb[20].mxu0 %v2964_v57  ;;  %v3196_v35 = vld [vmem:[#allocation21 + $0x728] sm:$0xff]  ;;  %v5678_v38 = vpack.c.bf16 %v3192_v33, %v3189_v32  ;;  %v3205_v49 = vld [vmem:[#allocation21 + $0x770] sm:$0xff]  ;;  %v3677_v37 = vld [vmem:[#allocation24 + $0xd8] sm:$0xff] }
 0x75a   :  { %5627 = vmatpush1.bf16.msra.mxu1 %v5626_v39  ;;  %5754 = vmatpush3.bf16.msra.mxu0 %v5753_v55  ;;  %v3153_v39 = vld [vmem:[#allocation21 + $0x5d0] sm:$0xff]  ;;  %v5652_v55 = vpack.c.bf16 %v3157_v45, %v3154_v18  ;;  %v3204_v45 = vld [vmem:[#allocation21 + $0x768] sm:$0xff] }
 0x75b   :  { %5629 = vmatprep.subr.bf16.mxu1 %v5628_v58  ;;  %5755 = vmatprep.subr.bf16.mxu0 %v6409_v0  ;;  %v3203_v58 = vld [vmem:[#allocation21 + $0x760] sm:$0xff]  ;;  %v5654_v61 = vpack.c.bf16 %v3156_v47, %v3153_v39  ;;  %v3201_v18 = vld [vmem:[#allocation21 + $0x750] sm:$0xff] }
 0x75c   :  { %4565 = vmatprep.mubr.msk.f32.mxu0 %vm6410_vm0, %v6411_v1  ;;  %v3653_v39 = vld [vmem:[#allocation24 + $0x18] sm:$0xff]  ;;  %v3675_v25 = vld [vmem:[#allocation24 + $0xc8] sm:$0xff]  ;;  %v3674_v5 = vld [vmem:[#allocation24 + $0xc0] sm:$0xff] }
 0x75d   :  { %v3676_v62 = vld [vmem:[#allocation24 + $0xd0] sm:$0xff]  ;;  %v3678_v32 = vld [vmem:[#allocation24 + $0xe0] sm:$0xff] }
 0x75e   :  { %5631 = vmatpush1.bf16.msra.mxu1 %v5630_v40  ;;  %5757 = vmatpush3.bf16.msra.mxu0 %v5756_v63  ;;  %v5774_v40 = vpack.c.bf16 %v3206_v59, %v3203_v58  ;;  %v3652_v58 = vld [vmem:[#allocation24 + $0x10] sm:$0xff]  ;;  %v3655_v59 = vld [vmem:[#allocation24 + $0x28] sm:$0xff] }
 0x75f   :  { %5633 = vmatprep.subr.bf16.mxu1 %v5632_v13  ;;  %5758 = vmatprep.subr.bf16.mxu0 %v6409_v0  ;;  %v5656_v13 = vpack.c.bf16 %v3163_v51, %v3160_v10  ;;  %v3657_v10 = vld [vmem:[#allocation24 + $0x38] sm:$0xff]  ;;  %v3680_v33 = vld [vmem:[#allocation24 + $0xf0] sm:$0xff] }
 0x762   :  { %5635 = vmatpush1.bf16.msra.mxu1 %v5634_v56  ;;  %5760 = vmatpush3.bf16.msra.mxu0 %v5759_v8  ;;  %v5658_v56 = vpack.c.bf16 %v3162_v3, %v3159_v2  ;;  %v5660_v8 = vpack.c.bf16 %v3169_v4, %v3166_v31  ;;  %v3658_v3 = vld [vmem:[#allocation24 + $0x40] sm:$0xff]  ;;  %v3660_v31 = vld [vmem:[#allocation24 + $0x50] sm:$0xff]  ;;  %v3663_v4 = vld [vmem:[#allocation24 + $0x68] sm:$0xff] }
 0x763   :  { %5637 = vmatprep.subr.bf16.mxu1 %v5636_v17  ;;  %5761 = vmatprep.subr.bf16.mxu0 %v6409_v0  ;;  %v3168_v17 = vld [vmem:[#allocation21 + $0x648] sm:$0xff] }
 0x766   :  { %5639 = vmatpush1.bf16.msra.mxu1 %v5638_v19  ;;  %5763 = vmatpush3.bf16.msra.mxu0 %v5762_v20  ;;  %v3181_v19 = vld [vmem:[#allocation21 + $0x6b0] sm:$0xff]  ;;  %v5666_v20 = vpack.c.bf16 %v3174_v15, %v3171_v14  ;;  %v3666_v14 = vld [vmem:[#allocation24 + $0x80] sm:$0xff] }
 0x767   :  { %5641 = vmatprep.subr.bf16.mxu1 %v5640_v23  ;;  %5764 = vmatprep.subr.bf16.mxu0 %v6409_v0  ;;  %v5668_v22 = vpack.c.bf16 %v3181_v19, %v3178_v16  ;;  %v3177_v23 = vld [vmem:[#allocation21 + $0x690] sm:$0xff]  ;;  %v3673_v19 = vld [vmem:[#allocation24 + $0xb8] sm:$0xff] }
 0x768   :  { %v3668_v15 = vld [vmem:[#allocation24 + $0x90] sm:$0xff]  ;;  %v3671_v16 = vld [vmem:[#allocation24 + $0xa8] sm:$0xff] }
 0x76a   :  { %5643 = vmatpush1.bf16.msra.mxu1 %v5642_v28  ;;  %5766 = vmatpush3.bf16.msra.mxu0 %v5765_v21  ;;  %v3190_v28 = vld [vmem:[#allocation21 + $0x6f8] sm:$0xff]  ;;  %v3193_v21 = vld [vmem:[#allocation21 + $0x710] sm:$0xff] }
 0x76b   :  { %5645 = vmatprep.subr.bf16.mxu1 %v5644_v30  ;;  %5767 = vmatprep.subr.bf16.mxu0 %v6409_v0  ;;  %v5676_v30 = vpack.c.bf16 %v3193_v21, %v3190_v28  ;;  %v5802_v28 = vpack.c.bf16 %v3676_v62, %v3674_v5  ;;  %v3679_v21 = vld [vmem:[#allocation24 + $0xe8] sm:$0xff] }
 0x76e   :  { %5647 = vmatpush1.bf16.msra.mxu1 %v5646_v41  ;;  %5769 = vmatpush3.bf16.msra.mxu0 %v5768_v42  ;;  %v5680_v41 = vpack.c.bf16 %v3199_v36, %v3196_v35  ;;  %v3195_v42 = vld [vmem:[#allocation21 + $0x720] sm:$0xff]  ;;  %v5806_v35 = vpack.c.bf16 %v3680_v33, %v3678_v32  ;;  %v3683_v36 = vld [vmem:[#allocation24 + $0x108] sm:$0xff] }
 0x76f   :  { %5649 = vmatprep.subr.bf16.mxu1 %v5648_v44  ;;  %5770 = vmatprep.subr.bf16.mxu0 %v6409_v0  ;;  %v3202_v44 = vld [vmem:[#allocation21 + $0x758] sm:$0xff]  ;;  %v5682_v50 = vpack.c.bf16 %v3198_v43, %v3195_v42  ;;  %v3903_v33 = vld [vmem:[#allocation27 + $0x8] sm:$0xff] }
 0x770   :  { %v5684_v53 = vpack.c.bf16 %v3205_v49, %v3202_v44  ;;  %v3684_v43 = vld [vmem:[#allocation24 + $0x110] sm:$0xff]  ;;  %v3687_v44 = vld [vmem:[#allocation24 + $0x128] sm:$0xff]  ;;  %v3689_v49 = vld [vmem:[#allocation24 + $0x138] sm:$0xff] }
 0x772   :  { %5651 = vmatpush1.bf16.msra.mxu1 %v5650_v54  ;;  %5772 = vmatpush3.bf16.msra.mxu0 %v5771_v34  ;;  %v2958_v60 = vpop.f32.mrb[16].mxu0  ;;  %v5686_v54 = vpack.c.bf16 %v3204_v45, %v3201_v18  ;;  %v3651_v34 = vld [vmem:[#allocation24 + $0x8] sm:$0xff]  ;;  %v3686_v18 = vld [vmem:[#allocation24 + $0x120] sm:$0xff]  ;;  %v3688_v45 = vld [vmem:[#allocation24 + $0x130] sm:$0xff] }
 0x773   :  { %v6924_v63 = vadd.f32 %v2958_v60, %v6911_v7  ;;  %v4532_v52 = vpop.f32.mrb[17].mxu0  ;;  %5653 = vmatprep.subr.bf16.mxu1 %v5652_v55  ;;  %5773 = vmatprep.subr.bf16.mxu0 %v6409_v0  ;;  %v3172_v7 = vld [vmem:[#allocation21 + $0x668] sm:$0xff]  ;;  %v5662_v0 = vpack.c.bf16 %v3168_v17, %v3165_v9  ;;  %v5776_v47 = vpack.c.bf16 %v3653_v39, %v3651_v34  ;;  %v3664_v17 = vld [vmem:[#allocation24 + $0x70] sm:$0xff]  ;;  %v3693_v34 = vld [vmem:[#allocation24 + $0x158] sm:$0xff] }
 0x774   :  { %v5664_v12 = vpack.c.bf16 %v3175_v11, %v3172_v7  ;;  %v3650_v55 = vld [vmem:[#allocation24] sm:$0xff]  ;;  %v5780_v60 = vpack.c.bf16 %v3657_v10, %v3655_v59  ;;  %v3661_v52 = vld [vmem:[#allocation24 + $0x58] sm:$0xff]  ;;  %v3667_v7 = vld [vmem:[#allocation24 + $0x88] sm:$0xff]  ;;  %v5814_v39 = vpack.c.bf16 %v3688_v45, %v3686_v18 }
 0x775   :  { %v2966_v6 = vmax.f32 %v6924_v63, 0.0  ;;  %v5778_v51 = vpack.c.bf16 %v3652_v58, %v3650_v55  ;;  %v3659_v63 = vld [vmem:[#allocation24 + $0x48] sm:$0xff]  ;;  %v3662_v9 = vld [vmem:[#allocation24 + $0x60] sm:$0xff]  ;;  %v3669_v11 = vld [vmem:[#allocation24 + $0x98] sm:$0xff] }
 0x776   :  { %5655 = vmatpush1.bf16.msra.mxu1 %v5654_v61  ;;  %5775 = vmatpush3.bf16.msra.mxu0 %v5774_v40  ;;  %v3654_v61 = vld [vmem:[#allocation24 + $0x20] sm:$0xff]  ;;  %v3656_v40 = vld [vmem:[#allocation24 + $0x30] sm:$0xff]  ;;  %v5784_v2 = vpack.c.bf16 %v3661_v52, %v3659_v63  ;;  %v3695_v59 = vld [vmem:[#allocation24 + $0x168] sm:$0xff] }
 0x777   :  { %5657 = vmatprep.subr.bf16.mxu1 %v5656_v13  ;;  %5777 = vmatprep.subr.bf16.mxu0 %v5776_v47  ;;  %v5782_v13 = vpack.c.bf16 %v3656_v40, %v3654_v61  ;;  %v3690_v47 = vld [vmem:[#allocation24 + $0x140] sm:$0xff]  ;;  %v3692_v58 = vld [vmem:[#allocation24 + $0x150] sm:$0xff]  ;;  %v3697_v10 = vld [vmem:[#allocation24 + $0x178] sm:$0xff] }
 0x778   :  { %v3694_v61 = vld [vmem:[#allocation24 + $0x160] sm:$0xff]  ;;  %v3696_v40 = vld [vmem:[#allocation24 + $0x170] sm:$0xff]  ;;  %v3699_v63 = vld [vmem:[#allocation24 + $0x188] sm:$0xff] }
 0x779   :  { %3360 = vmatmul.mubr.f32.vlgmr.msra.gmra.mrb[14].mxu1 %v2964_v57  ;;  %4566 = vmatmul.mubr.f32.vlgmr.msra.gmra.mrb[22].mxu0 %v2966_v6  ;;  %v5670_v57 = vpack.c.bf16 %v3180_v24, %v3177_v23  ;;  %v3670_v23 = vld [vmem:[#allocation24 + $0xa0] sm:$0xff]  ;;  %v3672_v24 = vld [vmem:[#allocation24 + $0xb0] sm:$0xff]  ;;  %v3701_v52 = vld [vmem:[#allocation24 + $0x198] sm:$0xff] }
 0x77a   :  { %5659 = vmatpush1.bf16.msra.mxu1 %v5658_v56  ;;  %3430 = vmatprep.mubr.f32.mxu1 %v6411_v1  ;;  %v5786_v56 = vpack.c.bf16 %v3660_v31, %v3658_v3  ;;  %v3698_v3 = vld [vmem:[#allocation24 + $0x180] sm:$0xff]  ;;  %v3700_v31 = vld [vmem:[#allocation24 + $0x190] sm:$0xff] }
 0x77b   :  { %5661 = vmatprep.subr.bf16.mxu1 %v5660_v8  ;;  %5779 = vmatpush1.bf16.msra.mxu0 %v5778_v51  ;;  %v5818_v51 = vpack.c.bf16 %v3692_v58, %v3690_v47  ;;  %v3906_v18 = vld [vmem:[#allocation27 + $0x20] sm:$0xff]  ;;  %v3907_v45 = vld [vmem:[#allocation27 + $0x28] sm:$0xff]  ;;  %v3908_v47 = vld [vmem:[#allocation27 + $0x30] sm:$0xff] }
 0x77c   :  { %5781 = vmatprep.subr.bf16.mxu0 %v5780_v60  ;;  %v5820_v60 = vpack.c.bf16 %v3697_v10, %v3695_v59  ;;  %v3909_v58 = vld [vmem:[#allocation27 + $0x38] sm:$0xff]  ;;  %v3926_v59 = vld [vmem:[#allocation27 + $0xc0] sm:$0xff]  ;;  %v3927_v10 = vld [vmem:[#allocation27 + $0xc8] sm:$0xff] }
 0x77e   :  { %5663 = vmatpush1.bf16.msra.mxu1 %v5662_v0  ;;  %v5790_v0 = vpack.c.bf16 %v3664_v17, %v3662_v9  ;;  %v3702_v9 = vld [vmem:[#allocation24 + $0x1a0] sm:$0xff]  ;;  %v3704_v17 = vld [vmem:[#allocation24 + $0x1b0] sm:$0xff] }
 0x77f   :  { %5665 = vmatprep.subr.bf16.mxu1 %v5664_v12  ;;  %5783 = vmatpush1.bf16.msra.mxu0 %v5782_v13  ;;  %v5792_v12 = vpack.c.bf16 %v3669_v11, %v3667_v7  ;;  %v5822_v13 = vpack.c.bf16 %v3696_v40, %v3694_v61  ;;  %v3707_v7 = vld [vmem:[#allocation24 + $0x1c8] sm:$0xff]  ;;  %v3709_v11 = vld [vmem:[#allocation24 + $0x1d8] sm:$0xff] }
 0x780   :  { %5785 = vmatprep.subr.bf16.mxu0 %v5784_v2  ;;  %v5824_v2 = vpack.c.bf16 %v3701_v52, %v3699_v63  ;;  %v3910_v61 = vld [vmem:[#allocation27 + $0x40] sm:$0xff]  ;;  %v3911_v40 = vld [vmem:[#allocation27 + $0x48] sm:$0xff]  ;;  %v3928_v63 = vld [vmem:[#allocation27 + $0xd0] sm:$0xff] }
 0x781   :  { %v3929_v52 = vld [vmem:[#allocation27 + $0xd8] sm:$0xff] }
 0x782   :  { %5667 = vmatpush1.bf16.msra.mxu1 %v5666_v20  ;;  %v5794_v20 = vpack.c.bf16 %v3668_v15, %v3666_v14  ;;  %v3706_v14 = vld [vmem:[#allocation24 + $0x1c0] sm:$0xff]  ;;  %v3708_v15 = vld [vmem:[#allocation24 + $0x1d0] sm:$0xff] }
 0x783   :  { %5669 = vmatprep.subr.bf16.mxu1 %v5668_v22  ;;  %5787 = vmatpush1.bf16.msra.mxu0 %v5786_v56  ;;  %v5796_v22 = vpack.c.bf16 %v3673_v19, %v3671_v16  ;;  %v5826_v56 = vpack.c.bf16 %v3700_v31, %v3698_v3  ;;  %v5834_v16 = vpack.c.bf16 %v3708_v15, %v3706_v14  ;;  %v3711_v19 = vld [vmem:[#allocation24 + $0x1e8] sm:$0xff]  ;;  %v3912_v3 = vld [vmem:[#allocation27 + $0x50] sm:$0xff]  ;;  %v3913_v31 = vld [vmem:[#allocation27 + $0x58] sm:$0xff] }
 0x786   :  { %5671 = vmatpush1.bf16.msra.mxu1 %v5670_v57  ;;  %v5798_v57 = vpack.c.bf16 %v3672_v24, %v3670_v23  ;;  %v3710_v23 = vld [vmem:[#allocation24 + $0x1e0] sm:$0xff]  ;;  %v3712_v24 = vld [vmem:[#allocation24 + $0x1f0] sm:$0xff] }
 0x787   :  { %5673 = vmatprep.subr.bf16.mxu1 %v5672_v27  ;;  %v5800_v27 = vpack.c.bf16 %v3677_v37, %v3675_v25  ;;  %v5838_v25 = vpack.c.bf16 %v3712_v24, %v3710_v23  ;;  %v3715_v37 = vld [vmem:[#allocation24 + $0x208] sm:$0xff] }
 0x78a   :  { %5675 = vmatpush1.bf16.msra.mxu1 %v5674_v29  ;;  %v3681_v29 = vld [vmem:[#allocation24 + $0xf8] sm:$0xff] }
 0x78b   :  { %5677 = vmatprep.subr.bf16.mxu1 %v5676_v30  ;;  %v5804_v30 = vpack.c.bf16 %v3681_v29, %v3679_v21  ;;  %v3918_v21 = vld [vmem:[#allocation27 + $0x80] sm:$0xff]  ;;  %v3919_v29 = vld [vmem:[#allocation27 + $0x88] sm:$0xff] }
 0x78c   :  { %v5872_v32 = vpack.c.bf16 %v3919_v29, %v3918_v21 }
 0x78e   :  { %5679 = vmatpush1.bf16.msra.mxu1 %v5678_v38  ;;  %v3685_v38 = vld [vmem:[#allocation24 + $0x118] sm:$0xff] }
 0x78f   :  { %5681 = vmatprep.subr.bf16.mxu1 %v5680_v41  ;;  %v3682_v41 = vld [vmem:[#allocation24 + $0x100] sm:$0xff]  ;;  %v5808_v42 = vpack.c.bf16 %v3685_v38, %v3683_v36 }
 0x790   :  { %v3921_v36 = vld [vmem:[#allocation27 + $0x98] sm:$0xff] }
 0x792   :  { %5683 = vmatpush1.bf16.msra.mxu1 %v5682_v50  ;;  %v5810_v50 = vpack.c.bf16 %v3684_v43, %v3682_v41  ;;  %v3905_v43 = vld [vmem:[#allocation27 + $0x18] sm:$0xff] }
 0x793   :  { %5685 = vmatprep.subr.bf16.mxu1 %v5684_v53  ;;  %v5812_v53 = vpack.c.bf16 %v3689_v49, %v3687_v44  ;;  %v3922_v44 = vld [vmem:[#allocation27 + $0xa0] sm:$0xff]  ;;  %v3923_v49 = vld [vmem:[#allocation27 + $0xa8] sm:$0xff] }
 0x796   :  { %5687 = vmatpush1.bf16.msra.mxu1 %v5686_v54  ;;  %v3691_v54 = vld [vmem:[#allocation24 + $0x148] sm:$0xff] }
 0x797   :  { %v5816_v55 = vpack.c.bf16 %v3693_v34, %v3691_v54  ;;  %5873 = vmatprep.subr.bf16.mxu1 %v5872_v32  ;;  %v3924_v54 = vld [vmem:[#allocation27 + $0xb0] sm:$0xff]  ;;  %v3925_v34 = vld [vmem:[#allocation27 + $0xb8] sm:$0xff] }
 0x798   :  { %v3720_v32 = vld [vmem:[#allocation24 + $0x230] sm:$0xff] }
 0x799   :  { %3431 = vmatmul.mubr.f32.vlgmr.msra.gmra.mrb[14].mxu1 %v2966_v6  ;;  %v3665_v6 = vld [vmem:[#allocation24 + $0x78] sm:$0xff] }
 0x79a   :  { %v5788_v8 = vpack.c.bf16 %v3665_v6, %v3663_v4  ;;  %v3703_v4 = vld [vmem:[#allocation24 + $0x1a8] sm:$0xff]  ;;  %v3705_v6 = vld [vmem:[#allocation24 + $0x1b8] sm:$0xff] }
 0x79c   :  { %5789 = vmatprep.subr.bf16.mxu0 %v5788_v8  ;;  %v5828_v8 = vpack.c.bf16 %v3705_v6, %v3703_v4  ;;  %v3930_v4 = vld [vmem:[#allocation27 + $0xe0] sm:$0xff]  ;;  %v3931_v6 = vld [vmem:[#allocation27 + $0xe8] sm:$0xff] }
 0x79d   :  { %5791 = vmatpush1.bf16.msra.mxu0 %v5790_v0  ;;  %v5830_v0 = vpack.c.bf16 %v3704_v17, %v3702_v9  ;;  %v5896_v9 = vpack.c.bf16 %v3931_v6, %v3930_v4 }
 0x79e   :  { %5793 = vmatprep.subr.bf16.mxu0 %v5792_v12  ;;  %v5832_v12 = vpack.c.bf16 %v3709_v11, %v3707_v7 }
 0x7a1   :  { %5795 = vmatpush1.bf16.msra.mxu0 %v5794_v20  ;;  %v3713_v20 = vld [vmem:[#allocation24 + $0x1f8] sm:$0xff] }
 0x7a2   :  { %5797 = vmatprep.subr.bf16.mxu0 %v5796_v22  ;;  %v5836_v22 = vpack.c.bf16 %v3713_v20, %v3711_v19 }
 0x7a5   :  { %5799 = vmatpush1.bf16.msra.mxu0 %v5798_v57  ;;  %v3717_v57 = vld [vmem:[#allocation24 + $0x218] sm:$0xff] }
 0x7a6   :  { %5801 = vmatprep.subr.bf16.mxu0 %v5800_v27  ;;  %v5840_v27 = vpack.c.bf16 %v3717_v57, %v3715_v37  ;;  %v3714_v37 = vld [vmem:[#allocation24 + $0x200] sm:$0xff] }
 0x7a9   :  { %5803 = vmatpush1.bf16.msra.mxu0 %v5802_v28 }
 0x7aa   :  { %5805 = vmatprep.subr.bf16.mxu0 %v5804_v30  ;;  %v3902_v30 = vld [vmem:[#allocation27] sm:$0xff] }
 0x7ab   :  { %v5874_v38 = vpack.c.bf16 %v3903_v33, %v3902_v30  ;;  %v3718_v30 = vld [vmem:[#allocation24 + $0x220] sm:$0xff]  ;;  %v3723_v33 = vld [vmem:[#allocation24 + $0x248] sm:$0xff] }
 0x7ad   :  { %5807 = vmatpush1.bf16.msra.mxu0 %v5806_v35  ;;  %v3920_v35 = vld [vmem:[#allocation27 + $0x90] sm:$0xff]  ;;  %5875 = vmatpush3.bf16.msra.mxu1 %v5874_v38 }
 0x7ae   :  { %5809 = vmatprep.subr.bf16.mxu0 %v5808_v42  ;;  %v5876_v41 = vpack.c.bf16 %v3921_v36, %v3920_v35  ;;  %v3904_v42 = vld [vmem:[#allocation27 + $0x10] sm:$0xff]  ;;  %v5846_v36 = vpack.c.bf16 %v3720_v32, %v3718_v30 }
 0x7af   :  { %v3725_v35 = vld [vmem:[#allocation24 + $0x258] sm:$0xff] }
 0x7b0   :  { %5877 = vmatprep.subr.bf16.mxu1 %v5876_v41  ;;  %v5848_v38 = vpack.c.bf16 %v3725_v35, %v3723_v33  ;;  %v3722_v41 = vld [vmem:[#allocation24 + $0x240] sm:$0xff] }
 0x7b1   :  { %5811 = vmatpush1.bf16.msra.mxu0 %v5810_v50  ;;  %v5878_v50 = vpack.c.bf16 %v3905_v43, %v3904_v42  ;;  %v3724_v42 = vld [vmem:[#allocation24 + $0x250] sm:$0xff]  ;;  %v3727_v43 = vld [vmem:[#allocation24 + $0x268] sm:$0xff] }
 0x7b2   :  { %5813 = vmatprep.subr.bf16.mxu0 %v5812_v53  ;;  %v5880_v53 = vpack.c.bf16 %v3923_v49, %v3922_v44  ;;  %v3729_v44 = vld [vmem:[#allocation24 + $0x278] sm:$0xff]  ;;  %v5850_v49 = vpack.c.bf16 %v3724_v42, %v3722_v41 }
 0x7b3   :  { %5879 = vmatpush3.bf16.msra.mxu1 %v5878_v50  ;;  %v5852_v50 = vpack.c.bf16 %v3729_v44, %v3727_v43 }
 0x7b4   :  { %5881 = vmatprep.subr.bf16.mxu1 %v5880_v53  ;;  %v3726_v53 = vld [vmem:[#allocation24 + $0x260] sm:$0xff] }
 0x7b5   :  { %5815 = vmatpush1.bf16.msra.mxu0 %v5814_v39  ;;  %v5882_v39 = vpack.c.bf16 %v3907_v45, %v3906_v18  ;;  %v3728_v18 = vld [vmem:[#allocation24 + $0x270] sm:$0xff]  ;;  %v3731_v45 = vld [vmem:[#allocation24 + $0x288] sm:$0xff] }
 0x7b6   :  { %5817 = vmatprep.subr.bf16.mxu0 %v5816_v55  ;;  %v5884_v55 = vpack.c.bf16 %v3925_v34, %v3924_v54  ;;  %v3733_v54 = vld [vmem:[#allocation24 + $0x298] sm:$0xff]  ;;  %v5854_v34 = vpack.c.bf16 %v3728_v18, %v3726_v53 }
 0x7b7   :  { %5883 = vmatpush3.bf16.msra.mxu1 %v5882_v39  ;;  %v5856_v39 = vpack.c.bf16 %v3733_v54, %v3731_v45 }
 0x7b8   :  { %5885 = vmatprep.subr.bf16.mxu1 %v5884_v55  ;;  %v3730_v55 = vld [vmem:[#allocation24 + $0x280] sm:$0xff] }
 0x7b9   :  { %5819 = vmatpush1.bf16.msra.mxu0 %v5818_v51  ;;  %v5886_v51 = vpack.c.bf16 %v3909_v58, %v3908_v47  ;;  %v3735_v47 = vld [vmem:[#allocation24 + $0x2a8] sm:$0xff]  ;;  %v3737_v58 = vld [vmem:[#allocation24 + $0x2b8] sm:$0xff] }
 0x7ba   :  { %5821 = vmatprep.subr.bf16.mxu0 %v5820_v60  ;;  %v5888_v60 = vpack.c.bf16 %v3927_v10, %v3926_v59  ;;  %v5860_v10 = vpack.c.bf16 %v3737_v58, %v3735_v47 }
 0x7bb   :  { %5887 = vmatpush3.bf16.msra.mxu1 %v5886_v51  ;;  %v3734_v51 = vld [vmem:[#allocation24 + $0x2a0] sm:$0xff] }
 0x7bc   :  { %5889 = vmatprep.subr.bf16.mxu1 %v5888_v60  ;;  %v3736_v60 = vld [vmem:[#allocation24 + $0x2b0] sm:$0xff] }
 0x7bd   :  { %5823 = vmatpush1.bf16.msra.mxu0 %v5822_v13  ;;  %v5890_v13 = vpack.c.bf16 %v3911_v40, %v3910_v61  ;;  %v3739_v61 = vld [vmem:[#allocation24 + $0x2c8] sm:$0xff]  ;;  %v3741_v40 = vld [vmem:[#allocation24 + $0x2d8] sm:$0xff] }
 0x7be   :  { %5825 = vmatprep.subr.bf16.mxu0 %v5824_v2  ;;  %v5892_v2 = vpack.c.bf16 %v3929_v52, %v3928_v63  ;;  %v5862_v63 = vpack.c.bf16 %v3736_v60, %v3734_v51  ;;  %v5864_v52 = vpack.c.bf16 %v3741_v40, %v3739_v61 }
 0x7bf   :  { %5891 = vmatpush3.bf16.msra.mxu1 %v5890_v13  ;;  %v3738_v13 = vld [vmem:[#allocation24 + $0x2c0] sm:$0xff] }
 0x7c0   :  { %5893 = vmatprep.subr.bf16.mxu1 %v5892_v2  ;;  %v3740_v2 = vld [vmem:[#allocation24 + $0x2d0] sm:$0xff] }
 0x7c1   :  { %5827 = vmatpush1.bf16.msra.mxu0 %v5826_v56  ;;  %v3207_v56 = vld [vmem:[#allocation22] sm:$0x7]  ;;  %v5866_v4 = vpack.c.bf16 %v3740_v2, %v3738_v13 }
 0x7c2   :  { %5829 = vmatprep.subr.bf16.mxu0 %v5828_v8  ;;  %v5894_v8 = vpack.c.bf16 %v3913_v31, %v3912_v3  ;;  %v3220_v17 = vrot.slane %v3207_v56, %v6790_v26  ;;  %v3212_v20 = vrot.slane %v3207_v56, %v6766_v46  ;;  %v3716_v26 = vld [vmem:[#allocation24 + $0x210] sm:$0xff]  ;;  %v3743_v3 = vld [vmem:[#allocation24 + $0x2e8] sm:$0xff]  ;;  %v3745_v31 = vld [vmem:[#allocation24 + $0x2f8] sm:$0xff] }
 0x7c3   :  { %v5868_v6 = vpack.c.bf16 %v3745_v31, %v3743_v3 }
 0x7c4   :  { %5895 = vmatpush3.bf16.msra.mxu1 %v5894_v8  ;;  %v3744_v8 = vld [vmem:[#allocation24 + $0x2f0] sm:$0xff] }
 0x7c5   :  { %5831 = vmatpush1.bf16.msra.mxu0 %v5830_v0  ;;  %5897 = vmatprep.subr.bf16.mxu1 %v5896_v9 }
 0x7c6   :  { %5833 = vmatprep.subr.bf16.mxu0 %v5832_v12 }
 0x7c9   :  { %5835 = vmatpush1.bf16.msra.mxu0 %v5834_v16 }
 0x7ca   :  { %5837 = vmatprep.subr.bf16.mxu0 %v5836_v22  ;;  %v3216_v22 = vrot.slane %v3207_v56, %v6769_v48  ;;  %v3742_v56 = vld [vmem:[#allocation24 + $0x2e0] sm:$0xff] }
 0x7cb   :  { %v5870_v9 = vpack.c.bf16 %v3744_v8, %v3742_v56 }
 0x7cd   :  { %5839 = vmatpush1.bf16.msra.mxu0 %v5838_v25 }
 0x7ce   :  { %5841 = vmatprep.subr.bf16.mxu0 %v5840_v27  ;;  %v3719_v27 = vld [vmem:[#allocation24 + $0x228] sm:$0xff] }
 0x80c   :  { %v4303_v5 = vpop.f32.mrb[18].mxu0 }
 0x80d   :  { %v4304_v62 = vpop.f32.mrb[19].mxu0 }
 0x80e   :  { %v4305_v28 = vadd.f32 %v4304_v62, %v4303_v5  ;;  %v3721_v5 = vld [vmem:[#allocation24 + $0x238] sm:$0xff] }
 0x80f   :  { %v5844_v29 = vpack.c.bf16 %v3721_v5, %v3719_v27 }
 0x810   :  { %v3504_v0 = vadd.f32 %v4305_v28, %v3220_v17  ;;  %v5842_v28 = vpack.c.bf16 %v3716_v26, %v3714_v37 }
 0x82c   :  { %v4338_v7 = vpop.f32.mrb[20].mxu0 }
 0x82d   :  { %v4339_v11 = vpop.f32.mrb[21].mxu0 }
 0x82e   :  { %v4340_v12 = vadd.f32 %v4339_v11, %v4338_v7  ;;  %v3914_v7 = vld [vmem:[#allocation27 + $0x60] sm:$0xff]  ;;  %v3915_v11 = vld [vmem:[#allocation27 + $0x68] sm:$0xff] }
 0x830   :  { %v3574_v14 = vadd.f32 %v4340_v12, %v3504_v0  ;;  %v5898_v0 = vpack.c.bf16 %v3915_v11, %v3914_v7  ;;  %v3932_v12 = vld [vmem:[#allocation27 + $0xf0] sm:$0xff] }
 0x832   :  { %5899 = vmatpush3.bf16.msra.mxu1 %v5898_v0 }
 0x84c   :  { %v3643_v15 = vpop.f32.mrb[22].mxu0 }
 0x84d   :  { %v6932_v16 = vadd.f32 %v3643_v15, %v3574_v14  ;;  %v4567_v19 = vpop.f32.mrb[23].mxu0  ;;  %v3933_v14 = vld [vmem:[#allocation27 + $0xf8] sm:$0xff] }
 0x84e   :  { %v5900_v15 = vpack.c.bf16 %v3933_v14, %v3932_v12  ;;  %v3916_v19 = vld [vmem:[#allocation27 + $0x70] sm:$0xff] }
 0x84f   :  { %v3649_v17 = vmax.f32 %v6932_v16, 0.0 }
 0x850   :  { %5901 = vmatprep.subr.bf16.mxu1 %v5900_v15 }
 0x86c   :  { %v3432_v23 = vpop.f32.mrb[14].mxu1 }
 0x86d   :  { %v5914_v24 = vadd.f32 %v3432_v23, %v3212_v20  ;;  %v3434_v25 = vpop.f32.mrb[15].mxu1  ;;  %v3917_v20 = vld [vmem:[#allocation27 + $0x78] sm:$0xff] }
 0x86e   :  { %v5915_v57 = vadd.f32 %v3434_v25, %v3216_v22  ;;  %v5902_v22 = vpack.c.bf16 %v3917_v20, %v3916_v19  ;;  %v3746_v23 = vld [vmem:[#allocation25] sm:$0x3] }
 0x86f   :  { %v3647_v21 = vmax.f32 %v5914_v24, 0.0  ;;  %v3751_v24 = vrot.slane %v3746_v23, %v6766_v46  ;;  %v3755_v25 = vrot.slane %v3746_v23, %v6769_v48 }
 0x870   :  { %v3648_v62 = vmax.f32 %v5915_v57, 0.0  ;;  %5903 = vmatpush3.bf16.msra.mxu1 %v5902_v22 }
 0x872   :  { %3822 = vmatprep.mubr.f32.mxu0 %v3648_v62 }
 0x873   :  { %3823 = vmatmul.mubr.f32.vlgmr.msra.gmra.mrb[24].mxu0 %v3647_v21 }
 0x874   :  { %5843 = vmatpush1.bf16.msra.mxu0 %v5842_v28  ;;  %3893 = vmatprep.mubr.f32.mxu0 %v6411_v1  ;;  %v3732_v1 = vld [vmem:[#allocation24 + $0x290] sm:$0xff]  ;;  %v4027_v28 = vld [vmem:[#allocation28] ss:$0 sm:$0xff] }
 0x875   :  { %5845 = vmatprep.subr.bf16.mxu0 %v5844_v29  ;;  %v5858_v59 = vpack.c.bf16 %v3732_v1, %v3730_v55 }
 0x878   :  { %5847 = vmatpush1.bf16.msra.mxu0 %v5846_v36 }
 0x879   :  { %5849 = vmatprep.subr.bf16.mxu0 %v5848_v38 }
 0x87c   :  { %5851 = vmatpush1.bf16.msra.mxu0 %v5850_v49 }
 0x87d   :  { %5853 = vmatprep.subr.bf16.mxu0 %v5852_v50 }
 0x880   :  { %5855 = vmatpush1.bf16.msra.mxu0 %v5854_v34 }
 0x881   :  { %5857 = vmatprep.subr.bf16.mxu0 %v5856_v39 }
 0x884   :  { %5859 = vmatpush1.bf16.msra.mxu0 %v5858_v59 }
 0x885   :  { %5861 = vmatprep.subr.bf16.mxu0 %v5860_v10 }
 0x888   :  { %5863 = vmatpush1.bf16.msra.mxu0 %v5862_v63 }
 0x889   :  { %5865 = vmatprep.subr.bf16.mxu0 %v5864_v52 }
 0x88c   :  { %5867 = vmatpush1.bf16.msra.mxu0 %v5866_v4 }
 0x88d   :  { %5869 = vmatprep.subr.bf16.mxu0 %v5868_v6 }
 0x890   :  { %5871 = vmatpush1.bf16.msra.mxu0 %v5870_v9 }
 0x893   :  { %3894 = vmatmul.mubr.f32.vlgmr.msra.gmra.mrb[24].mxu0 %v3649_v17 }
 0x966   :  { %v3895_v37 = vpop.f32.mrb[24].mxu0 }
 0x967   :  { %v5916_v16 = vadd.f32 %v3895_v37, %v3751_v24  ;;  %v3897_v26 = vpop.f32.mrb[25].mxu0 }
 0x968   :  { %v5917_v57 = vadd.f32 %v3897_v26, %v3755_v25 }
 0x969   :  { %v3900_v5 = vmax.f32 %v5916_v16, 0.0 }
 0x96a   :  { %v3901_v27 = vmax.f32 %v5917_v57, 0.0 }
 0x96c   :  { %4005 = vmatprep.mubr.f32.mxu1 %v3901_v27 }
 0x96d   :  { %4006 = vmatmul.mubr.f32.vlgmr.msra.gmra.mrb[16].mxu1 %v3900_v5 }
 0xa40   :  { %v4390_v62 = vpop.f32.mrb[16].mxu1 }
 0xa41   :  { %v4391_v21 = vpop.f32.mrb[17].mxu1 }
 0xa42   :  { %v4392_v29 = vadd.f32 %v4391_v21, %v4390_v62 }
 0xa44   :  { %v4008_v30 = vadd.f32 %v4392_v29, %v4027_v28 }
 0xa46   :  { %4011 = vst [vmem:[%s6962_s19] sm:$0xff] %v4008_v30 }
 0xa47   :  { %4016 = vsyncpa [#allocation3], 1 }
 0xa48   :  { %4017 = vsyncpa [#allocation5], 1 }
 0xa49   :  { %4018 = vsyncpa [#allocation8], 1 }
 0xa4a   :  { %4019 = vsyncpa [#allocation11], 1 }
 0xa4b   :  { %4020 = vsyncpa [#allocation14], 1 }
 0xa4c   :  { %4021 = vsyncpa [#allocation17], 1 }
 0xa4d   :  { %4022 = vsyncpa [#allocation20], 1 }
 0xa4e   :  { %4023 = vsyncpa [#allocation23], 1 }
 0xa4f   :  { %4024 = vsyncpa [#allocation26], 1 }
 0xa50   :  { %4025 = vsyncpa [#allocation29], 1 }

</bundles_post_ra>
